<compile_context>
chip_gen: v7x
topology: tpu7x:2x2x1
jax: 0.10.0
libtpu: 0.0.40
codegen_flags: <defaults>
</compile_context>

<pallas_src>
import functools
import math

import numpy as np
import jax
import jax.numpy as jnp
from jax.experimental import pallas as pl
from jax.experimental.pallas import tpu as pltpu

_MIN_F32 = float(np.finfo(np.float32).min)


def _pe_pad_len(T):
  """Lane-padded length (multiple of 128, >= 2T) for the rel-pos score axis."""
  return ((2 * T + 127) // 128) * 128


# ----------------------------------------------------------------------------
# Runtime probe: does pltpu.roll support the exact strided lane-shift we need?
# ----------------------------------------------------------------------------

def _probe_strided_roll(heads, T, P_pad):
  """Verify (shape + semantics) that a strided pltpu.roll implements
  out[h, t, j] == in[h, t, j + T - t]  for j < T.  Fall back otherwise."""
  try:
    shift = P_pad - T

    def kern(x_ref, o_ref):
      o_ref[...] = pltpu.roll(x_ref[...], shift=shift, axis=2,
                              stride=1, stride_axis=1)

    x = np.arange(heads * T * P_pad, dtype=np.float32).reshape(heads, T, P_pad)
    got = pl.pallas_call(
        kern,
        out_shape=jax.ShapeDtypeStruct((heads, T, P_pad), jnp.float32),
    )(jnp.asarray(x))
    got = np.asarray(jax.block_until_ready(got))
    for t in range(T):
      if not np.array_equal(got[:, t, :T], x[:, t, T - t:2 * T - t]):
        return False
    return True
  except Exception:
    # Lowering / API not supported on this backend -> use slice-based shift.
    return False


# ----------------------------------------------------------------------------
# Fused kernel: one grid step == (one batch element, one conformer block)
# ----------------------------------------------------------------------------

def _conformer_block_kernel(
    # per-batch inputs (block index constant along the block axis)
    x_ref,        # [1, T, C]
    mask_ref,     # [1, T, 1]
    # per-block weights (streamed along the block grid axis)
    pe_ref,                                   # [1, H, P_pad, Hs]
    ff_ln_g_ref, ff_ln_b_ref,                 # [1, 2, 1, C]
    ff_w1_ref, ff_b1_ref,                     # [1, 2, Kf*C, mid], [1, 2, 1, mid]
    ff_w2_ref, ff_b2_ref,                     # [1, 2, Kf*mid, C], [1, 2, 1, C]
    mh_ln_g_ref, mh_ln_b_ref,                 # [1, 1, C]
    mh_wqkv_ref, mh_bqkv_ref,                 # [1, C, 3C], [1, 1, 3C]
    mh_wo_ref, mh_bo_ref,                     # [1, C, C], [1, 1, C]
    mh_bu_ref, mh_bv_ref,                     # [1, H, 1, Hs]
    cv_ln_g_ref, cv_ln_b_ref,                 # [1, 1, C]
    cv_pw1a_w_ref, cv_pw1a_b_ref,             # [1, C, C], [1, 1, C]
    cv_pw1b_w_ref, cv_pw1b_b_ref,             # [1, C, C], [1, 1, C]
    cv_dw_w_ref, cv_dw_b_ref,                 # [1, Kc*C, C], [1, 1, C]
    cv_bn_s_ref, cv_bn_t_ref,                 # [1, 1, C]
    cv_pw2_w_ref, cv_pw2_b_ref,               # [1, C, C], [1, 1, C]
    o_ref,        # [1, T, C]   (also carries the activation across blocks)
    *, heads, ff_k, conv_k, use_strided_roll):
  f32 = jnp.float32
  T, C = x_ref.shape[1], x_ref.shape[2]
  Hs = C // heads
  P_pad = pe_ref.shape[2]
  bi = pl.program_id(1)

  # Activation is carried across the block grid axis inside the resident
  # output block: init from the input at block 0, written back to HBM only
  # when the batch index changes.
  @pl.when(bi == 0)
  def _():
    o_ref[0] = x_ref[0]

  x = o_ref[0]                                  # [T, C]
  mask_col = mask_ref[0]                        # [T, 1]
  row_invalid = (mask_col == 0.0)[None, :, :]   # [1, T, 1] query-row mask

  def mm(a, w):
    # Weights may be stored bf16 at production sizes; accumulate in f32.
    return jnp.dot(a.astype(w.dtype), w, preferred_element_type=f32)

  def layer_norm(z, g, b):
    # TODO(synk): reference LayerNorm(dim=1) class is external; assumed
    # standard per-channel LayerNorm (eps=1e-5) with affine params.
    mu = jnp.mean(z, axis=-1, keepdims=True)
    zc = z - mu
    var = jnp.mean(zc * zc, axis=-1, keepdims=True)
    return zc * jax.lax.rsqrt(var + 1e-5) * g + b

  def conv1d(z, w_2d, bias_row, k_size):
    """'same' 1-D conv as ONE matmul on an im2col tile built in VMEM."""
    pad = k_size // 2
    t_in, c_in = z.shape
    zpad = jnp.zeros((pad, c_in), f32)
    zp = jnp.concatenate([zpad, z, zpad], axis=0)                   # [T+2p, Cin]
    cols = jnp.concatenate([zp[k:k + t_in, :] for k in range(k_size)],
                           axis=1)                                  # [T, K*Cin]
    return mm(cols, w_2d) + bias_row

  def feed_forward(z, fi):
    h = layer_norm(z, ff_ln_g_ref[0, fi], ff_ln_b_ref[0, fi])
    h = conv1d(h, ff_w1_ref[0, fi], ff_b1_ref[0, fi], ff_k)
    h = jnp.maximum(h, 0.0)                                         # ReLU
    h = conv1d(h, ff_w2_ref[0, fi], ff_b2_ref[0, fi], ff_k)
    # TODO(synk): dropout == identity (inference mode).
    return z + 0.5 * h

  def mhsa(z):
    h = layer_norm(z, mh_ln_g_ref[0], mh_ln_b_ref[0])
    qkv = mm(h, mh_wqkv_ref[0]) + mh_bqkv_ref[0]                    # [T, 3C]
    qkv_ct = jnp.transpose(qkv)                                     # [3C, T] (single transpose)
    # reference layout scramble: [C, T] -> reshape -> [H, T, Hs]
    q_h = qkv_ct[0:C].reshape(heads, T, Hs)
    k_h = qkv_ct[C:2 * C].reshape(heads, T, Hs)
    v_h = qkv_ct[2 * C:3 * C].reshape(heads, T, Hs)
    pe_h = pe_ref[0]                                                # [H, P_pad, Hs]

    q_u = q_h + mh_bu_ref[0]
    q_v = q_h + mh_bv_ref[0]
    ac = jnp.einsum('hts,hus->htu', q_u, k_h,
                    preferred_element_type=f32)                     # [H, T, T]
    bd_p = jnp.einsum('hts,hps->htp', q_v, pe_h,
                      preferred_element_type=f32)                   # [H, T, P_pad]
    # relative shift (padded-index convention): bd[h,t,j] = bd_p[h,t, j + T - t]
    if use_strided_roll:
      rolled = pltpu.roll(bd_p, shift=P_pad - T, axis=2,
                          stride=1, stride_axis=1)
      bd = rolled[:, :, :T]                                         # [H, T, T]
    else:
      bd = jnp.concatenate(
          [bd_p[:, t:t + 1, T - t:2 * T - t] for t in range(T)], axis=1)

    s = (ac + bd) * (1.0 / math.sqrt(float(Hs)))
    s = jnp.where(row_invalid, _MIN_F32, s)                         # masked_fill(min)
    mx = jnp.max(s, axis=-1, keepdims=True)
    e = jnp.exp(s - mx)
    p = e * pl.reciprocal(jnp.sum(e, axis=-1, keepdims=True), approx=False)
    p = p * mask_col[None, :, :]                                    # masked_fill(0.)
    o_h = jnp.einsum('htu,hus->hts', p, v_h,
                     preferred_element_type=f32)                    # [H, T, Hs]

    # reference un-scramble: [H,T,Hs] -> [T,H,Hs] -> [C,T] -> [T,C]
    o_thd = jnp.concatenate([o_h[hh][:, None, :] for hh in range(heads)],
                            axis=1)                                 # [T, H, Hs]
    o_tc = jnp.transpose(o_thd.reshape(C, T))                       # [T, C]
    out = mm(o_tc, mh_wo_ref[0]) + mh_bo_ref[0]
    return z + out

  def conv_module(z):
    h = layer_norm(z, cv_ln_g_ref[0], cv_ln_b_ref[0])
    # GLU as two lane-aligned [C, C] matmuls (value & gate halves).
    a = mm(h, cv_pw1a_w_ref[0]) + cv_pw1a_b_ref[0]
    g = mm(h, cv_pw1b_w_ref[0]) + cv_pw1b_b_ref[0]
    h = a * jax.nn.sigmoid(g)
    h = conv1d(h, cv_dw_w_ref[0], cv_dw_b_ref[0], conv_k)
    h = h * cv_bn_s_ref[0] + cv_bn_t_ref[0]                         # BN (running stats)
    h = h * jax.nn.sigmoid(h)                                       # SiLU
    h = mm(h, cv_pw2_w_ref[0]) + cv_pw2_b_ref[0]
    return z + h

  x = feed_forward(x, 0)
  x = mhsa(x)
  x = conv_module(x)
  x = feed_forward(x, 1)
  o_ref[0] = x * mask_col


# ----------------------------------------------------------------------------
# Position embedding (exact mirror of the reference formula)
# ----------------------------------------------------------------------------

def get_position_embedding(C, T, dtype=jnp.float32):
  factor = jnp.arange(0, C, 2, dtype=dtype)[:, None]          # [C/2, 1]
  factor = jnp.power(jnp.asarray(10000.0, dtype), -factor) * C
  position = jnp.arange(0, T, dtype=dtype)[None, :]           # [1, T]
  position = position * factor                                # [C/2, T]
  pos_pos = jnp.zeros((C, T), dtype)
  pos_neg = jnp.zeros((C, T), dtype)
  pos_pos = pos_pos.at[0::2, :].set(jnp.sin(position))
  pos_pos = pos_pos.at[1::2, :].set(jnp.cos(position))
  pos_neg = pos_neg.at[0::2, :].set(jnp.sin(-position))
  pos_neg = pos_neg.at[1::2, :].set(jnp.cos(-position))
  pos_pos = jnp.flip(pos_pos, axis=1)
  pos_neg = pos_neg[:, 1:]
  return jnp.concatenate([pos_pos, pos_neg], axis=1)          # [C, 2T-1]


# ----------------------------------------------------------------------------
# Parameter packing (torch-layout params -> per-block stacked, kernel-friendly)
# ----------------------------------------------------------------------------

def _pack_params(params, *, C, T, heads, matmul_dtype=jnp.float32):
  Hs = C // heads
  P = 2 * T - 1
  P_pad = _pe_pad_len(T)
  pe_pc = jnp.transpose(get_position_embedding(C, T))          # [P, C]

  def im2col_w(w_oik):  # torch conv weight [out, in, k] -> [k*in, out]
    k, cin, cout = w_oik.shape[2], w_oik.shape[1], w_oik.shape[0]
    return jnp.transpose(w_oik, (2, 1, 0)).reshape(k * cin, cout)

  names = ("pe", "ff_ln_g", "ff_ln_b", "ff_w1", "ff_b1", "ff_w2", "ff_b2",
           "mh_ln_g", "mh_ln_b", "mh_wqkv", "mh_bqkv", "mh_wo", "mh_bo",
           "mh_bu", "mh_bv",
           "cv_ln_g", "cv_ln_b", "cv_pw1a_w", "cv_pw1a_b", "cv_pw1b_w",
           "cv_pw1b_b", "cv_dw_w", "cv_dw_b", "cv_bn_s", "cv_bn_t",
           "cv_pw2_w", "cv_pw2_b")
  acc = {n: [] for n in names}

  for p in params["blocks"]:
    f1, f2, m, c = p["ff1"], p["ff2"], p["mhsa"], p["conv"]
    acc["ff_ln_g"].append(jnp.stack([f1["ln_g"].reshape(1, C), f2["ln_g"].reshape(1, C)]))
    acc["ff_ln_b"].append(jnp.stack([f1["ln_b"].reshape(1, C), f2["ln_b"].reshape(1, C)]))
    acc["ff_w1"].append(jnp.stack([im2col_w(f1["w1"]), im2col_w(f2["w1"])]))
    acc["ff_b1"].append(jnp.stack([f1["b1"].reshape(1, -1), f2["b1"].reshape(1, -1)]))
    acc["ff_w2"].append(jnp.stack([im2col_w(f1["w2"]), im2col_w(f2["w2"])]))
    acc["ff_b2"].append(jnp.stack([f1["b2"].reshape(1, C), f2["b2"].reshape(1, C)]))

    acc["mh_ln_g"].append(m["ln_g"].reshape(1, C))
    acc["mh_ln_b"].append(m["ln_b"].reshape(1, C))
    acc["mh_wqkv"].append(jnp.concatenate([m["wq"], m["wk"], m["wv"]], axis=1))
    acc["mh_bqkv"].append(jnp.concatenate([m["bq"], m["bk"], m["bv"]]).reshape(1, 3 * C))
    acc["mh_wo"].append(m["wo"])
    acc["mh_bo"].append(m["bo"].reshape(1, C))
    acc["mh_bu"].append(m["bias_u"].reshape(heads, 1, Hs))
    acc["mh_bv"].append(m["bias_v"].reshape(heads, 1, Hs))
    # Position-embedding projection hoisted out of the kernel (tiny, once per
    # forward), pre-scrambled to the reference's [H, 2T-1, Hs] layout, then
    # prepended with one zero row and lane-padded to a multiple of 128 so the
    # in-kernel relative shift is a single strided roll.
    pe_lin = jnp.dot(pe_pc, m["wp"]) + m["bp"][None, :]              # [P, C]
    pe_h = jnp.transpose(pe_lin).reshape(heads, P, Hs)               # reference scramble
    pe_h = jnp.pad(pe_h, ((0, 0), (1, P_pad - P - 1), (0, 0)))       # [H, P_pad, Hs]
    acc["pe"].append(pe_h)

    acc["cv_ln_g"].append(c["ln_g"].reshape(1, C))
    acc["cv_ln_b"].append(c["ln_b"].reshape(1, C))
    acc["cv_pw1a_w"].append(c["pw1_w"][:, :C])
    acc["cv_pw1a_b"].append(c["pw1_b"][:C].reshape(1, C))
    acc["cv_pw1b_w"].append(c["pw1_w"][:, C:])
    acc["cv_pw1b_b"].append(c["pw1_b"][C:].reshape(1, C))
    acc["cv_dw_w"].append(im2col_w(c["dw_w"]))
    acc["cv_dw_b"].append(c["dw_b"].reshape(1, C))
    scale = c["bn_g"] / jnp.sqrt(c["bn_var"] + 1e-5)
    shift = c["bn_b"] - c["bn_mean"] * scale
    acc["cv_bn_s"].append(scale.reshape(1, C))
    acc["cv_bn_t"].append(shift.reshape(1, C))
    acc["cv_pw2_w"].append(c["pw2_w"])
    acc["cv_pw2_b"].append(c["pw2_b"].reshape(1, C))

  mm_names = {"ff_w1", "ff_w2", "mh_wqkv", "mh_wo",
              "cv_pw1a_w", "cv_pw1b_w", "cv_dw_w", "cv_pw2_w"}
  out = []
  for n in names:
    dt = matmul_dtype if n in mm_names else jnp.float32
    out.append(jnp.stack(acc[n]).astype(dt))
  return tuple(out)


# ----------------------------------------------------------------------------
# Public entry: [B, C, T] PyTorch interface
# ----------------------------------------------------------------------------

def conformer_encoder(x_bct, mask_b1t, params, heads, ff_k=3, conv_k=7,
                      matmul_dtype=None, use_strided_roll=False):
  B, C, T = x_bct.shape
  num_blocks = len(params["blocks"])
  assert C % heads == 0
  if matmul_dtype is None:
    # bf16 matmul weights only at production-ish sizes; f32 at demo shapes.
    matmul_dtype = jnp.bfloat16 if C >= 128 else jnp.float32

  x_btc = jnp.transpose(x_bct, (0, 2, 1)).astype(jnp.float32)        # [B, T, C]
  mask_bt1 = jnp.transpose(mask_b1t, (0, 2, 1)).astype(jnp.float32)  # [B, T, 1]
  packed = _pack_params(params, C=C, T=T, heads=heads,
                        matmul_dtype=matmul_dtype)

  kernel = functools.partial(
      _conformer_block_kernel, heads=heads, ff_k=ff_k, conv_k=conv_k,
      use_strided_roll=use_strided_roll)

  def batch_spec(shape):
    nd = len(shape)
    return pl.BlockSpec(shape, lambda b, i, _nd=nd: (b,) + (0,) * (_nd - 1))

  def block_spec(arr):
    nd = arr.ndim
    shape = (1,) + tuple(arr.shape[1:])
    return pl.BlockSpec(shape, lambda b, i, _nd=nd: (i,) + (0,) * (_nd - 1))

  in_specs = ([batch_spec((1, T, C)), batch_spec((1, T, 1))]
              + [block_spec(a) for a in packed])

  # --- advisory cost / explicit VMEM budget -------------------------------
  P_pad = packed[0].shape[2]
  mid = packed[4].shape[-1]
  per_block_bytes = sum(int(np.prod(a.shape[1:])) * a.dtype.itemsize
                        for a in packed)
  flops_block = (
      8 * T * ff_k * C * mid                                   # two FF modules
      + 2 * T * C * 3 * C + 2 * T * C * C                      # qkv + out proj
      + 2 * T * T * C + 2 * T * P_pad * C + 2 * T * T * C      # ac, bd, p@v
      + 4 * T * C * C + 2 * T * conv_k * C * C + 2 * T * C * C)  # conv module
  cost = pl.CostEstimate(
      flops=int(B * num_blocks * flops_block),
      transcendentals=int(B * num_blocks * (heads * T * T + 3 * T * C)),
      bytes_accessed=int(4 * (2 * B * T * C + B * T)
                         + B * num_blocks * per_block_bytes),
  )
  vmem_limit = int(min(100 * 1024 * 1024,
                       max(32 * 1024 * 1024,
                           4 * per_block_bytes + 16 * T * C * 4 + (4 << 20))))

  out = pl.pallas_call(
      kernel,
      grid=(B, num_blocks),
      in_specs=in_specs,
      out_specs=batch_spec((1, T, C)),
      out_shape=jax.ShapeDtypeStruct((B, T, C), jnp.float32),
      compiler_params=pltpu.CompilerParams(
          dimension_semantics=("parallel", "arbitrary"),
          vmem_limit_bytes=vmem_limit),
      cost_estimate=cost,
  )(x_btc, mask_bt1, *packed)
  return jnp.transpose(out, (0, 2, 1))


# ----------------------------------------------------------------------------
# Deterministic parameter init (matches the module's shape semantics)
# ----------------------------------------------------------------------------

def init_params(key, num_blocks, C, mid, heads, ff_k, conv_k):
  Hs = C // heads

  def w(k, shape, fan_in):
    return jax.random.normal(k, shape, jnp.float32) / math.sqrt(fan_in)

  def zeros(s): return jnp.zeros(s, jnp.float32)
  def ones(s): return jnp.ones(s, jnp.float32)

  blocks = []
  for bi in range(num_blocks):
    bkey = jax.random.fold_in(key, bi)
    ks = jax.random.split(bkey, 16)

    def ff(k1, k2):
      return dict(
          ln_g=ones((C,)), ln_b=zeros((C,)),
          w1=w(k1, (mid, C, ff_k), C * ff_k), b1=zeros((mid,)),   # torch conv layout
          w2=w(k2, (C, mid, ff_k), mid * ff_k), b2=zeros((C,)),
      )

    mhsa_p = dict(
        ln_g=ones((C,)), ln_b=zeros((C,)),
        wq=w(ks[4], (C, C), C), bq=zeros((C,)),   # linear weights stored [in, out]
        wk=w(ks[5], (C, C), C), bk=zeros((C,)),
        wv=w(ks[6], (C, C), C), bv=zeros((C,)),
        wp=w(ks[7], (C, C), C), bp=zeros((C,)),
        wo=w(ks[8], (C, C), C), bo=zeros((C,)),
        bias_u=0.02 * jax.random.normal(ks[9], (1, heads, 1, Hs), jnp.float32),
        bias_v=0.02 * jax.random.normal(ks[10], (1, heads, 1, Hs), jnp.float32),
    )
    conv_p = dict(
        ln_g=ones((C,)), ln_b=zeros((C,)),
        pw1_w=w(ks[11], (C, 2 * C), C), pw1_b=zeros((2 * C,)),
        dw_w=w(ks[12], (C, C, conv_k), C * conv_k), dw_b=zeros((C,)),
        bn_g=ones((C,)), bn_b=zeros((C,)), bn_mean=zeros((C,)), bn_var=ones((C,)),
        pw2_w=w(ks[13], (C, C), C), pw2_b=zeros((C,)),
    )
    blocks.append(dict(ff1=ff(ks[0], ks[1]), mhsa=mhsa_p, conv=conv_p,
                       ff2=ff(ks[2], ks[3])))
  return dict(blocks=blocks)


# ----------------------------------------------------------------------------
# Main
# ----------------------------------------------------------------------------

if __name__ == "__main__":
  B, T, C = 2, 16, 32          # small: batch=2, channel=32, time=16
  mid, heads = 64, 2
  ff_k, conv_k = 3, 7
  num_blocks = 2               # conf = {'encoder_num_blocks': 2}

  key = jax.random.PRNGKey(0)
  k_x, k_p = jax.random.split(key)

  x = jax.random.normal(k_x, (B, C, T), dtype=jnp.float32)
  lengths = jnp.array([T, T - 4])
  mask = (jnp.arange(T)[None, None, :] < lengths[:, None, None]).astype(jnp.float32)  # [B,1,T]

  params = init_params(k_p, num_blocks, C, mid, heads, ff_k, conv_k)

  # Probe the strided-roll relative shift once (outside jit); fall back to the
  # slice-based shift if unsupported on this backend.
  use_roll = _probe_strided_roll(heads, T, _pe_pad_len(T))

  fwd = jax.jit(functools.partial(
      conformer_encoder, heads=heads, ff_k=ff_k, conv_k=conv_k,
      use_strided_roll=use_roll))
  out = jax.block_until_ready(fwd(x, mask, params))

  assert out.shape == (B, C, T), out.shape
  assert bool(jnp.all(jnp.isfinite(out)))
  print("KERNEL_OK")
</pallas_src>

<mosaic_0001>
module attributes {stable_mosaic.version = 11 : i64} {
  func.func @kern(%arg0: memref<2x16x128xf32, #tpu.memory_space<vmem>>, %arg1: memref<2x16x128xf32, #tpu.memory_space<vmem>>) attributes {dimension_semantics = [], scalar_prefetch = 0 : i64, scratch_operands = 0 : i64, tpu.core_type = #tpu.core_type<tc>} {
    %c0 = arith.constant 0 : index
    %c0_0 = arith.constant 0 : index
    %c0_1 = arith.constant 0 : index
    %0 = vector.load %arg0[%c0, %c0_0, %c0_1] : memref<2x16x128xf32, #tpu.memory_space<vmem>>, vector<2x16x128xf32>
    %c112_i32 = arith.constant 112 : i32
    %1 = tpu.dynamic_rotate %0 by %c112_i32 dim 2 {stride = 1 : si32, stride_dimension = 1 : si32} : vector<2x16x128xf32>, i32 -> vector<2x16x128xf32>
    %c0_2 = arith.constant 0 : index
    %c0_3 = arith.constant 0 : index
    %c0_4 = arith.constant 0 : index
    %2 = vector.load %arg1[%c0_2, %c0_3, %c0_4] : memref<2x16x128xf32, #tpu.memory_space<vmem>>, vector<2x16x128xf32>
    tpu.vector_store %arg1[%c0_2, %c0_3, %c0_4], %1 {strides = array<i32>} : memref<2x16x128xf32, #tpu.memory_space<vmem>>, vector<2x16x128xf32>,
    return
  }
}

module attributes {stable_mosaic.version = 11 : i64} {
  func.func @_conformer_block_kernel(%arg0: i32, %arg1: i32, %arg2: memref<1x16x32xf32, #tpu.memory_space<vmem>>, %arg3: memref<1x16x1xf32, #tpu.memory_space<vmem>>, %arg4: memref<1x2x128x16xf32, #tpu.memory_space<vmem>>, %arg5: memref<1x2x1x32xf32, #tpu.memory_space<vmem>>, %arg6: memref<1x2x1x32xf32, #tpu.memory_space<vmem>>, %arg7: memref<1x2x96x64xf32, #tpu.memory_space<vmem>>, %arg8: memref<1x2x1x64xf32, #tpu.memory_space<vmem>>, %arg9: memref<1x2x192x32xf32, #tpu.memory_space<vmem>>, %arg10: memref<1x2x1x32xf32, #tpu.memory_space<vmem>>, %arg11: memref<1x1x32xf32, #tpu.memory_space<vmem>>, %arg12: memref<1x1x32xf32, #tpu.memory_space<vmem>>, %arg13: memref<1x32x96xf32, #tpu.memory_space<vmem>>, %arg14: memref<1x1x96xf32, #tpu.memory_space<vmem>>, %arg15: memref<1x32x32xf32, #tpu.memory_space<vmem>>, %arg16: memref<1x1x32xf32, #tpu.memory_space<vmem>>, %arg17: memref<1x2x1x16xf32, #tpu.memory_space<vmem>>, %arg18: memref<1x2x1x16xf32, #tpu.memory_space<vmem>>, %arg19: memref<1x1x32xf32, #tpu.memory_space<vmem>>, %arg20: memref<1x1x32xf32, #tpu.memory_space<vmem>>, %arg21: memref<1x32x32xf32, #tpu.memory_space<vmem>>, %arg22: memref<1x1x32xf32, #tpu.memory_space<vmem>>, %arg23: memref<1x32x32xf32, #tpu.memory_space<vmem>>, %arg24: memref<1x1x32xf32, #tpu.memory_space<vmem>>, %arg25: memref<1x224x32xf32, #tpu.memory_space<vmem>>, %arg26: memref<1x1x32xf32, #tpu.memory_space<vmem>>, %arg27: memref<1x1x32xf32, #tpu.memory_space<vmem>>, %arg28: memref<1x1x32xf32, #tpu.memory_space<vmem>>, %arg29: memref<1x32x32xf32, #tpu.memory_space<vmem>>, %arg30: memref<1x1x32xf32, #tpu.memory_space<vmem>>, %arg31: memref<1x16x32xf32, #tpu.memory_space<vmem>>) attributes {dimension_semantics = [#tpu.dimension_semantics<parallel>, #tpu.dimension_semantics<arbitrary>], iteration_bounds = array<i64: 2, 2>, scalar_prefetch = 0 : i64, scratch_operands = 0 : i64, tpu.core_type = #tpu.core_type<tc>, window_params = [{transform_indices = @transform_0, window_bounds = array<i64: 1, 16, 32>}, {transform_indices = @transform_1, window_bounds = array<i64: 1, 16, 1>}, {transform_indices = @transform_2, window_bounds = array<i64: 1, 2, 128, 16>}, {transform_indices = @transform_3, window_bounds = array<i64: 1, 2, 1, 32>}, {transform_indices = @transform_4, window_bounds = array<i64: 1, 2, 1, 32>}, {transform_indices = @transform_5, window_bounds = array<i64: 1, 2, 96, 64>}, {transform_indices = @transform_6, window_bounds = array<i64: 1, 2, 1, 64>}, {transform_indices = @transform_7, window_bounds = array<i64: 1, 2, 192, 32>}, {transform_indices = @transform_8, window_bounds = array<i64: 1, 2, 1, 32>}, {transform_indices = @transform_9, window_bounds = array<i64: 1, 1, 32>}, {transform_indices = @transform_10, window_bounds = array<i64: 1, 1, 32>}, {transform_indices = @transform_11, window_bounds = array<i64: 1, 32, 96>}, {transform_indices = @transform_12, window_bounds = array<i64: 1, 1, 96>}, {transform_indices = @transform_13, window_bounds = array<i64: 1, 32, 32>}, {transform_indices = @transform_14, window_bounds = array<i64: 1, 1, 32>}, {transform_indices = @transform_15, window_bounds = array<i64: 1, 2, 1, 16>}, {transform_indices = @transform_16, window_bounds = array<i64: 1, 2, 1, 16>}, {transform_indices = @transform_17, window_bounds = array<i64: 1, 1, 32>}, {transform_indices = @transform_18, window_bounds = array<i64: 1, 1, 32>}, {transform_indices = @transform_19, window_bounds = array<i64: 1, 32, 32>}, {transform_indices = @transform_20, window_bounds = array<i64: 1, 1, 32>}, {transform_indices = @transform_21, window_bounds = array<i64: 1, 32, 32>}, {transform_indices = @transform_22, window_bounds = array<i64: 1, 1, 32>}, {transform_indices = @transform_23, window_bounds = array<i64: 1, 224, 32>}, {transform_indices = @transform_24, window_bounds = array<i64: 1, 1, 32>}, {transform_indices = @transform_25, window_bounds = array<i64: 1, 1, 32>}, {transform_indices = @transform_26, window_bounds = array<i64: 1, 1, 32>}, {transform_indices = @transform_27, window_bounds = array<i64: 1, 32, 32>}, {transform_indices = @transform_28, window_bounds = array<i64: 1, 1, 32>}, {transform_indices = @transform_29, window_bounds = array<i64: 1, 16, 32>}]} {
    %c0_i32 = arith.constant 0 : i32
    %0 = arith.cmpi eq, %arg1, %c0_i32 : i32
    %1 = arith.extui %0 : i1 to i32
    %c0_i32_0 = arith.constant 0 : i32
    %2 = arith.cmpi ne, %1, %c0_i32_0 : i32
    scf.if %2 {
      %c0_170 = arith.constant 0 : index
      %c0_171 = arith.constant 0 : index
      %c0_172 = arith.constant 0 : index
      %313 = vector.load %arg2[%c0_170, %c0_171, %c0_172] : memref<1x16x32xf32, #tpu.memory_space<vmem>>, vector<1x16x32xf32>
      %314 = vector.shape_cast %313 : vector<1x16x32xf32> to vector<16x32xf32>
      %c0_173 = arith.constant 0 : index
      %c0_174 = arith.constant 0 : index
      %c0_175 = arith.constant 0 : index
      %315 = vector.load %arg31[%c0_173, %c0_174, %c0_175] : memref<1x16x32xf32, #tpu.memory_space<vmem>>, vector<1x16x32xf32>
      %316 = vector.shape_cast %315 : vector<1x16x32xf32> to vector<16x32xf32>
      %317 = vector.shape_cast %314 : vector<16x32xf32> to vector<1x16x32xf32>
      tpu.vector_store %arg31[%c0_173, %c0_174, %c0_175], %317 {strides = array<i32>} : memref<1x16x32xf32, #tpu.memory_space<vmem>>, vector<1x16x32xf32>,
    } else {
    }
    %c0 = arith.constant 0 : index
    %c0_1 = arith.constant 0 : index
    %c0_2 = arith.constant 0 : index
    %3 = vector.load %arg31[%c0, %c0_1, %c0_2] : memref<1x16x32xf32, #tpu.memory_space<vmem>>, vector<1x16x32xf32>
    %4 = vector.shape_cast %3 : vector<1x16x32xf32> to vector<16x32xf32>
    %c0_3 = arith.constant 0 : index
    %c0_4 = arith.constant 0 : index
    %c0_5 = arith.constant 0 : index
    %5 = vector.load %arg3[%c0_3, %c0_4, %c0_5] : memref<1x16x1xf32, #tpu.memory_space<vmem>>, vector<1x16x1xf32>
    %6 = vector.shape_cast %5 : vector<1x16x1xf32> to vector<16x1xf32>
    %cst = arith.constant 0.000000e+00 : f32
    %7 = vector.broadcast %cst : f32 to vector<16x1xf32>
    %8 = arith.cmpf oeq, %6, %7 : vector<16x1xf32>
    %9 = vector.shape_cast %8 : vector<16x1xi1> to vector<1x16x1xi1>
    %c0_6 = arith.constant 0 : index
    %c0_7 = arith.constant 0 : index
    %c0_8 = arith.constant 0 : index
    %c0_9 = arith.constant 0 : index
    %10 = vector.load %arg5[%c0_6, %c0_7, %c0_8, %c0_9] : memref<1x2x1x32xf32, #tpu.memory_space<vmem>>, vector<1x1x1x32xf32>
    %11 = vector.shape_cast %10 : vector<1x1x1x32xf32> to vector<1x32xf32>
    %c0_10 = arith.constant 0 : index
    %c0_11 = arith.constant 0 : index
    %c0_12 = arith.constant 0 : index
    %c0_13 = arith.constant 0 : index
    %12 = vector.load %arg6[%c0_10, %c0_11, %c0_12, %c0_13] : memref<1x2x1x32xf32, #tpu.memory_space<vmem>>, vector<1x1x1x32xf32>
    %13 = vector.shape_cast %12 : vector<1x1x1x32xf32> to vector<1x32xf32>
    %cst_14 = arith.constant dense<0.000000e+00> : vector<16xf32>
    %14 = vector.multi_reduction <add>, %4, %cst_14 [1] : vector<16x32xf32> to vector<16xf32>
    %15 = vector.shape_cast %14 : vector<16xf32> to vector<16x1xf32>
    %cst_15 = arith.constant 3.200000e+01 : f32
    %16 = vector.broadcast %cst_15 : f32 to vector<16x1xf32>
    %17 = arith.divf %15, %16 : vector<16x1xf32>
    %18 = vector.broadcast %17 : vector<16x1xf32> to vector<16x32xf32>
    %19 = arith.subf %4, %18 : vector<16x32xf32>
    %20 = arith.mulf %19, %19 : vector<16x32xf32>
    %cst_16 = arith.constant dense<0.000000e+00> : vector<16xf32>
    %21 = vector.multi_reduction <add>, %20, %cst_16 [1] : vector<16x32xf32> to vector<16xf32>
    %22 = vector.shape_cast %21 : vector<16xf32> to vector<16x1xf32>
    %cst_17 = arith.constant 3.200000e+01 : f32
    %23 = vector.broadcast %cst_17 : f32 to vector<16x1xf32>
    %24 = arith.divf %22, %23 : vector<16x1xf32>
    %cst_18 = arith.constant 9.99999974E-6 : f32
    %25 = vector.broadcast %cst_18 : f32 to vector<16x1xf32>
    %26 = arith.addf %24, %25 : vector<16x1xf32>
    %27 = math.rsqrt %26 : vector<16x1xf32>
    %28 = vector.broadcast %27 : vector<16x1xf32> to vector<16x32xf32>
    %29 = arith.mulf %19, %28 : vector<16x32xf32>
    %30 = vector.broadcast %11 : vector<1x32xf32> to vector<16x32xf32>
    %31 = arith.mulf %29, %30 : vector<16x32xf32>
    %32 = vector.broadcast %13 : vector<1x32xf32> to vector<16x32xf32>
    %33 = arith.addf %31, %32 : vector<16x32xf32>
    %c0_19 = arith.constant 0 : index
    %c0_20 = arith.constant 0 : index
    %c0_21 = arith.constant 0 : index
    %c0_22 = arith.constant 0 : index
    %34 = vector.load %arg7[%c0_19, %c0_20, %c0_21, %c0_22] : memref<1x2x96x64xf32, #tpu.memory_space<vmem>>, vector<1x1x96x64xf32>
    %35 = vector.shape_cast %34 : vector<1x1x96x64xf32> to vector<96x64xf32>
    %c0_23 = arith.constant 0 : index
    %c0_24 = arith.constant 0 : index
    %c0_25 = arith.constant 0 : index
    %c0_26 = arith.constant 0 : index
    %36 = vector.load %arg8[%c0_23, %c0_24, %c0_25, %c0_26] : memref<1x2x1x64xf32, #tpu.memory_space<vmem>>, vector<1x1x1x64xf32>
    %37 = vector.shape_cast %36 : vector<1x1x1x64xf32> to vector<1x64xf32>
    %cst_27 = arith.constant 0.000000e+00 : f32
    %38 = vector.broadcast %cst_27 : f32 to vector<1x32xf32>
    %39 = tpu.concatenate %38, %33, %38 in 0 : vector<1x32xf32>, vector<16x32xf32>, vector<1x32xf32> -> vector<18x32xf32>
    %40 = vector.extract_strided_slice %39 {offsets = [0, 0], sizes = [16, 32], strides = [1, 1]} : vector<18x32xf32> to vector<16x32xf32>
    %41 = vector.extract_strided_slice %39 {offsets = [1, 0], sizes = [16, 32], strides = [1, 1]} : vector<18x32xf32> to vector<16x32xf32>
    %42 = vector.extract_strided_slice %39 {offsets = [2, 0], sizes = [16, 32], strides = [1, 1]} : vector<18x32xf32> to vector<16x32xf32>
    %43 = tpu.concatenate %40, %41, %42 in 1 : vector<16x32xf32>, vector<16x32xf32>, vector<16x32xf32> -> vector<16x96xf32>
    %cst_28 = arith.constant dense<0.000000e+00> : vector<16x64xf32>
    %44 = tpu.matmul %43, %35, %cst_28 {dimension_numbers = #tpu.dot_dimension_numbers<[1], [0], [0], [1], [0, 0, 1, 1], [], []>} : vector<16x96xf32>, vector<96x64xf32>, vector<16x64xf32> -> vector<16x64xf32>
    %45 = vector.broadcast %37 : vector<1x64xf32> to vector<16x64xf32>
    %46 = arith.addf %44, %45 : vector<16x64xf32>
    %cst_29 = arith.constant 0.000000e+00 : f32
    %47 = vector.broadcast %cst_29 : f32 to vector<16x64xf32>
    %48 = arith.maximumf %46, %47 : vector<16x64xf32>
    %c0_30 = arith.constant 0 : index
    %c0_31 = arith.constant 0 : index
    %c0_32 = arith.constant 0 : index
    %c0_33 = arith.constant 0 : index
    %49 = vector.load %arg9[%c0_30, %c0_31, %c0_32, %c0_33] : memref<1x2x192x32xf32, #tpu.memory_space<vmem>>, vector<1x1x192x32xf32>
    %50 = vector.shape_cast %49 : vector<1x1x192x32xf32> to vector<192x32xf32>
    %c0_34 = arith.constant 0 : index
    %c0_35 = arith.constant 0 : index
    %c0_36 = arith.constant 0 : index
    %c0_37 = arith.constant 0 : index
    %51 = vector.load %arg10[%c0_34, %c0_35, %c0_36, %c0_37] : memref<1x2x1x32xf32, #tpu.memory_space<vmem>>, vector<1x1x1x32xf32>
    %52 = vector.shape_cast %51 : vector<1x1x1x32xf32> to vector<1x32xf32>
    %cst_38 = arith.constant 0.000000e+00 : f32
    %53 = vector.broadcast %cst_38 : f32 to vector<1x64xf32>
    %54 = tpu.concatenate %53, %48, %53 in 0 : vector<1x64xf32>, vector<16x64xf32>, vector<1x64xf32> -> vector<18x64xf32>
    %55 = vector.extract_strided_slice %54 {offsets = [0, 0], sizes = [16, 64], strides = [1, 1]} : vector<18x64xf32> to vector<16x64xf32>
    %56 = vector.extract_strided_slice %54 {offsets = [1, 0], sizes = [16, 64], strides = [1, 1]} : vector<18x64xf32> to vector<16x64xf32>
    %57 = vector.extract_strided_slice %54 {offsets = [2, 0], sizes = [16, 64], strides = [1, 1]} : vector<18x64xf32> to vector<16x64xf32>
    %58 = tpu.concatenate %55, %56, %57 in 1 : vector<16x64xf32>, vector<16x64xf32>, vector<16x64xf32> -> vector<16x192xf32>
    %cst_39 = arith.constant dense<0.000000e+00> : vector<16x32xf32>
    %59 = tpu.matmul %58, %50, %cst_39 {dimension_numbers = #tpu.dot_dimension_numbers<[1], [0], [0], [1], [0, 0, 1, 1], [], []>} : vector<16x192xf32>, vector<192x32xf32>, vector<16x32xf32> -> vector<16x32xf32>
    %60 = vector.broadcast %52 : vector<1x32xf32> to vector<16x32xf32>
    %61 = arith.addf %59, %60 : vector<16x32xf32>
    %cst_40 = arith.constant 5.000000e-01 : f32
    %62 = vector.broadcast %cst_40 : f32 to vector<16x32xf32>
    %63 = arith.mulf %62, %61 : vector<16x32xf32>
    %64 = arith.addf %4, %63 : vector<16x32xf32>
    %c0_41 = arith.constant 0 : index
    %c0_42 = arith.constant 0 : index
    %c0_43 = arith.constant 0 : index
    %65 = vector.load %arg11[%c0_41, %c0_42, %c0_43] : memref<1x1x32xf32, #tpu.memory_space<vmem>>, vector<1x1x32xf32>
    %66 = vector.shape_cast %65 : vector<1x1x32xf32> to vector<1x32xf32>
    %c0_44 = arith.constant 0 : index
    %c0_45 = arith.constant 0 : index
    %c0_46 = arith.constant 0 : index
    %67 = vector.load %arg12[%c0_44, %c0_45, %c0_46] : memref<1x1x32xf32, #tpu.memory_space<vmem>>, vector<1x1x32xf32>
    %68 = vector.shape_cast %67 : vector<1x1x32xf32> to vector<1x32xf32>
    %cst_47 = arith.constant dense<0.000000e+00> : vector<16xf32>
    %69 = vector.multi_reduction <add>, %64, %cst_47 [1] : vector<16x32xf32> to vector<16xf32>
    %70 = vector.shape_cast %69 : vector<16xf32> to vector<16x1xf32>
    %cst_48 = arith.constant 3.200000e+01 : f32
    %71 = vector.broadcast %cst_48 : f32 to vector<16x1xf32>
    %72 = arith.divf %70, %71 : vector<16x1xf32>
    %73 = vector.broadcast %72 : vector<16x1xf32> to vector<16x32xf32>
    %74 = arith.subf %64, %73 : vector<16x32xf32>
    %75 = arith.mulf %74, %74 : vector<16x32xf32>
    %cst_49 = arith.constant dense<0.000000e+00> : vector<16xf32>
    %76 = vector.multi_reduction <add>, %75, %cst_49 [1] : vector<16x32xf32> to vector<16xf32>
    %77 = vector.shape_cast %76 : vector<16xf32> to vector<16x1xf32>
    %cst_50 = arith.constant 3.200000e+01 : f32
    %78 = vector.broadcast %cst_50 : f32 to vector<16x1xf32>
    %79 = arith.divf %77, %78 : vector<16x1xf32>
    %cst_51 = arith.constant 9.99999974E-6 : f32
    %80 = vector.broadcast %cst_51 : f32 to vector<16x1xf32>
    %81 = arith.addf %79, %80 : vector<16x1xf32>
    %82 = math.rsqrt %81 : vector<16x1xf32>
    %83 = vector.broadcast %82 : vector<16x1xf32> to vector<16x32xf32>
    %84 = arith.mulf %74, %83 : vector<16x32xf32>
    %85 = vector.broadcast %66 : vector<1x32xf32> to vector<16x32xf32>
    %86 = arith.mulf %84, %85 : vector<16x32xf32>
    %87 = vector.broadcast %68 : vector<1x32xf32> to vector<16x32xf32>
    %88 = arith.addf %86, %87 : vector<16x32xf32>
    %c0_52 = arith.constant 0 : index
    %c0_53 = arith.constant 0 : index
    %c0_54 = arith.constant 0 : index
    %89 = vector.load %arg13[%c0_52, %c0_53, %c0_54] : memref<1x32x96xf32, #tpu.memory_space<vmem>>, vector<1x32x96xf32>
    %90 = vector.shape_cast %89 : vector<1x32x96xf32> to vector<32x96xf32>
    %cst_55 = arith.constant dense<0.000000e+00> : vector<16x96xf32>
    %91 = tpu.matmul %88, %90, %cst_55 {dimension_numbers = #tpu.dot_dimension_numbers<[1], [0], [0], [1], [0, 0, 1, 1], [], []>} : vector<16x32xf32>, vector<32x96xf32>, vector<16x96xf32> -> vector<16x96xf32>
    %c0_56 = arith.constant 0 : index
    %c0_57 = arith.constant 0 : index
    %c0_58 = arith.constant 0 : index
    %92 = vector.load %arg14[%c0_56, %c0_57, %c0_58] : memref<1x1x96xf32, #tpu.memory_space<vmem>>, vector<1x1x96xf32>
    %93 = vector.shape_cast %92 : vector<1x1x96xf32> to vector<1x96xf32>
    %94 = vector.broadcast %93 : vector<1x96xf32> to vector<16x96xf32>
    %95 = arith.addf %91, %94 : vector<16x96xf32>
    %96 = tpu.transpose %95, [1, 0] : vector<16x96xf32> -> vector<96x16xf32>
    %97 = vector.extract_strided_slice %96 {offsets = [0, 0], sizes = [32, 16], strides = [1, 1]} : vector<96x16xf32> to vector<32x16xf32>
    %98 = vector.shape_cast %97 : vector<32x16xf32> to vector<2x16x16xf32>
    %99 = vector.extract_strided_slice %96 {offsets = [32, 0], sizes = [32, 16], strides = [1, 1]} : vector<96x16xf32> to vector<32x16xf32>
    %100 = vector.shape_cast %99 : vector<32x16xf32> to vector<2x16x16xf32>
    %101 = vector.extract_strided_slice %96 {offsets = [64, 0], sizes = [32, 16], strides = [1, 1]} : vector<96x16xf32> to vector<32x16xf32>
    %102 = vector.shape_cast %101 : vector<32x16xf32> to vector<2x16x16xf32>
    %c0_59 = arith.constant 0 : index
    %c0_60 = arith.constant 0 : index
    %c0_61 = arith.constant 0 : index
    %c0_62 = arith.constant 0 : index
    %103 = vector.load %arg4[%c0_59, %c0_60, %c0_61, %c0_62] : memref<1x2x128x16xf32, #tpu.memory_space<vmem>>, vector<1x2x128x16xf32>
    %104 = vector.shape_cast %103 : vector<1x2x128x16xf32> to vector<2x128x16xf32>
    %c0_63 = arith.constant 0 : index
    %c0_64 = arith.constant 0 : index
    %c0_65 = arith.constant 0 : index
    %c0_66 = arith.constant 0 : index
    %105 = vector.load %arg17[%c0_63, %c0_64, %c0_65, %c0_66] : memref<1x2x1x16xf32, #tpu.memory_space<vmem>>, vector<1x2x1x16xf32>
    %106 = vector.shape_cast %105 : vector<1x2x1x16xf32> to vector<2x1x16xf32>
    %107 = vector.broadcast %106 : vector<2x1x16xf32> to vector<2x16x16xf32>
    %108 = arith.addf %98, %107 : vector<2x16x16xf32>
    %c0_67 = arith.constant 0 : index
    %c0_68 = arith.constant 0 : index
    %c0_69 = arith.constant 0 : index
    %c0_70 = arith.constant 0 : index
    %109 = vector.load %arg18[%c0_67, %c0_68, %c0_69, %c0_70] : memref<1x2x1x16xf32, #tpu.memory_space<vmem>>, vector<1x2x1x16xf32>
    %110 = vector.shape_cast %109 : vector<1x2x1x16xf32> to vector<2x1x16xf32>
    %111 = vector.broadcast %110 : vector<2x1x16xf32> to vector<2x16x16xf32>
    %112 = arith.addf %98, %111 : vector<2x16x16xf32>
    "tpu.trace_start"() <{level = 10 : i32, message = "hts,hus->htu"}> : () -> ()
    %cst_71 = arith.constant dense<0.000000e+00> : vector<2x16x16xf32>
    %113 = tpu.matmul %108, %100, %cst_71 {dimension_numbers = #tpu.dot_dimension_numbers<[2], [2], [1], [1], [0, 0, 0, 1, 1, 1], [0], [0]>} : vector<2x16x16xf32>, vector<2x16x16xf32>, vector<2x16x16xf32> -> vector<2x16x16xf32>
    "tpu.trace_stop"() : () -> ()
    "tpu.trace_start"() <{level = 10 : i32, message = "hts,hps->htp"}> : () -> ()
    %cst_72 = arith.constant dense<0.000000e+00> : vector<2x16x128xf32>
    %114 = tpu.matmul %112, %104, %cst_72 {dimension_numbers = #tpu.dot_dimension_numbers<[2], [2], [1], [1], [0, 0, 0, 1, 1, 1], [0], [0]>} : vector<2x16x16xf32>, vector<2x128x16xf32>, vector<2x16x128xf32> -> vector<2x16x128xf32>
    "tpu.trace_stop"() : () -> ()
    %115 = vector.extract_strided_slice %114 {offsets = [0, 0, 16], sizes = [2, 1, 16], strides = [1, 1, 1]} : vector<2x16x128xf32> to vector<2x1x16xf32>
    %116 = vector.extract_strided_slice %114 {offsets = [0, 1, 15], sizes = [2, 1, 16], strides = [1, 1, 1]} : vector<2x16x128xf32> to vector<2x1x16xf32>
    %117 = vector.extract_strided_slice %114 {offsets = [0, 2, 14], sizes = [2, 1, 16], strides = [1, 1, 1]} : vector<2x16x128xf32> to vector<2x1x16xf32>
    %118 = vector.extract_strided_slice %114 {offsets = [0, 3, 13], sizes = [2, 1, 16], strides = [1, 1, 1]} : vector<2x16x128xf32> to vector<2x1x16xf32>
    %119 = vector.extract_strided_slice %114 {offsets = [0, 4, 12], sizes = [2, 1, 16], strides = [1, 1, 1]} : vector<2x16x128xf32> to vector<2x1x16xf32>
    %120 = vector.extract_strided_slice %114 {offsets = [0, 5, 11], sizes = [2, 1, 16], strides = [1, 1, 1]} : vector<2x16x128xf32> to vector<2x1x16xf32>
    %121 = vector.extract_strided_slice %114 {offsets = [0, 6, 10], sizes = [2, 1, 16], strides = [1, 1, 1]} : vector<2x16x128xf32> to vector<2x1x16xf32>
    %122 = vector.extract_strided_slice %114 {offsets = [0, 7, 9], sizes = [2, 1, 16], strides = [1, 1, 1]} : vector<2x16x128xf32> to vector<2x1x16xf32>
    %123 = vector.extract_strided_slice %114 {offsets = [0, 8, 8], sizes = [2, 1, 16], strides = [1, 1, 1]} : vector<2x16x128xf32> to vector<2x1x16xf32>
    %124 = vector.extract_strided_slice %114 {offsets = [0, 9, 7], sizes = [2, 1, 16], strides = [1, 1, 1]} : vector<2x16x128xf32> to vector<2x1x16xf32>
    %125 = vector.extract_strided_slice %114 {offsets = [0, 10, 6], sizes = [2, 1, 16], strides = [1, 1, 1]} : vector<2x16x128xf32> to vector<2x1x16xf32>
    %126 = vector.extract_strided_slice %114 {offsets = [0, 11, 5], sizes = [2, 1, 16], strides = [1, 1, 1]} : vector<2x16x128xf32> to vector<2x1x16xf32>
    %127 = vector.extract_strided_slice %114 {offsets = [0, 12, 4], sizes = [2, 1, 16], strides = [1, 1, 1]} : vector<2x16x128xf32> to vector<2x1x16xf32>
    %128 = vector.extract_strided_slice %114 {offsets = [0, 13, 3], sizes = [2, 1, 16], strides = [1, 1, 1]} : vector<2x16x128xf32> to vector<2x1x16xf32>
    %129 = vector.extract_strided_slice %114 {offsets = [0, 14, 2], sizes = [2, 1, 16], strides = [1, 1, 1]} : vector<2x16x128xf32> to vector<2x1x16xf32>
    %130 = vector.extract_strided_slice %114 {offsets = [0, 15, 1], sizes = [2, 1, 16], strides = [1, 1, 1]} : vector<2x16x128xf32> to vector<2x1x16xf32>
    %131 = tpu.concatenate %115, %116, %117, %118, %119, %120, %121, %122, %123, %124, %125, %126, %127, %128, %129, %130 in 1 : vector<2x1x16xf32>, vector<2x1x16xf32>, vector<2x1x16xf32>, vector<2x1x16xf32>, vector<2x1x16xf32>, vector<2x1x16xf32>, vector<2x1x16xf32>, vector<2x1x16xf32>, vector<2x1x16xf32>, vector<2x1x16xf32>, vector<2x1x16xf32>, vector<2x1x16xf32>, vector<2x1x16xf32>, vector<2x1x16xf32>, vector<2x1x16xf32>, vector<2x1x16xf32> -> vector<2x16x16xf32>
    %132 = arith.addf %113, %131 : vector<2x16x16xf32>
    %cst_73 = arith.constant 2.500000e-01 : f32
    %133 = vector.broadcast %cst_73 : f32 to vector<2x16x16xf32>
    %134 = arith.mulf %132, %133 : vector<2x16x16xf32>
    %cst_74 = arith.constant -3.40282347E+38 : f32
    %135 = vector.shape_cast %9 : vector<1x16x1xi1> to vector<1x16x1xi1>
    %136 = vector.broadcast %135 : vector<1x16x1xi1> to vector<2x16x16xi1>
    %137 = vector.broadcast %cst_74 : f32 to vector<2x16x16xf32>
    %138 = arith.select %136, %137, %134 : vector<2x16x16xi1>, vector<2x16x16xf32>
    %cst_75 = arith.constant dense<0xFF800000> : vector<2x16xf32>
    %139 = vector.multi_reduction <maximumf>, %138, %cst_75 [2] : vector<2x16x16xf32> to vector<2x16xf32>
    %140 = vector.shape_cast %139 : vector<2x16xf32> to vector<2x16x1xf32>
    %141 = vector.broadcast %140 : vector<2x16x1xf32> to vector<2x16x16xf32>
    %142 = arith.subf %138, %141 : vector<2x16x16xf32>
    %143 = math.exp %142 : vector<2x16x16xf32>
    %cst_76 = arith.constant dense<0.000000e+00> : vector<2x16xf32>
    %144 = vector.multi_reduction <add>, %143, %cst_76 [2] : vector<2x16x16xf32> to vector<2x16xf32>
    %145 = vector.shape_cast %144 : vector<2x16xf32> to vector<2x16x1xf32>
    %146 = tpu.reciprocal %145 : vector<2x16x1xf32> -> vector<2x16x1xf32>
    %147 = vector.broadcast %146 : vector<2x16x1xf32> to vector<2x16x16xf32>
    %148 = arith.mulf %143, %147 : vector<2x16x16xf32>
    %149 = vector.shape_cast %6 : vector<16x1xf32> to vector<1x16x1xf32>
    %150 = vector.broadcast %149 : vector<1x16x1xf32> to vector<2x16x16xf32>
    %151 = arith.mulf %148, %150 : vector<2x16x16xf32>
    "tpu.trace_start"() <{level = 10 : i32, message = "htu,hus->hts"}> : () -> ()
    %cst_77 = arith.constant dense<0.000000e+00> : vector<2x16x16xf32>
    %152 = tpu.matmul %151, %102, %cst_77 {dimension_numbers = #tpu.dot_dimension_numbers<[2], [1], [1], [2], [0, 0, 0, 1, 1, 2], [0], [0]>} : vector<2x16x16xf32>, vector<2x16x16xf32>, vector<2x16x16xf32> -> vector<2x16x16xf32>
    "tpu.trace_stop"() : () -> ()
    %153 = vector.extract_strided_slice %152 {offsets = [0, 0, 0], sizes = [1, 16, 16], strides = [1, 1, 1]} : vector<2x16x16xf32> to vector<1x16x16xf32>
    %154 = vector.shape_cast %153 : vector<1x16x16xf32> to vector<16x16xf32>
    %155 = vector.shape_cast %154 : vector<16x16xf32> to vector<16x1x16xf32>
    %156 = vector.extract_strided_slice %152 {offsets = [1, 0, 0], sizes = [1, 16, 16], strides = [1, 1, 1]} : vector<2x16x16xf32> to vector<1x16x16xf32>
    %157 = vector.shape_cast %156 : vector<1x16x16xf32> to vector<16x16xf32>
    %158 = vector.shape_cast %157 : vector<16x16xf32> to vector<16x1x16xf32>
    %159 = tpu.concatenate %155, %158 in 1 : vector<16x1x16xf32>, vector<16x1x16xf32> -> vector<16x2x16xf32>
    %160 = vector.shape_cast %159 : vector<16x2x16xf32> to vector<32x16xf32>
    %161 = tpu.transpose %160, [1, 0] : vector<32x16xf32> -> vector<16x32xf32>
    %c0_78 = arith.constant 0 : index
    %c0_79 = arith.constant 0 : index
    %c0_80 = arith.constant 0 : index
    %162 = vector.load %arg15[%c0_78, %c0_79, %c0_80] : memref<1x32x32xf32, #tpu.memory_space<vmem>>, vector<1x32x32xf32>
    %163 = vector.shape_cast %162 : vector<1x32x32xf32> to vector<32x32xf32>
    %cst_81 = arith.constant dense<0.000000e+00> : vector<16x32xf32>
    %164 = tpu.matmul %161, %163, %cst_81 {dimension_numbers = #tpu.dot_dimension_numbers<[1], [0], [0], [1], [0, 0, 1, 1], [], []>} : vector<16x32xf32>, vector<32x32xf32>, vector<16x32xf32> -> vector<16x32xf32>
    %c0_82 = arith.constant 0 : index
    %c0_83 = arith.constant 0 : index
    %c0_84 = arith.constant 0 : index
    %165 = vector.load %arg16[%c0_82, %c0_83, %c0_84] : memref<1x1x32xf32, #tpu.memory_space<vmem>>, vector<1x1x32xf32>
    %166 = vector.shape_cast %165 : vector<1x1x32xf32> to vector<1x32xf32>
    %167 = vector.broadcast %166 : vector<1x32xf32> to vector<16x32xf32>
    %168 = arith.addf %164, %167 : vector<16x32xf32>
    %169 = arith.addf %64, %168 : vector<16x32xf32>
    %c0_85 = arith.constant 0 : index
    %c0_86 = arith.constant 0 : index
    %c0_87 = arith.constant 0 : index
    %170 = vector.load %arg19[%c0_85, %c0_86, %c0_87] : memref<1x1x32xf32, #tpu.memory_space<vmem>>, vector<1x1x32xf32>
    %171 = vector.shape_cast %170 : vector<1x1x32xf32> to vector<1x32xf32>
    %c0_88 = arith.constant 0 : index
    %c0_89 = arith.constant 0 : index
    %c0_90 = arith.constant 0 : index
    %172 = vector.load %arg20[%c0_88, %c0_89, %c0_90] : memref<1x1x32xf32, #tpu.memory_space<vmem>>, vector<1x1x32xf32>
    %173 = vector.shape_cast %172 : vector<1x1x32xf32> to vector<1x32xf32>
    %cst_91 = arith.constant dense<0.000000e+00> : vector<16xf32>
    %174 = vector.multi_reduction <add>, %169, %cst_91 [1] : vector<16x32xf32> to vector<16xf32>
    %175 = vector.shape_cast %174 : vector<16xf32> to vector<16x1xf32>
    %cst_92 = arith.constant 3.200000e+01 : f32
    %176 = vector.broadcast %cst_92 : f32 to vector<16x1xf32>
    %177 = arith.divf %175, %176 : vector<16x1xf32>
    %178 = vector.broadcast %177 : vector<16x1xf32> to vector<16x32xf32>
    %179 = arith.subf %169, %178 : vector<16x32xf32>
    %180 = arith.mulf %179, %179 : vector<16x32xf32>
    %cst_93 = arith.constant dense<0.000000e+00> : vector<16xf32>
    %181 = vector.multi_reduction <add>, %180, %cst_93 [1] : vector<16x32xf32> to vector<16xf32>
    %182 = vector.shape_cast %181 : vector<16xf32> to vector<16x1xf32>
    %cst_94 = arith.constant 3.200000e+01 : f32
    %183 = vector.broadcast %cst_94 : f32 to vector<16x1xf32>
    %184 = arith.divf %182, %183 : vector<16x1xf32>
    %cst_95 = arith.constant 9.99999974E-6 : f32
    %185 = vector.broadcast %cst_95 : f32 to vector<16x1xf32>
    %186 = arith.addf %184, %185 : vector<16x1xf32>
    %187 = math.rsqrt %186 : vector<16x1xf32>
    %188 = vector.broadcast %187 : vector<16x1xf32> to vector<16x32xf32>
    %189 = arith.mulf %179, %188 : vector<16x32xf32>
    %190 = vector.broadcast %171 : vector<1x32xf32> to vector<16x32xf32>
    %191 = arith.mulf %189, %190 : vector<16x32xf32>
    %192 = vector.broadcast %173 : vector<1x32xf32> to vector<16x32xf32>
    %193 = arith.addf %191, %192 : vector<16x32xf32>
    %c0_96 = arith.constant 0 : index
    %c0_97 = arith.constant 0 : index
    %c0_98 = arith.constant 0 : index
    %194 = vector.load %arg21[%c0_96, %c0_97, %c0_98] : memref<1x32x32xf32, #tpu.memory_space<vmem>>, vector<1x32x32xf32>
    %195 = vector.shape_cast %194 : vector<1x32x32xf32> to vector<32x32xf32>
    %cst_99 = arith.constant dense<0.000000e+00> : vector<16x32xf32>
    %196 = tpu.matmul %193, %195, %cst_99 {dimension_numbers = #tpu.dot_dimension_numbers<[1], [0], [0], [1], [0, 0, 1, 1], [], []>} : vector<16x32xf32>, vector<32x32xf32>, vector<16x32xf32> -> vector<16x32xf32>
    %c0_100 = arith.constant 0 : index
    %c0_101 = arith.constant 0 : index
    %c0_102 = arith.constant 0 : index
    %197 = vector.load %arg22[%c0_100, %c0_101, %c0_102] : memref<1x1x32xf32, #tpu.memory_space<vmem>>, vector<1x1x32xf32>
    %198 = vector.shape_cast %197 : vector<1x1x32xf32> to vector<1x32xf32>
    %199 = vector.broadcast %198 : vector<1x32xf32> to vector<16x32xf32>
    %200 = arith.addf %196, %199 : vector<16x32xf32>
    %c0_103 = arith.constant 0 : index
    %c0_104 = arith.constant 0 : index
    %c0_105 = arith.constant 0 : index
    %201 = vector.load %arg23[%c0_103, %c0_104, %c0_105] : memref<1x32x32xf32, #tpu.memory_space<vmem>>, vector<1x32x32xf32>
    %202 = vector.shape_cast %201 : vector<1x32x32xf32> to vector<32x32xf32>
    %cst_106 = arith.constant dense<0.000000e+00> : vector<16x32xf32>
    %203 = tpu.matmul %193, %202, %cst_106 {dimension_numbers = #tpu.dot_dimension_numbers<[1], [0], [0], [1], [0, 0, 1, 1], [], []>} : vector<16x32xf32>, vector<32x32xf32>, vector<16x32xf32> -> vector<16x32xf32>
    %c0_107 = arith.constant 0 : index
    %c0_108 = arith.constant 0 : index
    %c0_109 = arith.constant 0 : index
    %204 = vector.load %arg24[%c0_107, %c0_108, %c0_109] : memref<1x1x32xf32, #tpu.memory_space<vmem>>, vector<1x1x32xf32>
    %205 = vector.shape_cast %204 : vector<1x1x32xf32> to vector<1x32xf32>
    %206 = vector.broadcast %205 : vector<1x32xf32> to vector<16x32xf32>
    %207 = arith.addf %203, %206 : vector<16x32xf32>
    %208 = arith.negf %207 : vector<16x32xf32>
    %209 = math.exp %208 : vector<16x32xf32>
    %cst_110 = arith.constant 1.000000e+00 : f32
    %210 = vector.broadcast %cst_110 : f32 to vector<16x32xf32>
    %211 = arith.addf %210, %209 : vector<16x32xf32>
    %212 = arith.divf %210, %211 : vector<16x32xf32>
    %213 = arith.mulf %200, %212 : vector<16x32xf32>
    %c0_111 = arith.constant 0 : index
    %c0_112 = arith.constant 0 : index
    %c0_113 = arith.constant 0 : index
    %214 = vector.load %arg25[%c0_111, %c0_112, %c0_113] : memref<1x224x32xf32, #tpu.memory_space<vmem>>, vector<1x224x32xf32>
    %215 = vector.shape_cast %214 : vector<1x224x32xf32> to vector<224x32xf32>
    %c0_114 = arith.constant 0 : index
    %c0_115 = arith.constant 0 : index
    %c0_116 = arith.constant 0 : index
    %216 = vector.load %arg26[%c0_114, %c0_115, %c0_116] : memref<1x1x32xf32, #tpu.memory_space<vmem>>, vector<1x1x32xf32>
    %217 = vector.shape_cast %216 : vector<1x1x32xf32> to vector<1x32xf32>
    %cst_117 = arith.constant 0.000000e+00 : f32
    %218 = vector.broadcast %cst_117 : f32 to vector<3x32xf32>
    %219 = tpu.concatenate %218, %213, %218 in 0 : vector<3x32xf32>, vector<16x32xf32>, vector<3x32xf32> -> vector<22x32xf32>
    %220 = vector.extract_strided_slice %219 {offsets = [0, 0], sizes = [16, 32], strides = [1, 1]} : vector<22x32xf32> to vector<16x32xf32>
    %221 = vector.extract_strided_slice %219 {offsets = [1, 0], sizes = [16, 32], strides = [1, 1]} : vector<22x32xf32> to vector<16x32xf32>
    %222 = vector.extract_strided_slice %219 {offsets = [2, 0], sizes = [16, 32], strides = [1, 1]} : vector<22x32xf32> to vector<16x32xf32>
    %223 = vector.extract_strided_slice %219 {offsets = [3, 0], sizes = [16, 32], strides = [1, 1]} : vector<22x32xf32> to vector<16x32xf32>
    %224 = vector.extract_strided_slice %219 {offsets = [4, 0], sizes = [16, 32], strides = [1, 1]} : vector<22x32xf32> to vector<16x32xf32>
    %225 = vector.extract_strided_slice %219 {offsets = [5, 0], sizes = [16, 32], strides = [1, 1]} : vector<22x32xf32> to vector<16x32xf32>
    %226 = vector.extract_strided_slice %219 {offsets = [6, 0], sizes = [16, 32], strides = [1, 1]} : vector<22x32xf32> to vector<16x32xf32>
    %227 = tpu.concatenate %220, %221, %222, %223, %224, %225, %226 in 1 : vector<16x32xf32>, vector<16x32xf32>, vector<16x32xf32>, vector<16x32xf32>, vector<16x32xf32>, vector<16x32xf32>, vector<16x32xf32> -> vector<16x224xf32>
    %cst_118 = arith.constant dense<0.000000e+00> : vector<16x32xf32>
    %228 = tpu.matmul %227, %215, %cst_118 {dimension_numbers = #tpu.dot_dimension_numbers<[1], [0], [0], [1], [0, 0, 1, 1], [], []>} : vector<16x224xf32>, vector<224x32xf32>, vector<16x32xf32> -> vector<16x32xf32>
    %229 = vector.broadcast %217 : vector<1x32xf32> to vector<16x32xf32>
    %230 = arith.addf %228, %229 : vector<16x32xf32>
    %c0_119 = arith.constant 0 : index
    %c0_120 = arith.constant 0 : index
    %c0_121 = arith.constant 0 : index
    %231 = vector.load %arg27[%c0_119, %c0_120, %c0_121] : memref<1x1x32xf32, #tpu.memory_space<vmem>>, vector<1x1x32xf32>
    %232 = vector.shape_cast %231 : vector<1x1x32xf32> to vector<1x32xf32>
    %233 = vector.broadcast %232 : vector<1x32xf32> to vector<16x32xf32>
    %234 = arith.mulf %230, %233 : vector<16x32xf32>
    %c0_122 = arith.constant 0 : index
    %c0_123 = arith.constant 0 : index
    %c0_124 = arith.constant 0 : index
    %235 = vector.load %arg28[%c0_122, %c0_123, %c0_124] : memref<1x1x32xf32, #tpu.memory_space<vmem>>, vector<1x1x32xf32>
    %236 = vector.shape_cast %235 : vector<1x1x32xf32> to vector<1x32xf32>
    %237 = vector.broadcast %236 : vector<1x32xf32> to vector<16x32xf32>
    %238 = arith.addf %234, %237 : vector<16x32xf32>
    %239 = arith.negf %238 : vector<16x32xf32>
    %240 = math.exp %239 : vector<16x32xf32>
    %cst_125 = arith.constant 1.000000e+00 : f32
    %241 = vector.broadcast %cst_125 : f32 to vector<16x32xf32>
    %242 = arith.addf %241, %240 : vector<16x32xf32>
    %243 = arith.divf %241, %242 : vector<16x32xf32>
    %244 = arith.mulf %238, %243 : vector<16x32xf32>
    %c0_126 = arith.constant 0 : index
    %c0_127 = arith.constant 0 : index
    %c0_128 = arith.constant 0 : index
    %245 = vector.load %arg29[%c0_126, %c0_127, %c0_128] : memref<1x32x32xf32, #tpu.memory_space<vmem>>, vector<1x32x32xf32>
    %246 = vector.shape_cast %245 : vector<1x32x32xf32> to vector<32x32xf32>
    %cst_129 = arith.constant dense<0.000000e+00> : vector<16x32xf32>
    %247 = tpu.matmul %244, %246, %cst_129 {dimension_numbers = #tpu.dot_dimension_numbers<[1], [0], [0], [1], [0, 0, 1, 1], [], []>} : vector<16x32xf32>, vector<32x32xf32>, vector<16x32xf32> -> vector<16x32xf32>
    %c0_130 = arith.constant 0 : index
    %c0_131 = arith.constant 0 : index
    %c0_132 = arith.constant 0 : index
    %248 = vector.load %arg30[%c0_130, %c0_131, %c0_132] : memref<1x1x32xf32, #tpu.memory_space<vmem>>, vector<1x1x32xf32>
    %249 = vector.shape_cast %248 : vector<1x1x32xf32> to vector<1x32xf32>
    %250 = vector.broadcast %249 : vector<1x32xf32> to vector<16x32xf32>
    %251 = arith.addf %247, %250 : vector<16x32xf32>
    %252 = arith.addf %169, %251 : vector<16x32xf32>
    %c0_133 = arith.constant 0 : index
    %c1 = arith.constant 1 : index
    %c0_134 = arith.constant 0 : index
    %c0_135 = arith.constant 0 : index
    %253 = vector.load %arg5[%c0_133, %c1, %c0_134, %c0_135] : memref<1x2x1x32xf32, #tpu.memory_space<vmem>>, vector<1x1x1x32xf32>
    %254 = vector.shape_cast %253 : vector<1x1x1x32xf32> to vector<1x32xf32>
    %c0_136 = arith.constant 0 : index
    %c1_137 = arith.constant 1 : index
    %c0_138 = arith.constant 0 : index
    %c0_139 = arith.constant 0 : index
    %255 = vector.load %arg6[%c0_136, %c1_137, %c0_138, %c0_139] : memref<1x2x1x32xf32, #tpu.memory_space<vmem>>, vector<1x1x1x32xf32>
    %256 = vector.shape_cast %255 : vector<1x1x1x32xf32> to vector<1x32xf32>
    %cst_140 = arith.constant dense<0.000000e+00> : vector<16xf32>
    %257 = vector.multi_reduction <add>, %252, %cst_140 [1] : vector<16x32xf32> to vector<16xf32>
    %258 = vector.shape_cast %257 : vector<16xf32> to vector<16x1xf32>
    %cst_141 = arith.constant 3.200000e+01 : f32
    %259 = vector.broadcast %cst_141 : f32 to vector<16x1xf32>
    %260 = arith.divf %258, %259 : vector<16x1xf32>
    %261 = vector.broadcast %260 : vector<16x1xf32> to vector<16x32xf32>
    %262 = arith.subf %252, %261 : vector<16x32xf32>
    %263 = arith.mulf %262, %262 : vector<16x32xf32>
    %cst_142 = arith.constant dense<0.000000e+00> : vector<16xf32>
    %264 = vector.multi_reduction <add>, %263, %cst_142 [1] : vector<16x32xf32> to vector<16xf32>
    %265 = vector.shape_cast %264 : vector<16xf32> to vector<16x1xf32>
    %cst_143 = arith.constant 3.200000e+01 : f32
    %266 = vector.broadcast %cst_143 : f32 to vector<16x1xf32>
    %267 = arith.divf %265, %266 : vector<16x1xf32>
    %cst_144 = arith.constant 9.99999974E-6 : f32
    %268 = vector.broadcast %cst_144 : f32 to vector<16x1xf32>
    %269 = arith.addf %267, %268 : vector<16x1xf32>
    %270 = math.rsqrt %269 : vector<16x1xf32>
    %271 = vector.broadcast %270 : vector<16x1xf32> to vector<16x32xf32>
    %272 = arith.mulf %262, %271 : vector<16x32xf32>
    %273 = vector.broadcast %254 : vector<1x32xf32> to vector<16x32xf32>
    %274 = arith.mulf %272, %273 : vector<16x32xf32>
    %275 = vector.broadcast %256 : vector<1x32xf32> to vector<16x32xf32>
    %276 = arith.addf %274, %275 : vector<16x32xf32>
    %c0_145 = arith.constant 0 : index
    %c1_146 = arith.constant 1 : index
    %c0_147 = arith.constant 0 : index
    %c0_148 = arith.constant 0 : index
    %277 = vector.load %arg7[%c0_145, %c1_146, %c0_147, %c0_148] : memref<1x2x96x64xf32, #tpu.memory_space<vmem>>, vector<1x1x96x64xf32>
    %278 = vector.shape_cast %277 : vector<1x1x96x64xf32> to vector<96x64xf32>
    %c0_149 = arith.constant 0 : index
    %c1_150 = arith.constant 1 : index
    %c0_151 = arith.constant 0 : index
    %c0_152 = arith.constant 0 : index
    %279 = vector.load %arg8[%c0_149, %c1_150, %c0_151, %c0_152] : memref<1x2x1x64xf32, #tpu.memory_space<vmem>>, vector<1x1x1x64xf32>
    %280 = vector.shape_cast %279 : vector<1x1x1x64xf32> to vector<1x64xf32>
    %cst_153 = arith.constant 0.000000e+00 : f32
    %281 = vector.broadcast %cst_153 : f32 to vector<1x32xf32>
    %282 = tpu.concatenate %281, %276, %281 in 0 : vector<1x32xf32>, vector<16x32xf32>, vector<1x32xf32> -> vector<18x32xf32>
    %283 = vector.extract_strided_slice %282 {offsets = [0, 0], sizes = [16, 32], strides = [1, 1]} : vector<18x32xf32> to vector<16x32xf32>
    %284 = vector.extract_strided_slice %282 {offsets = [1, 0], sizes = [16, 32], strides = [1, 1]} : vector<18x32xf32> to vector<16x32xf32>
    %285 = vector.extract_strided_slice %282 {offsets = [2, 0], sizes = [16, 32], strides = [1, 1]} : vector<18x32xf32> to vector<16x32xf32>
    %286 = tpu.concatenate %283, %284, %285 in 1 : vector<16x32xf32>, vector<16x32xf32>, vector<16x32xf32> -> vector<16x96xf32>
    %cst_154 = arith.constant dense<0.000000e+00> : vector<16x64xf32>
    %287 = tpu.matmul %286, %278, %cst_154 {dimension_numbers = #tpu.dot_dimension_numbers<[1], [0], [0], [1], [0, 0, 1, 1], [], []>} : vector<16x96xf32>, vector<96x64xf32>, vector<16x64xf32> -> vector<16x64xf32>
    %288 = vector.broadcast %280 : vector<1x64xf32> to vector<16x64xf32>
    %289 = arith.addf %287, %288 : vector<16x64xf32>
    %cst_155 = arith.constant 0.000000e+00 : f32
    %290 = vector.broadcast %cst_155 : f32 to vector<16x64xf32>
    %291 = arith.maximumf %289, %290 : vector<16x64xf32>
    %c0_156 = arith.constant 0 : index
    %c1_157 = arith.constant 1 : index
    %c0_158 = arith.constant 0 : index
    %c0_159 = arith.constant 0 : index
    %292 = vector.load %arg9[%c0_156, %c1_157, %c0_158, %c0_159] : memref<1x2x192x32xf32, #tpu.memory_space<vmem>>, vector<1x1x192x32xf32>
    %293 = vector.shape_cast %292 : vector<1x1x192x32xf32> to vector<192x32xf32>
    %c0_160 = arith.constant 0 : index
    %c1_161 = arith.constant 1 : index
    %c0_162 = arith.constant 0 : index
    %c0_163 = arith.constant 0 : index
    %294 = vector.load %arg10[%c0_160, %c1_161, %c0_162, %c0_163] : memref<1x2x1x32xf32, #tpu.memory_space<vmem>>, vector<1x1x1x32xf32>
    %295 = vector.shape_cast %294 : vector<1x1x1x32xf32> to vector<1x32xf32>
    %cst_164 = arith.constant 0.000000e+00 : f32
    %296 = vector.broadcast %cst_164 : f32 to vector<1x64xf32>
    %297 = tpu.concatenate %296, %291, %296 in 0 : vector<1x64xf32>, vector<16x64xf32>, vector<1x64xf32> -> vector<18x64xf32>
    %298 = vector.extract_strided_slice %297 {offsets = [0, 0], sizes = [16, 64], strides = [1, 1]} : vector<18x64xf32> to vector<16x64xf32>
    %299 = vector.extract_strided_slice %297 {offsets = [1, 0], sizes = [16, 64], strides = [1, 1]} : vector<18x64xf32> to vector<16x64xf32>
    %300 = vector.extract_strided_slice %297 {offsets = [2, 0], sizes = [16, 64], strides = [1, 1]} : vector<18x64xf32> to vector<16x64xf32>
    %301 = tpu.concatenate %298, %299, %300 in 1 : vector<16x64xf32>, vector<16x64xf32>, vector<16x64xf32> -> vector<16x192xf32>
    %cst_165 = arith.constant dense<0.000000e+00> : vector<16x32xf32>
    %302 = tpu.matmul %301, %293, %cst_165 {dimension_numbers = #tpu.dot_dimension_numbers<[1], [0], [0], [1], [0, 0, 1, 1], [], []>} : vector<16x192xf32>, vector<192x32xf32>, vector<16x32xf32> -> vector<16x32xf32>
    %303 = vector.broadcast %295 : vector<1x32xf32> to vector<16x32xf32>
    %304 = arith.addf %302, %303 : vector<16x32xf32>
    %cst_166 = arith.constant 5.000000e-01 : f32
    %305 = vector.broadcast %cst_166 : f32 to vector<16x32xf32>
    %306 = arith.mulf %305, %304 : vector<16x32xf32>
    %307 = arith.addf %252, %306 : vector<16x32xf32>
    %308 = vector.broadcast %6 : vector<16x1xf32> to vector<16x32xf32>
    %309 = arith.mulf %307, %308 : vector<16x32xf32>
    %c0_167 = arith.constant 0 : index
    %c0_168 = arith.constant 0 : index
    %c0_169 = arith.constant 0 : index
    %310 = vector.load %arg31[%c0_167, %c0_168, %c0_169] : memref<1x16x32xf32, #tpu.memory_space<vmem>>, vector<1x16x32xf32>
    %311 = vector.shape_cast %310 : vector<1x16x32xf32> to vector<16x32xf32>
    %312 = vector.shape_cast %309 : vector<16x32xf32> to vector<1x16x32xf32>
    tpu.vector_store %arg31[%c0_167, %c0_168, %c0_169], %312 {strides = array<i32>} : memref<1x16x32xf32, #tpu.memory_space<vmem>>, vector<1x16x32xf32>,
    return
  }
  func.func @transform_0(%arg0: i32, %arg1: i32) -> (i32, i32, i32) {
    %c0_i32 = arith.constant 0 : i32
    %c0_i32_0 = arith.constant 0 : i32
    %c0_i32_1 = arith.constant 0 : i32
    return %arg0, %c0_i32, %c0_i32_0 : i32, i32, i32
  }
  func.func @transform_1(%arg0: i32, %arg1: i32) -> (i32, i32, i32) {
    %c0_i32 = arith.constant 0 : i32
    %c0_i32_0 = arith.constant 0 : i32
    %c0_i32_1 = arith.constant 0 : i32
    return %arg0, %c0_i32, %c0_i32_0 : i32, i32, i32
  }
  func.func @transform_2(%arg0: i32, %arg1: i32) -> (i32, i32, i32, i32) {
    %c0_i32 = arith.constant 0 : i32
    %c0_i32_0 = arith.constant 0 : i32
    %c0_i32_1 = arith.constant 0 : i32
    %c0_i32_2 = arith.constant 0 : i32
    return %arg1, %c0_i32, %c0_i32_0, %c0_i32_1 : i32, i32, i32, i32
  }
  func.func @transform_3(%arg0: i32, %arg1: i32) -> (i32, i32, i32, i32) {
    %c0_i32 = arith.constant 0 : i32
    %c0_i32_0 = arith.constant 0 : i32
    %c0_i32_1 = arith.constant 0 : i32
    %c0_i32_2 = arith.constant 0 : i32
    return %arg1, %c0_i32, %c0_i32_0, %c0_i32_1 : i32, i32, i32, i32
  }
  func.func @transform_4(%arg0: i32, %arg1: i32) -> (i32, i32, i32, i32) {
    %c0_i32 = arith.constant 0 : i32
    %c0_i32_0 = arith.constant 0 : i32
    %c0_i32_1 = arith.constant 0 : i32
    %c0_i32_2 = arith.constant 0 : i32
    return %arg1, %c0_i32, %c0_i32_0, %c0_i32_1 : i32, i32, i32, i32
  }
  func.func @transform_5(%arg0: i32, %arg1: i32) -> (i32, i32, i32, i32) {
    %c0_i32 = arith.constant 0 : i32
    %c0_i32_0 = arith.constant 0 : i32
    %c0_i32_1 = arith.constant 0 : i32
    %c0_i32_2 = arith.constant 0 : i32
    return %arg1, %c0_i32, %c0_i32_0, %c0_i32_1 : i32, i32, i32, i32
  }
  func.func @transform_6(%arg0: i32, %arg1: i32) -> (i32, i32, i32, i32) {
    %c0_i32 = arith.constant 0 : i32
    %c0_i32_0 = arith.constant 0 : i32
    %c0_i32_1 = arith.constant 0 : i32
    %c0_i32_2 = arith.constant 0 : i32
    return %arg1, %c0_i32, %c0_i32_0, %c0_i32_1 : i32, i32, i32, i32
  }
  func.func @transform_7(%arg0: i32, %arg1: i32) -> (i32, i32, i32, i32) {
    %c0_i32 = arith.constant 0 : i32
    %c0_i32_0 = arith.constant 0 : i32
    %c0_i32_1 = arith.constant 0 : i32
    %c0_i32_2 = arith.constant 0 : i32
    return %arg1, %c0_i32, %c0_i32_0, %c0_i32_1 : i32, i32, i32, i32
  }
  func.func @transform_8(%arg0: i32, %arg1: i32) -> (i32, i32, i32, i32) {
    %c0_i32 = arith.constant 0 : i32
    %c0_i32_0 = arith.constant 0 : i32
    %c0_i32_1 = arith.constant 0 : i32
    %c0_i32_2 = arith.constant 0 : i32
    return %arg1, %c0_i32, %c0_i32_0, %c0_i32_1 : i32, i32, i32, i32
  }
  func.func @transform_9(%arg0: i32, %arg1: i32) -> (i32, i32, i32) {
    %c0_i32 = arith.constant 0 : i32
    %c0_i32_0 = arith.constant 0 : i32
    %c0_i32_1 = arith.constant 0 : i32
    return %arg1, %c0_i32, %c0_i32_0 : i32, i32, i32
  }
  func.func @transform_10(%arg0: i32, %arg1: i32) -> (i32, i32, i32) {
    %c0_i32 = arith.constant 0 : i32
    %c0_i32_0 = arith.constant 0 : i32
    %c0_i32_1 = arith.constant 0 : i32
    return %arg1, %c0_i32, %c0_i32_0 : i32, i32, i32
  }
  func.func @transform_11(%arg0: i32, %arg1: i32) -> (i32, i32, i32) {
    %c0_i32 = arith.constant 0 : i32
    %c0_i32_0 = arith.constant 0 : i32
    %c0_i32_1 = arith.constant 0 : i32
    return %arg1, %c0_i32, %c0_i32_0 : i32, i32, i32
  }
  func.func @transform_12(%arg0: i32, %arg1: i32) -> (i32, i32, i32) {
    %c0_i32 = arith.constant 0 : i32
    %c0_i32_0 = arith.constant 0 : i32
    %c0_i32_1 = arith.constant 0 : i32
    return %arg1, %c0_i32, %c0_i32_0 : i32, i32, i32
  }
  func.func @transform_13(%arg0: i32, %arg1: i32) -> (i32, i32, i32) {
    %c0_i32 = arith.constant 0 : i32
    %c0_i32_0 = arith.constant 0 : i32
    %c0_i32_1 = arith.constant 0 : i32
    return %arg1, %c0_i32, %c0_i32_0 : i32, i32, i32
  }
  func.func @transform_14(%arg0: i32, %arg1: i32) -> (i32, i32, i32) {
    %c0_i32 = arith.constant 0 : i32
    %c0_i32_0 = arith.constant 0 : i32
    %c0_i32_1 = arith.constant 0 : i32
    return %arg1, %c0_i32, %c0_i32_0 : i32, i32, i32
  }
  func.func @transform_15(%arg0: i32, %arg1: i32) -> (i32, i32, i32, i32) {
    %c0_i32 = arith.constant 0 : i32
    %c0_i32_0 = arith.constant 0 : i32
    %c0_i32_1 = arith.constant 0 : i32
    %c0_i32_2 = arith.constant 0 : i32
    return %arg1, %c0_i32, %c0_i32_0, %c0_i32_1 : i32, i32, i32, i32
  }
  func.func @transform_16(%arg0: i32, %arg1: i32) -> (i32, i32, i32, i32) {
    %c0_i32 = arith.constant 0 : i32
    %c0_i32_0 = arith.constant 0 : i32
    %c0_i32_1 = arith.constant 0 : i32
    %c0_i32_2 = arith.constant 0 : i32
    return %arg1, %c0_i32, %c0_i32_0, %c0_i32_1 : i32, i32, i32, i32
  }
  func.func @transform_17(%arg0: i32, %arg1: i32) -> (i32, i32, i32) {
    %c0_i32 = arith.constant 0 : i32
    %c0_i32_0 = arith.constant 0 : i32
    %c0_i32_1 = arith.constant 0 : i32
    return %arg1, %c0_i32, %c0_i32_0 : i32, i32, i32
  }
  func.func @transform_18(%arg0: i32, %arg1: i32) -> (i32, i32, i32) {
    %c0_i32 = arith.constant 0 : i32
    %c0_i32_0 = arith.constant 0 : i32
    %c0_i32_1 = arith.constant 0 : i32
    return %arg1, %c0_i32, %c0_i32_0 : i32, i32, i32
  }
  func.func @transform_19(%arg0: i32, %arg1: i32) -> (i32, i32, i32) {
    %c0_i32 = arith.constant 0 : i32
    %c0_i32_0 = arith.constant 0 : i32
    %c0_i32_1 = arith.constant 0 : i32
    return %arg1, %c0_i32, %c0_i32_0 : i32, i32, i32
  }
  func.func @transform_20(%arg0: i32, %arg1: i32) -> (i32, i32, i32) {
    %c0_i32 = arith.constant 0 : i32
    %c0_i32_0 = arith.constant 0 : i32
    %c0_i32_1 = arith.constant 0 : i32
    return %arg1, %c0_i32, %c0_i32_0 : i32, i32, i32
  }
  func.func @transform_21(%arg0: i32, %arg1: i32) -> (i32, i32, i32) {
    %c0_i32 = arith.constant 0 : i32
    %c0_i32_0 = arith.constant 0 : i32
    %c0_i32_1 = arith.constant 0 : i32
    return %arg1, %c0_i32, %c0_i32_0 : i32, i32, i32
  }
  func.func @transform_22(%arg0: i32, %arg1: i32) -> (i32, i32, i32) {
    %c0_i32 = arith.constant 0 : i32
    %c0_i32_0 = arith.constant 0 : i32
    %c0_i32_1 = arith.constant 0 : i32
    return %arg1, %c0_i32, %c0_i32_0 : i32, i32, i32
  }
  func.func @transform_23(%arg0: i32, %arg1: i32) -> (i32, i32, i32) {
    %c0_i32 = arith.constant 0 : i32
    %c0_i32_0 = arith.constant 0 : i32
    %c0_i32_1 = arith.constant 0 : i32
    return %arg1, %c0_i32, %c0_i32_0 : i32, i32, i32
  }
  func.func @transform_24(%arg0: i32, %arg1: i32) -> (i32, i32, i32) {
    %c0_i32 = arith.constant 0 : i32
    %c0_i32_0 = arith.constant 0 : i32
    %c0_i32_1 = arith.constant 0 : i32
    return %arg1, %c0_i32, %c0_i32_0 : i32, i32, i32
  }
  func.func @transform_25(%arg0: i32, %arg1: i32) -> (i32, i32, i32) {
    %c0_i32 = arith.constant 0 : i32
    %c0_i32_0 = arith.constant 0 : i32
    %c0_i32_1 = arith.constant 0 : i32
    return %arg1, %c0_i32, %c0_i32_0 : i32, i32, i32
  }
  func.func @transform_26(%arg0: i32, %arg1: i32) -> (i32, i32, i32) {
    %c0_i32 = arith.constant 0 : i32
    %c0_i32_0 = arith.constant 0 : i32
    %c0_i32_1 = arith.constant 0 : i32
    return %arg1, %c0_i32, %c0_i32_0 : i32, i32, i32
  }
  func.func @transform_27(%arg0: i32, %arg1: i32) -> (i32, i32, i32) {
    %c0_i32 = arith.constant 0 : i32
    %c0_i32_0 = arith.constant 0 : i32
    %c0_i32_1 = arith.constant 0 : i32
    return %arg1, %c0_i32, %c0_i32_0 : i32, i32, i32
  }
  func.func @transform_28(%arg0: i32, %arg1: i32) -> (i32, i32, i32) {
    %c0_i32 = arith.constant 0 : i32
    %c0_i32_0 = arith.constant 0 : i32
    %c0_i32_1 = arith.constant 0 : i32
    return %arg1, %c0_i32, %c0_i32_0 : i32, i32, i32
  }
  func.func @transform_29(%arg0: i32, %arg1: i32) -> (i32, i32, i32) {
    %c0_i32 = arith.constant 0 : i32
    %c0_i32_0 = arith.constant 0 : i32
    %c0_i32_1 = arith.constant 0 : i32
    return %arg0, %c0_i32, %c0_i32_0 : i32, i32, i32
  }
}

</mosaic_0001>

<bundles_post_ra>
// kernel: tpu_custom_call.1
= control target key start
LH: loop header
LB: loop body
LE: loop exit
PB: predicated region body
PF: predicated region fallthrough
CT: control target
= control target key end

     0   :  { %6 = vsyncpa [#allocation3], 0  ;;  %s164_s0 = inlined_call_operand.hbm [shape: f32[2,16,128], index: 0, kind: input, shape index: {}]   ;;  %s165_s1 = inlined_call_operand.hbm [shape: f32[2,16,128], index: 1, kind: output, shape index: {}]  }
   0x1   :  { %7 = vsyncpa [#allocation4], 0  ;;  %s118_s6 = smov [#allocation2]   ;;  %s70_s10 = scalar_lea.hbm %s164_s0, 512 }
   0x2   :  { %s13_s7 = sshll.u32 %s118_s6, 4  ;;  %p71_p0 = scmp.ne.s32.totalorder %s164_s0, %s70_s10  ;;  %s14_s7 = int_to_ptr.vmem [resolvable:$true] %s13_s7 }
   0x3   :  { %p74_p1 = scmp.lt.u32.totalorder %s70_s10, %s164_s0 }
   0x5   :  { %p76_p2 = pnand %p74_p1, %p71_p0 }
   0x7   :  { %79 = shalt.err (!%p76_p2)
}
   0x8   :  { %s80_s15 = scalar_lea.vmem %s14_s7, 512  ;;  %p85_p4 = scmp.lt.s32.totalorder %s14_s7, %s14_s7 }
   0x9   :  { %p81_p3 = scmp.ne.s32.totalorder %s14_s7, %s80_s15  ;;  %p86_p5 = scmp.lt.s32.totalorder %s80_s15, %s80_s15 }
   0xb   :  { %p87_p6 = por %p86_p5, %p85_p4 }
   0xd   :  { %p88_p7 = pnand %p87_p6, %p81_p3 }
   0xf   :  { %91 = shalt.err (!%p88_p7)
}
  0x10   :  { %s119_s16 = smov 128   ;;  %s120_s17 = smov 8  }
  0x11   :  { %19 = dma.hbm_to_vmem [thread:$0]  %s164_s0, 512, %s14_s7, [#allocation3], %s119_s16, %s119_s16, %s120_s17  }
  0x12   :  { %114 = dma.done.wait [#allocation3], 512  }
  0x13   :  { %115 = vsyncadd [#allocation3], 4294966784  ;;  %v24_v0 = vld [vmem:[#allocation2 + $0x8] sm:$0xff]  ;;  %v23_v1 = vld [vmem:[#allocation2] sm:$0xff]  ;;  %s121_s20 = smov 376   ;;  %s122_s21 = smov 368  }
  0x14   :  { %37 = vrot.lane.b32.xlu1 %v24_v0, %s121_s20  ;;  %29 = vrot.lane.b32.xlu0 %v23_v1, %s122_s21  ;;  %v26_v2 = vld [vmem:[#allocation2 + $0x18] sm:$0xff]  ;;  %v25_v3 = vld [vmem:[#allocation2 + $0x10] sm:$0xff]  ;;  %s123_s22 = smov [#allocation5]  }
  0x15   :  { %s52_s23 = sshll.u32 %s123_s22, 4  ;;  %s53_s23 = int_to_ptr.vmem [resolvable:$true] %s52_s23 }
  0x16   :  { %s92_s0 = scalar_lea.vmem %s53_s23, 512  ;;  %p97_p9 = scmp.lt.s32.totalorder %s53_s23, %s53_s23 }
  0x17   :  { %p93_p8 = scmp.ne.s32.totalorder %s53_s23, %s92_s0  ;;  %p98_p10 = scmp.lt.s32.totalorder %s92_s0, %s92_s0 }
  0x18   :  { %41 = vrot.lane.b32.xlu1 %v26_v2, %s121_s20  ;;  %33 = vrot.lane.b32.xlu0 %v25_v3, %s122_s21 }
  0x19   :  { %p99_p11 = por %p98_p10, %p97_p9 }
  0x1b   :  { %p100_p12 = pnand %p99_p11, %p93_p8 }
  0x86   :  { %v38_v4 = vpop.permute.xlu1 %37  ;;  %v30_v5 = vpop.permute.xlu0 %29 }
  0x87   :  { %44 = vst [vmem:[#allocation5 + $0x8] sm:$0xff] %v38_v4  ;;  %43 = vst [vmem:[#allocation5] sm:$0xff] %v30_v5 }
  0x8a   :  { %v42_v6 = vpop.permute.xlu1 %41  ;;  %v34_v7 = vpop.permute.xlu0 %33 }
  0x8b   :  { %46 = vst [vmem:[#allocation5 + $0x18] sm:$0xff] %v42_v6  ;;  %45 = vst [vmem:[#allocation5 + $0x10] sm:$0xff] %v34_v7 }
  0x8c   :  { %103 = shalt.err (!%p100_p12)
}
  0x8d   :  { %s104_s26 = scalar_lea.hbm %s165_s1, 512 }
  0x8e   :  { %p105_p13 = scmp.ne.s32.totalorder %s165_s1, %s104_s26  ;;  %p108_p0 = scmp.lt.u32.totalorder %s104_s26, %s165_s1 }
  0x90   :  { %p110_p1 = pnand %p108_p0, %p105_p13 }
  0x92   :  { %113 = shalt.err (!%p110_p1)
}
  0x93   :  { %58 = dma.vmem_to_hbm [thread:$0]  %s53_s23, 512, %s165_s1, [#allocation4], %s119_s16, %s119_s16, %s120_s17  }
  0x94   :  { %116 = dma.done.wait [#allocation4], 512  }
  0x95   :  { %117 = vsyncadd [#allocation4], 4294966784 }
  0x96   :  { %62 = vsyncpa [#allocation3], 1 }
  0x97   :  { %63 = vsyncpa [#allocation4], 1 }

// kernel: conformer_encoder.1
= control target key start
LH: loop header
LB: loop body
LE: loop exit
PB: predicated region body
PF: predicated region fallthrough
CT: control target
= control target key end

     0   :  { %s5725_s6 = smov 1   ;;  %s5726_s10 = smov 2   ;;  %s6872_s0 = inlined_call_operand.smem [shape: u32[30], index: -1, kind: input, shape index: {}] }
   0x1   :  { %s5787_s5 = sld [smem:[%s6872_s0]]   ;;  %s5727_s14 = smov 3  }
   0x2   :  { %s5792_s9 = sld [smem:[%s6872_s0 + %s5725_s6]]   ;;  %s5728_s18 = smov 4  }
   0x3   :  { %s5797_s13 = sld [smem:[%s6872_s0 + %s5726_s10]]   ;;  %s5729_s22 = smov 5  }
   0x4   :  { %s5802_s17 = sld [smem:[%s6872_s0 + %s5727_s14]]   ;;  %s5730_s26 = smov 6  }
   0x5   :  { %s5807_s21 = sld [smem:[%s6872_s0 + %s5728_s18]]   ;;  %s5731_s30 = smov 7  }
   0x6   :  { %s5812_s25 = sld [smem:[%s6872_s0 + %s5729_s22]]   ;;  %s5732_s4 = smov 8  }
   0x7   :  { %6904 = sst [smem:[#allocation5_spill]] %s5787_s5  ;;  %s5733_s10 = smov 9  }
   0x8   :  { %6905 = sst [smem:[#allocation6_spill]] %s5792_s9  ;;  %s5734_s15 = smov 10  }
   0x9   :  { %6906 = sst [smem:[#allocation7_spill]] %s5797_s13  ;;  %s5735_s20 = smov 11  }
   0xa   :  { %6907 = sst [smem:[#allocation8_spill]] %s5802_s17  ;;  %s5737_s1 = smov 13  }
   0xb   :  { %6908 = sst [smem:[#allocation9_spill]] %s5807_s21  ;;  %s5738_s7 = smov 14  }
   0xc   :  { %6909 = sst [smem:[#allocation10_spill]] %s5812_s25  ;;  %s5740_s22 = smov 16  }
   0xd   :  { %s5817_s29 = sld [smem:[%s6872_s0 + %s5730_s26]]   ;;  %s5736_s26 = smov 12  }
   0xe   :  { %s5822_s3 = sld [smem:[%s6872_s0 + %s5731_s30]]   ;;  %s5741_s28 = smov 17  }
   0xf   :  { %s5827_s8 = sld [smem:[%s6872_s0 + %s5732_s4]]  }
  0x10   :  { %s5832_s14 = sld [smem:[%s6872_s0 + %s5733_s10]]  }
  0x11   :  { %s5837_s19 = sld [smem:[%s6872_s0 + %s5734_s15]]   ;;  %s5739_s15 = smov 15  }
  0x12   :  { %s5842_s24 = sld [smem:[%s6872_s0 + %s5735_s20]]  }
  0x13   :  { %6910 = sst [smem:[#allocation11_spill]] %s5817_s29 }
  0x14   :  { %6911 = sst [smem:[#allocation12_spill]] %s5822_s3 }
  0x15   :  { %6912 = sst [smem:[#allocation13_spill]] %s5827_s8 }
  0x16   :  { %6913 = sst [smem:[#allocation14_spill]] %s5832_s14 }
  0x17   :  { %6914 = sst [smem:[#allocation15_spill]] %s5837_s19 }
  0x18   :  { %6915 = sst [smem:[#allocation16_spill]] %s5842_s24 }
  0x19   :  { %s5847_s30 = sld [smem:[%s6872_s0 + %s5736_s26]]  }
  0x1a   :  { %s5852_s6 = sld [smem:[%s6872_s0 + %s5737_s1]]  }
  0x1b   :  { %s5857_s12 = sld [smem:[%s6872_s0 + %s5738_s7]]   ;;  %s5742_s7 = smov 18  }
  0x1c   :  { %s5862_s20 = sld [smem:[%s6872_s0 + %s5739_s15]]   ;;  %s5743_s15 = smov 19  }
  0x1d   :  { %s5867_s27 = sld [smem:[%s6872_s0 + %s5740_s22]]   ;;  %s5744_s22 = smov 20  }
  0x1e   :  { %s5872_s4 = sld [smem:[%s6872_s0 + %s5741_s28]]   ;;  %s5745_s28 = smov 21  }
  0x1f   :  { %6916 = sst [smem:[#allocation17_spill]] %s5847_s30 }
  0x20   :  { %6917 = sst [smem:[#allocation18_spill]] %s5852_s6 }
  0x21   :  { %6918 = sst [smem:[#allocation19_spill]] %s5857_s12 }
  0x22   :  { %6919 = sst [smem:[#allocation20_spill]] %s5862_s20 }
  0x23   :  { %6920 = sst [smem:[#allocation21_spill]] %s5867_s27 }
  0x24   :  { %6921 = sst [smem:[#allocation22_spill]] %s5872_s4 }
  0x25   :  { %s5877_s12 = sld [smem:[%s6872_s0 + %s5742_s7]]   ;;  %s5746_s7 = smov 22  }
  0x26   :  { %s5882_s20 = sld [smem:[%s6872_s0 + %s5743_s15]]   ;;  %s5747_s15 = smov 23  }
  0x27   :  { %s5887_s27 = sld [smem:[%s6872_s0 + %s5744_s22]]   ;;  %s5748_s22 = smov 24  }
  0x28   :  { %s5892_s4 = sld [smem:[%s6872_s0 + %s5745_s28]]   ;;  %s5749_s28 = smov 25  }
  0x2b   :  { %6922 = sst [smem:[#allocation23_spill]] %s5877_s12 }
  0x2c   :  { %6923 = sst [smem:[#allocation24_spill]] %s5882_s20 }
  0x2d   :  { %6924 = sst [smem:[#allocation25_spill]] %s5887_s27 }
  0x2e   :  { %6925 = sst [smem:[#allocation26_spill]] %s5892_s4 }
  0x2f   :  { %s5897_s12 = sld [smem:[%s6872_s0 + %s5746_s7]]   ;;  %s5750_s7 = smov 26  }
  0x30   :  { %s5902_s20 = sld [smem:[%s6872_s0 + %s5747_s15]]   ;;  %s5751_s15 = smov 27  }
  0x31   :  { %s5907_s27 = sld [smem:[%s6872_s0 + %s5748_s22]]   ;;  %s5752_s22 = smov 28  }
  0x32   :  { %s5912_s4 = sld [smem:[%s6872_s0 + %s5749_s28]]   ;;  %s5753_s28 = smov 29  }
  0x35   :  { %6926 = sst [smem:[#allocation27_spill]] %s5897_s12 }
  0x36   :  { %6927 = sst [smem:[#allocation28_spill]] %s5902_s20 }
  0x37   :  { %6928 = sst [smem:[#allocation29_spill]] %s5907_s27 }
  0x38   :  { %6929 = sst [smem:[#allocation30_spill]] %s5912_s4 }
  0x39   :  { %s5917_s12 = sld [smem:[%s6872_s0 + %s5750_s7]]  }
  0x3a   :  { %s5922_s20 = sld [smem:[%s6872_s0 + %s5751_s15]]  }
  0x3b   :  { %s5927_s27 = sld [smem:[%s6872_s0 + %s5752_s22]]  }
  0x3c   :  { %s5932_s4 = sld [smem:[%s6872_s0 + %s5753_s28]]  }
  0x40   :  { %6930 = sst [smem:[#allocation31_spill]] %s5922_s20 }
  0x41   :  { %6931 = sst [smem:[#allocation32_spill]] %s5927_s27 }
  0x42   :  { %6932 = sst [smem:[#allocation33_spill]] %s5932_s4 }
  0x43   :  { %64 = vsyncpa [#allocation3], 0 }
  0x44   :  { %66 = vsyncpa [#allocation3 + $0x1], 0  ;;  %s5934_s7 = smov 0   ;;  %s5936_s10 = smov 0  }
  0x45   :  { %s5938_s11 = smov 0   ;;  %s5940_s15 = smov 0  }
  0x46   :  { %s5942_s16 = smov 0   ;;  %s5944_s18 = smov 0  }
  0x47   :  { %s5946_s22 = smov 0   ;;  %s5948_s23 = smov 0  }
  0x48 LB: > { %6933 = sst [smem:[#allocation34_spill]] %s5695_s7  ;;  %s4624_s0 = sadd.s32 4294967295, %s5723_s23   ;;  %s5723_s23 = sphi %s5948_s23, %s72_s23   ;;  %s5719_s22 = sphi %s5946_s22, %s7042_s22   ;;  %s5715_s18 = sphi %s5944_s18, %s7041_s18   ;;  %s5711_s16 = sphi %s5942_s16, %s7040_s16   ;;  %s5707_s15 = sphi %s5940_s15, %s7039_s15   ;;  %s5703_s11 = sphi %s5938_s11, %s7038_s11   ;;  %s5699_s10 = sphi %s5936_s10, %s7037_s10   ;;  %s5695_s7 = sphi %s5934_s7, %s7036_s7  }
  0x49   : > { %6934 = sst [smem:[#allocation35_spill]] %s5699_s10  ;;  %s4625_s26 = sadd.s32 4294967294, %s5723_s23  }
  0x4a   : > { %6935 = sst [smem:[#allocation36_spill]] %s5703_s11  ;;  %s81_s28 = sadd.s32 1, %s5715_s18 }
  0x4b   : > { %6936 = sst [smem:[#allocation37_spill]] %s5707_s15  ;;  %p82_p0 = scmp.ge.s32.totalorder %s81_s28, 2 }
  0x4c   : > { %6937 = sst [smem:[#allocation38_spill]] %s5711_s16  ;;  %s84_s1 = sadd.s32 1, %s5719_s22 }
  0x4d   : > { %6938 = sst [smem:[#allocation39_spill]] %s5715_s18  ;;  %p855_p1 = scmp.ne.s32.totalorder %s5703_s11, %s5699_s10 }
  0x4e   : > { %6939 = sst [smem:[#allocation40_spill]] %s5719_s22  ;;  %p856_p2 = scmp.eq.s32.totalorder %s4624_s0, 3 }
  0x4f   : > { %6940 = sst [smem:[#allocation41_spill]] %s5723_s23  ;;  %s7044_s28 = smov (%p82_p0, %s81_s28), 0 }
  0x50   : > { %6941 = sst [smem:[#allocation42_spill]] %s7044_s28  ;;  %s7046_s1 = smov (!%p82_p0, %s84_s1), %s5719_s22 }
  0x51   : > { %p5983_p3 = por %p856_p2, %p855_p1  ;;  %p861_p4 = scmp.ne.s32.totalorder %s5699_s10, %s5695_s7 }
  0x52   : > { %p86_p5 = scmp.ge.s32.totalorder %s7046_s1, 2  ;;  %p862_p6 = scmp.eq.s32.totalorder %s4625_s26, 3 }
  0x53   : > { %s6942_s2 = scalar_select %p5983_p3, 1, 0 }
  0x54   : > { %p4628_p7 = scmp.ge.s32.totalorder %s5723_s23, 1  ;;  %p1082_p8 = scmp.lt.s32.totalorder %s5723_s23, 5 }
  0x55   : > { %6943 = sst [smem:[#allocation43_spill]] %s6942_s2  ;;  %s7048_s1 = smov (%p86_p5, %s7046_s1), 0 }
  0x56   : > { %6944 = sst [smem:[#allocation44_spill]] %s7048_s1  ;;  %p5993_p9 = por %p862_p6, %p861_p4 }
  0x57   : > { %p1083_p10 = pnand %p4628_p7, %p1082_p8  ;;  %s842_s0 = ssub.s32 %s5719_s22, %s7048_s1 }
  0x58   : > { %s6945_s18 = scalar_select %p5993_p9, 1, 0 }
  0x59   : > { %s845_s28 = sadd.s32 1, %s5703_s11  ;;  %p843_p11 = scmp.eq.s32.totalorder %s842_s0, 0 }
  0x5a   : > { %6946 = sst [smem:[#allocation45_spill]] %s6945_s18  ;;  %1086 = sbr.rel (%p1083_p10) target bundleno = 5469 (0x155d), region = 136 }
  0x5b   : > { %s6001_s4 = scalar_select %p843_p11, %s5703_s11, %s845_s28  }
  0x5d   : > { %6947 = sst [smem:[#allocation46_spill]] %s6001_s4 }
  0x61   : > { %s6948_s5 = sld [smem:[#allocation5_spill]]  ;;  %s6949_s9 = sld [smem:[#allocation6_spill]] }
  0x62   : > { %s6950_s13 = sld [smem:[#allocation7_spill]]  ;;  %s6951_s17 = sld [smem:[#allocation8_spill]] }
  0x63   : > { %s6952_s21 = sld [smem:[#allocation9_spill]]  ;;  %s6953_s29 = sld [smem:[#allocation11_spill]] }
  0x64   : > { %s6877_s26 = sand.u32 1, %s5699_s10   ;;  %p1268_p12 = scmp.lt.s32.totalorder %s5711_s16, 1 }
  0x65   : > { %s6954_s25 = sld [smem:[#allocation10_spill]]  ;;  %s6007_s0 = sshll.u32 %s6877_s26, 4 }
  0x66   : > { %6955 = sst [smem:[#allocation47_spill]] %s6007_s0  ;;  %s6956_s8 = sld [smem:[#allocation13_spill]] }
  0x67   : > { %p1278_p13 = scmp.lt.s32.totalorder %s5707_s15, 1  ;;  %s6957_s3 = sld [smem:[#allocation12_spill]] }
  0x68   : > { %s1269_s28 = scalar_select %p1268_p12, %s5711_s16, 1 }
  0x69   : > { %s6012_s1 = scalar_select %p1278_p13, %s5707_s15, 1 }
  0x6a   : > { %s4797_s22 = sshll.u32 %s1269_s28, 4  ;;  %s6961_s24 = sld [smem:[#allocation16_spill]] }
  0x6b   : > { %s6015_s4 = scalar_lea.vmem %s6948_s5, %s4797_s22  ;;  %s6018_s26 = scalar_lea.vmem %s6949_s9, %s4797_s22 }
  0x6c   : > { %6960 = sst [smem:[#allocation48_spill]] %s6015_s4  ;;  %s4799_s11 = sshll.u32 %s6012_s1, 8 }
  0x6d   : > { %6962 = sst [smem:[#allocation49_spill]] %s6018_s26  ;;  %s6964_s6 = sld [smem:[#allocation18_spill]] }
  0x6e   : > { %s4636_s18 = sshll.u32 %s6012_s1, 1  ;;  %s6023_s23 = scalar_lea.vmem %s6950_s13, %s4799_s11 }
  0x6f   : > { %6966 = sst [smem:[#allocation50_spill]] %s6023_s23  ;;  %s6967_s2 = sld [smem:[#allocation20_spill]] }
  0x70   : > { %s6026_s10 = scalar_lea.vmem %s6951_s17, %s4636_s18  ;;  %s6969_s16 = sld [smem:[#allocation21_spill]] }
  0x71   : > { %6968 = sst [smem:[#allocation51_spill]] %s6026_s10  ;;  %s6029_s28 = scalar_lea.vmem %s6952_s21, %s4636_s18 }
  0x72   : > { %6970 = sst [smem:[#allocation52_spill]] %s6029_s28  ;;  %s6971_s5 = sld [smem:[#allocation22_spill]] }
  0x73   : > { %s5441_s4 = smul.u32 192, %s6012_s1  ;;  %s6972_s22 = sld [smem:[#allocation23_spill]] }
  0x74   : > { %s6033_s9 = scalar_lea.vmem %s6953_s29, %s4636_s18  ;;  %s6974_s26 = sld [smem:[#allocation24_spill]] }
  0x75   : > { %6973 = sst [smem:[#allocation53_spill]] %s6033_s9  ;;  %s5442_s15 = smul.u32 384, %s6012_s1 }
  0x76   : > { %s6037_s27 = scalar_lea.vmem %s6954_s25, %s5441_s4  ;;  %s6977_s11 = sld [smem:[#allocation26_spill]] }
  0x77   : > { %6976 = sst [smem:[#allocation54_spill]] %s6037_s27  ;;  %s6040_s13 = scalar_lea.vmem %s6956_s8, %s4636_s18 }
  0x78   : > { %6978 = sst [smem:[#allocation55_spill]] %s6040_s13  ;;  %s6043_s21 = scalar_lea.vmem %s6957_s3, %s5442_s15 }
  0x79   : > { %6980 = sst [smem:[#allocation56_spill]] %s6043_s21  ;;  %s4800_s9 = sshll.u32 %s6012_s1, 5 }
  0x7a   : > { %s6051_s20 = scalar_lea.vmem %s6961_s24, %s4800_s9  ;;  %s6984_s4 = sld [smem:[#allocation28_spill]] }
  0x7b   : > { %6983 = sst [smem:[#allocation57_spill]] %s6051_s20  ;;  %s6985_s8 = sld [smem:[#allocation31_spill]] }
  0x7c   : > { %s6056_s13 = scalar_lea.vmem %s6964_s6, %s4800_s9  ;;  %s6988_s21 = sld [smem:[#allocation47_spill]] }
  0x7d   : > { %6986 = sst [smem:[#allocation58_spill]] %s6056_s13  ;;  %s6061_s23 = scalar_lea.vmem %s6967_s2, %s4636_s18 }
  0x7e   : > { %6989 = sst [smem:[#allocation47_spill]] %s6061_s23  ;;  %s6064_s14 = scalar_lea.vmem %s6969_s16, %s4636_s18 }
  0x7f   : > { %s1341_s10 = scalar_lea.vmem %s6971_s5, %s6012_s1  ;;  %s1344_s19 = scalar_lea.vmem %s6972_s22, %s6012_s1 }
  0x80   : > { %s6071_s27 = scalar_lea.vmem %s6974_s26, %s4800_s9  ;;  %s6076_s20 = scalar_lea.vmem %s6977_s11, %s4800_s9 }
  0x81   : > { %s5443_s30 = smul.u32 224, %s6012_s1  ;;  %s6091_s2 = scalar_lea.vmem %s6985_s8, %s4800_s9 }
  0x82   : > { %s6096_s16 = scalar_lea.vmem [#allocation2], %s6988_s21  ;;  %s6990_s18 = sld [smem:[#allocation37_spill]] }
  0x83   : > { %s6088_s7 = scalar_lea.vmem %s6984_s4, %s5443_s30 }
  0x88   : > { %p4655_p0 = scmp.ne.s32.totalorder %s6990_s18, 0 }
  0x89   : > { %s6991_s5 = sld [smem:[#allocation48_spill]] (!%p4655_p0)  ;;  %vm1389_vm0 = vcmask (!%p4655_p0), 261120  }
  0x8a   : > { %1386 = sbr.rel (%p4655_p0) target bundleno = 145 (0x91), region = 140 }
  0x8f   : > { %v1387_v0 = vld [vmem:[%s6991_s5] sm:$0xff] (!%p4655_p0)  ;;  %v1388_v1 = vld [vmem:[%s6991_s5 + $0x8] sm:$0xff] (!%p4655_p0) }
  0x90   : > { %1390 = vst.msk [vmem:[%s6096_s16] sm:$0xff] (!%p4655_p0), %vm1389_vm0, %v1387_v0  ;;  %1391 = vst.msk [vmem:[%s6096_s16 + $0x8] sm:$0xff] (!%p4655_p0), %vm1389_vm0, %v1388_v1 }
  0x91 PF: > { %vm1400_vm1 = vcmask 261120   ;;  %s6992_s9 = sld [smem:[#allocation54_spill]]  ;;  %s6993_s17 = sld [smem:[#allocation51_spill]]  ;;  %vm1459_vm2 = vcmask 1040384   ;;  %vm1470_vm3 = vcmask 1046528   ;;  %vm1482_vm4 = vcmask 1045504  }
  0x92   : > { %s6994_s21 = sld [smem:[#allocation52_spill]]  ;;  %s6902_s29 = smov 32   ;;  %vm1496_vm5 = vcmask 523264   ;;  %vm1505_vm6 = vcmask 785408   ;;  %vm1969_vm7 = vcmask 130048   ;;  %vm2324_vm11 = vcmask 1041408  }
  0x93   : > { %s6900_s8 = smov 64   ;;  %s6995_s30 = sld [smem:[#allocation56_spill]]  ;;  %vm6230_vm8 = vmpackc.low %vm1969_vm7, %vm1969_vm7  ;;  %vm2330_vm12 = vcmask 1043456   ;;  %vm2327_vm13 = vcmask 1042432   ;;  %vm2333_vm14 = vcmask 1044480  }
  0x94   : > { %s6996_s26 = sld [smem:[#allocation53_spill]]  ;;  %s6997_s0 = sld [smem:[#allocation55_spill]] }
  0x95   : > { %s6998_s28 = sld [smem:[#allocation57_spill]]  ;;  %s6999_s22 = sld [smem:[#allocation14_spill]] }
  0x96   : > { %s7000_s11 = sld [smem:[#allocation15_spill]]  ;;  %s7001_s4 = sld [smem:[#allocation50_spill]] }
  0x97   : > { %v6104_v2 = vld [vmem:[%s6096_s16] sm:$0xff]  ;;  %v6107_v3 = vld [vmem:[%s6096_s16 + $0x8] sm:$0xff]  ;;  %v1446_v18 = vld [vmem:[%s6992_s9 + $0x10] sm:$0xff]  ;;  %s7006_s5 = sld [smem:[#allocation17_spill]]  ;;  %s5765_s23 = smov 3  }
  0x98   : > { %v1401_v4 = vsel %vm1400_vm1, %v6104_v2, 0.0  ;;  %v1404_v5 = vsel %vm1400_vm1, %v6107_v3, 0.0  ;;  %v1444_v16 = vld [vmem:[%s6992_s9] sm:$0xff]  ;;  %v1445_v17 = vld [vmem:[%s6992_s9 + $0x8] sm:$0xff]  ;;  %v1447_v20 = vld [vmem:[%s6992_s9 + $0x18] sm:$0xff]  ;;  %s5766_s3 = smov 4  }
  0x99   : > { %1402 = vadd.xlane.f32.xlu0 %v1401_v4  ;;  %v5123_v19 = vpack.c.bf16 %v1445_v17, %v1444_v16  ;;  %v5127_v21 = vpack.c.bf16 %v1447_v20, %v1446_v18  ;;  %v1448_v22 = vld [vmem:[%s6992_s9 + $0x20] sm:$0xff]  ;;  %v1449_v23 = vld [vmem:[%s6992_s9 + $0x28] sm:$0xff]  ;;  %v1450_v25 = vld [vmem:[%s6992_s9 + $0x30] sm:$0xff]  ;;  %s5767_s13 = smov 12   ;;  %s5768_s6 = smov 13  }
  0x9a   : > { %v5131_v24 = vpack.c.bf16 %v1449_v23, %v1448_v22  ;;  %v1451_v26 = vld [vmem:[%s6992_s9 + $0x38] sm:$0xff]  ;;  %v4656_v35 = vld [vmem:[%s6993_s17] ss:$0 sm:$0xff]  ;;  %v1453_v39 = vld [vmem:[%s6992_s9 + $0x48] sm:$0xff]  ;;  %s5771_s24 = smov 6   ;;  %s5772_s25 = smov 7  }
  0x9b   : > { %5124 = vmatprep.subr.bf16.mxu0 %v5123_v19  ;;  %v5135_v27 = vpack.c.bf16 %v1451_v26, %v1450_v25  ;;  %v4657_v37 = vld [vmem:[%s6994_s21] ss:$0 sm:$0xff]  ;;  %v1454_v45 = vld [vmem:[%s6992_s9 + $0x50] sm:$0xff]  ;;  %v1455_v46 = vld [vmem:[%s6992_s9 + $0x58] sm:$0xff]  ;;  %s7002_s15 = scalar_lea.vmem %s6999_s22, %s6012_s1  ;;  %s7008_s22 = sld [smem:[#allocation47_spill]] }
  0x9c   : > { %5126 = vmatpush3.bf16.msra.mxu0 %v5123_v19  ;;  %v1452_v38 = vld [vmem:[%s6992_s9 + $0x40] sm:$0xff]  ;;  %v5143_v49 = vpack.c.bf16 %v1455_v46, %v1454_v45  ;;  %v1592_v16 = vld [vmem:[%s6995_s30 + $0x18] sm:$0xff]  ;;  %v1594_v19 = vld [vmem:[%s6995_s30 + $0x28] sm:$0xff]  ;;  %s7003_s18 = scalar_lea.vmem %s7000_s11, %s6012_s1  ;;  %s5758_s11 = smov 5  }
  0x9d   : > { %1405 = vadd.xlane.f32.xlu0 %v1404_v5  ;;  %5128 = vmatprep.subr.bf16.mxu0 %v5127_v21  ;;  %v5139_v41 = vpack.c.bf16 %v1453_v39, %v1452_v38  ;;  %v1593_v18 = vld [vmem:[%s6995_s30 + $0x20] sm:$0xff]  ;;  %v1596_v22 = vld [vmem:[%s6995_s30 + $0x38] sm:$0xff]  ;;  %v1598_v25 = vld [vmem:[%s6995_s30 + $0x48] sm:$0xff] }
  0x9e   : > { %v5154_v20 = vpack.c.bf16 %v1594_v19, %v1593_v18  ;;  %v1607_v39 = vld [vmem:[%s6995_s30 + $0x90] sm:$0xff]  ;;  %v1612_v46 = vld [vmem:[%s6995_s30 + $0xb8] sm:$0xff] }
  0x9f   : > { %v1611_v45 = vld [vmem:[%s6995_s30 + $0xb0] sm:$0xff] }
  0xa0   : > { %5130 = vmatpush3.bf16.msra.mxu0 %v5127_v21  ;;  %v1595_v21 = vld [vmem:[%s6995_s30 + $0x30] sm:$0xff] }
  0xa1   : > { %5132 = vmatprep.subr.bf16.mxu0 %v5131_v24  ;;  %v5157_v23 = vpack.c.bf16 %v1596_v22, %v1595_v21 }
  0xa4   : > { %5134 = vmatpush3.bf16.msra.mxu0 %v5131_v24  ;;  %v1597_v24 = vld [vmem:[%s6995_s30 + $0x40] sm:$0xff] }
  0xa5   : > { %5136 = vmatprep.subr.bf16.mxu0 %v5135_v27  ;;  %v5160_v26 = vpack.c.bf16 %v1598_v25, %v1597_v24 }
  0xa8   : > { %5138 = vmatpush3.bf16.msra.mxu0 %v5135_v27  ;;  %v1599_v27 = vld [vmem:[%s6995_s30 + $0x50] sm:$0xff] }
  0xa9   : > { %5140 = vmatprep.subr.bf16.mxu0 %v5139_v41 }
  0xac   : > { %5142 = vmatpush3.bf16.msra.mxu0 %v5139_v41 }
  0xad   : > { %5144 = vmatprep.subr.bf16.mxu0 %v5143_v49 }
  0xb0   : > { %5146 = vmatpush3.bf16.msra.mxu0 %v5143_v49 }
 0x126   : > { %v1403_v6 = vpop.xlane.xlu0 %1402 }
 0x127   : > { %v1408_v7 = vmul.f32 0.03125, %v1403_v6 }
 0x129   : > { %v1410_v8 = vsub.f32 %v6104_v2, %v1408_v7 }
 0x12a   : > { %v1406_v9 = vpop.xlane.xlu0 %1405 }
 0x12b   : > { %v1409_v10 = vmul.f32 0.03125, %v1406_v9  ;;  %v1412_v11 = vmul.f32 %v1410_v8, %v1410_v8 }
 0x12d   : > { %v1411_v12 = vsub.f32 %v6107_v3, %v1409_v10  ;;  %v1414_v13 = vsel %vm1400_vm1, %v1412_v11, 0.0  ;;  %v1589_v11 = vld [vmem:[%s6995_s30] sm:$0xff] }
 0x12e   : > { %1415 = vadd.xlane.f32.xlu1 %v1414_v13  ;;  %v1591_v13 = vld [vmem:[%s6995_s30 + $0x10] sm:$0xff] }
 0x12f   : > { %v1413_v14 = vmul.f32 %v1411_v12, %v1411_v12  ;;  %v5151_v17 = vpack.c.bf16 %v1592_v16, %v1591_v13 }
 0x131   : > { %v1417_v15 = vsel %vm1400_vm1, %v1413_v14, 0.0  ;;  %v5756_v14 = vmov 0.0|0.0  }
 0x132   : > { %1418 = vadd.xlane.f32.xlu1 %v1417_v15  ;;  %5147 = vmatprep.subr.bf16.mxu1 %v5756_v14 }
 0x1bb   : > { %v1416_v28 = vpop.xlane.xlu1 %1415 }
 0x1bc   : > { %v1420_v29 = vmul.f32 0.03125, %v1416_v28  ;;  %v1600_v28 = vld [vmem:[%s6995_s30 + $0x58] sm:$0xff] }
 0x1be   : > { %v1422_v30 = vadd.f32 1e-05, %v1420_v29  ;;  %v5163_v29 = vpack.c.bf16 %v1600_v28, %v1599_v27 }
 0x1bf   : > { %v1419_v31 = vpop.xlane.xlu1 %1418 }
 0x1c0   : > { %5581 = vrsqrt.f32 %v1422_v30  ;;  %v1421_v32 = vmul.f32 0.03125, %v1419_v31  ;;  %v1601_v30 = vld [vmem:[%s6995_s30 + $0x60] sm:$0xff]  ;;  %v1602_v31 = vld [vmem:[%s6995_s30 + $0x68] sm:$0xff] }
 0x1c2   : > { %v1423_v33 = vadd.f32 1e-05, %v1421_v32  ;;  %v5166_v32 = vpack.c.bf16 %v1602_v31, %v1601_v30 }
 0x1c4   : > { %5583 = vrsqrt.f32 %v1423_v33  ;;  %v1603_v33 = vld [vmem:[%s6995_s30 + $0x70] sm:$0xff] }
 0x1ca   : > { %v5582_v34 = vpop.eup %5581 }
 0x1cb   : > { %v1426_v36 = vmul.f32 %v5582_v34, %v1410_v8  ;;  %v1604_v34 = vld [vmem:[%s6995_s30 + $0x78] sm:$0xff] }
 0x1cd   : > { %v1434_v40 = vmul.f32 %v4656_v35, %v1426_v36  ;;  %v1605_v36 = vld [vmem:[%s6995_s30 + $0x80] sm:$0xff] }
 0x1ce   : > { %v5584_v42 = vpop.eup %5583 }
 0x1cf   : > { %v1427_v43 = vmul.f32 %v5584_v42, %v1411_v12  ;;  %v1442_v44 = vadd.f32 %v4657_v37, %v1434_v40  ;;  %v1590_v12 = vld [vmem:[%s6995_s30 + $0x8] sm:$0xff]  ;;  %v1608_v40 = vld [vmem:[%s6995_s30 + $0x98] sm:$0xff]  ;;  %v1609_v42 = vld [vmem:[%s6995_s30 + $0xa0] sm:$0xff] }
 0x1d0   : > { %v5148_v15 = vpack.c.bf16 %v1590_v12, %v1589_v11  ;;  %v5175_v41 = vpack.c.bf16 %v1608_v40, %v1607_v39  ;;  %v4661_v12 = vld [vmem:[%s6997_s0] ss:$0 sm:$0xff] }
 0x1d1   : > { %v1435_v47 = vmul.f32 %v4656_v35, %v1427_v43  ;;  %v1460_v48 = vrot.slane %v1442_v44, 7  ;;  %v5169_v35 = vpack.c.bf16 %v1604_v34, %v1603_v33  ;;  %v1610_v43 = vld [vmem:[%s6995_s30 + $0xa8] sm:$0xff]  ;;  %v1777_v34 = vld [vmem:[%s6998_s28] sm:$0xff] }
 0x1d2   : > { %5149 = vmatpush1.bf16.msra.mxu1 %v5148_v15  ;;  %v5178_v44 = vpack.c.bf16 %v1610_v43, %v1609_v42 }
 0x1d3   : > { %v1443_v50 = vadd.f32 %v4657_v37, %v1435_v47  ;;  %v1466_v52 = vsel %vm1459_vm2, 0.0, %v1460_v48  ;;  %5150 = vmatprep.subr.bf16.mxu1 %v5756_v14  ;;  %v1606_v37 = vld [vmem:[%s6995_s30 + $0x88] sm:$0xff]  ;;  %v5181_v47 = vpack.c.bf16 %v1612_v46, %v1611_v45 }
 0x1d4   : > { %v1471_v57 = vrot.slane %v1466_v52, 1  ;;  %v1483_v61 = vrot.slane %v1466_v52, 2  ;;  %v5172_v38 = vpack.c.bf16 %v1606_v37, %v1605_v36  ;;  %v1779_v37 = vld [vmem:[%s6998_s28 + $0x10] sm:$0xff] }
 0x1d5   : > { %v1461_v51 = vrot.slane %v1443_v50, 7 }
 0x1d6   : > { %5152 = vmatpush1.bf16.msra.mxu1 %v5151_v17 }
 0x1d7   : > { %v1462_v53 = vsel %vm1459_vm2, %v1460_v48, %v1461_v51  ;;  %v1467_v54 = vsel %vm1459_vm2, %v1461_v51, 0.0  ;;  %5153 = vmatprep.subr.bf16.mxu1 %v5756_v14  ;;  %v4658_v48 = vld [vmem:[%s6996_s26] ss:$0 sm:$0xff] }
 0x1d8   : > { %v1472_v55 = vrot.slane %v1462_v53, 1  ;;  %v1474_v56 = vrot.slane %v1467_v54, 1  ;;  %v1484_v60 = vrot.slane %v1462_v53, 2  ;;  %v1486_v63 = vrot.slane %v1467_v54, 2 }
 0x1da   : > { %v1475_v58 = vsel %vm1470_vm3, %v1472_v55, %v1474_v56  ;;  %v1473_v59 = vsel %vm1470_vm3, %v1471_v57, %v1472_v55  ;;  %v1485_v62 = vsel %vm1482_vm4, %v1483_v61, %v1484_v60  ;;  %v1487_v0 = vsel %vm1482_vm4, %v1484_v60, %v1486_v63  ;;  %5155 = vmatpush1.bf16.msra.mxu1 %v5154_v20 }
 0x1db   : > { %1478 = vrot.lane.b32.xlu1 %v1475_v58, %s6902_s29  ;;  %1476 = vrot.lane.b32.xlu0 %v1473_v59, %s6902_s29  ;;  %s5770_s29 = smov 15  }
 0x1dc   : > { %5156 = vmatprep.subr.bf16.mxu1 %v5756_v14 }
 0x1de   : > { %5158 = vmatpush1.bf16.msra.mxu1 %v5157_v23 }
 0x1df   : > { %1488 = vrot.lane.b32.xlu1 %v1485_v62, %s6900_s8  ;;  %5159 = vmatprep.subr.bf16.mxu1 %v5756_v14 }
 0x1e2   : > { %5161 = vmatpush1.bf16.msra.mxu1 %v5160_v26 }
 0x1e3   : > { %1490 = vrot.lane.b32.xlu1 %v1487_v0, %s6900_s8  ;;  %5162 = vmatprep.subr.bf16.mxu1 %v5756_v14 }
 0x1e6   : > { %5164 = vmatpush1.bf16.msra.mxu1 %v5163_v29 }
 0x1e7   : > { %5165 = vmatprep.subr.bf16.mxu1 %v5756_v14 }
 0x1ea   : > { %5167 = vmatpush1.bf16.msra.mxu1 %v5166_v32 }
 0x1eb   : > { %5168 = vmatprep.subr.bf16.mxu1 %v5756_v14 }
 0x1ee   : > { %5170 = vmatpush1.bf16.msra.mxu1 %v5169_v35  ;;  %v1778_v35 = vld [vmem:[%s6998_s28 + $0x8] sm:$0xff] }
 0x1ef   : > { %5171 = vmatprep.subr.bf16.mxu1 %v5756_v14  ;;  %v5183_v36 = vpack.c.bf16 %v1778_v35, %v1777_v34  ;;  %v1923_v34 = vld [vmem:[%s7001_s4 + $0xb0] sm:$0xff]  ;;  %v1924_v35 = vld [vmem:[%s7001_s4 + $0xb8] sm:$0xff] }
 0x1f1   : > { %5184 = vmatprep.subr.bf16.mxu0 %v5183_v36 }
 0x1f2   : > { %5173 = vmatpush1.bf16.msra.mxu1 %v5172_v38  ;;  %v1780_v38 = vld [vmem:[%s6998_s28 + $0x18] sm:$0xff]  ;;  %s7007_s28 = scalar_lea.vmem %s7006_s5, %s6012_s1  ;;  %s5761_s5 = smov 11  }
 0x1f3   : > { %5174 = vmatprep.subr.bf16.mxu1 %v5756_v14  ;;  %v5187_v39 = vpack.c.bf16 %v1780_v38, %v1779_v37  ;;  %v1925_v37 = vld [vmem:[%s7001_s4 + $0xc0] sm:$0xff]  ;;  %v1926_v38 = vld [vmem:[%s7001_s4 + $0xc8] sm:$0xff] }
 0x1f6   : > { %5176 = vmatpush1.bf16.msra.mxu1 %v5175_v41 }
 0x1f7   : > { %5177 = vmatprep.subr.bf16.mxu1 %v5756_v14 }
 0x1fa   : > { %5179 = vmatpush1.bf16.msra.mxu1 %v5178_v44 }
 0x1fb   : > { %5180 = vmatprep.subr.bf16.mxu1 %v5756_v14 }
 0x1fe   : > { %5182 = vmatpush1.bf16.msra.mxu1 %v5181_v47  ;;  %v4664_v47 = vld [vmem:[%s7002_s15] ss:$0 sm:$0xff]  ;;  %s5760_s15 = smov 10  }
 0x24d   : > { %v1479_v1 = vpop.permute.xlu1 %1478  ;;  %v1477_v4 = vpop.permute.xlu0 %1476 }
 0x24e   : > { %v1494_v5 = vsel %vm1400_vm1, %v1466_v52, %v1477_v4  ;;  %v1495_v8 = vsel %vm1400_vm1, %v1462_v53, %v1479_v1 }
 0x251   : > { %v1489_v6 = vpop.permute.xlu1 %1488 }
 0x252   : > { %v1497_v7 = vsel %vm1496_vm5, %v1494_v5, %v1489_v6 }
 0x253   : > { %4940 = vmatprep.mubr.msk.f32.mxu0 %vm1505_vm6, %v1497_v7 }
 0x255   : > { %v1491_v9 = vpop.permute.xlu1 %1490 }
 0x256   : > { %v1498_v10 = vsel %vm1496_vm5, %v1495_v8, %v1491_v9 }
 0x257   : > { %4941 = vmatmul.mubr.msk.f32.vlgmr.msra.gmra.mrb[0].mxu0 %vm1505_vm6, %v1498_v10 }
 0x258   : > { %5186 = vmatpush3.bf16.msra.mxu0 %v5183_v36  ;;  %v5257_v36 = vpack.c.bf16 %v1924_v35, %v1923_v34 }
 0x259   : > { %5188 = vmatprep.subr.bf16.mxu0 %v5187_v39 }
 0x25c   : > { %5190 = vmatpush3.bf16.msra.mxu0 %v5187_v39  ;;  %v5263_v39 = vpack.c.bf16 %v1926_v38, %v1925_v37 }
 0x32a   : > { %v4942_v49 = vpop.f32.mrb[0].mxu0 }
 0x32b   : > { %v1584_v50 = vadd.f32 %v4942_v49, %v4658_v48  ;;  %v1578_v51 = vpop.f32.mrb[1].mxu0  ;;  %v4665_v49 = vld [vmem:[%s7003_s18] ss:$0 sm:$0xff]  ;;  %s7009_s18 = sld [smem:[#allocation49_spill]] }
 0x32c   : > { %v1579_v52 = vadd.f32 %v4658_v48, %v1578_v51 }
 0x32d   : > { %v1588_v53 = vmax.f32 %v1584_v50, 0.0 }
 0x32e   : > { %v1587_v54 = vmax.f32 %v1579_v52, 0.0 }
 0x32f   : > { %v1617_v55 = vrot.slane %v1588_v53, 7 }
 0x330   : > { %v1616_v56 = vrot.slane %v1587_v54, 7 }
 0x331   : > { %v1623_v57 = vsel %vm1459_vm2, %v1617_v55, 0.0 }
 0x332   : > { %v1629_v58 = vrot.slane %v1623_v57, 1  ;;  %v1640_v59 = vrot.slane %v1623_v57, 2  ;;  %v1618_v60 = vsel %vm1459_vm2, %v1616_v56, %v1617_v55  ;;  %v1622_v61 = vsel %vm1459_vm2, 0.0, %v1616_v56  ;;  %v1901_v56 = vld [vmem:[%s7001_s4] sm:$0xff]  ;;  %v1902_v57 = vld [vmem:[%s7001_s4 + $0x8] sm:$0xff] }
 0x333   : > { %v1626_v62 = vrot.slane %v1622_v61, 1  ;;  %v1637_v63 = vrot.slane %v1622_v61, 2  ;;  %v1638_v0 = vrot.slane %v1618_v60, 2  ;;  %v1627_v1 = vrot.slane %v1618_v60, 1 }
 0x335   : > { %v1639_v4 = vsel %vm1482_vm4, %v1637_v63, %v1638_v0  ;;  %v1630_v5 = vsel %vm1470_vm3, %v1627_v1, %v1629_v58  ;;  %v1628_v6 = vsel %vm1470_vm3, %v1626_v62, %v1627_v1  ;;  %v1641_v7 = vsel %vm1482_vm4, %v1638_v0, %v1640_v59  ;;  %v1903_v58 = vld [vmem:[%s7001_s4 + $0x10] sm:$0xff]  ;;  %v1917_v63 = vld [vmem:[%s7001_s4 + $0x80] sm:$0xff]  ;;  %v1918_v0 = vld [vmem:[%s7001_s4 + $0x88] sm:$0xff] }
 0x336   : > { %4662 = vmatprep.mubr.msk.f32.mxu1 %vm1496_vm5, %v1639_v4  ;;  %1633 = vrot.lane.b32.xlu1 %v1630_v5, %s6900_s8  ;;  %v5191_v59 = vpack.c.bf16 %v1902_v57, %v1901_v56  ;;  %v1905_v1 = vld [vmem:[%s7001_s4 + $0x20] sm:$0xff]  ;;  %v1906_v4 = vld [vmem:[%s7001_s4 + $0x28] sm:$0xff]  ;;  %v5239_v5 = vpack.c.bf16 %v1918_v0, %v1917_v63 }
 0x337   : > { %1631 = vrot.lane.b32.xlu0 %v1628_v6, %s6900_s8  ;;  %v5203_v6 = vpack.c.bf16 %v1906_v4, %v1905_v1  ;;  %v4672_v56 = vld [vmem:[%s6064_s14 + $0x1] ss:$0 sm:$0xff]  ;;  %s5769_s8 = smov 14  }
 0x338   : > { %5193 = vmatprep.subr.msk.bf16.mxu0 %vm6230_vm8, %v5191_v59  ;;  %5241 = vmatprep.subr.msk.bf16.mxu1 %vm6230_vm8, %v5239_v5  ;;  %v4670_v4 = vld [vmem:[%s7008_s22 + $0x1] ss:$0 sm:$0xff] }
 0x3a8   : > { %v1634_v10 = vpop.permute.xlu1 %1633 }
 0x3a9   : > { %v1632_v8 = vpop.permute.xlu0 %1631  ;;  %v1643_v11 = vsel %vm1496_vm5, %v1618_v60, %v1634_v10  ;;  %v1909_v10 = vld [vmem:[%s7001_s4 + $0x40] sm:$0xff] }
 0x3aa   : > { %v1642_v9 = vsel %vm1496_vm5, %v1622_v61, %v1632_v8  ;;  %v1904_v61 = vld [vmem:[%s7001_s4 + $0x18] sm:$0xff] }
 0x3ab   : > { %1719 = vmatmul.mubr.f32.vlgmr.msra.gmra.mrb[0].mxu1 %v1642_v9  ;;  %v5197_v62 = vpack.c.bf16 %v1904_v61, %v1903_v58  ;;  %v1908_v8 = vld [vmem:[%s7001_s4 + $0x38] sm:$0xff] }
 0x3ac   : > { %4663 = vmatprep.mubr.msk.f32.mxu1 %vm1496_vm5, %v1641_v7  ;;  %5244 = vmatpush3.bf16.xpose.msk.msra.mxu1 %vm6230_vm8, %v5239_v5  ;;  %v1907_v7 = vld [vmem:[%s7001_s4 + $0x30] sm:$0xff] }
 0x3ad   : > { %v5209_v9 = vpack.c.bf16 %v1908_v8, %v1907_v7 }
 0x3af   : > { %1724 = vmatmul.mubr.f32.gmra.mrb[2].mxu1 %v1643_v11  ;;  %v1910_v11 = vld [vmem:[%s7001_s4 + $0x48] sm:$0xff] }
 0x47e   : > { %v1720_v13 = vpop.f32.mrb[0].mxu1 }
 0x47f   : > { %v1721_v15 = vadd.f32 %v4661_v12, %v1720_v13  ;;  %v1722_v16 = vpop.f32.mrb[1].mxu1  ;;  %v1911_v13 = vld [vmem:[%s7001_s4 + $0x50] sm:$0xff] }
 0x481   : > { %v1729_v17 = vmul.f32 0.5, %v1721_v15  ;;  %v1912_v15 = vld [vmem:[%s7001_s4 + $0x58] sm:$0xff] }
 0x482   : > { %v1725_v18 = vpop.f32.mrb[2].mxu1  ;;  %v5221_v16 = vpack.c.bf16 %v1912_v15, %v1911_v13 }
 0x483   : > { %v6200_v19 = vadd.f32 %v1729_v17, %v6104_v2  ;;  %v1726_v20 = vadd.f32 %v4661_v12, %v1725_v18  ;;  %v1727_v21 = vpop.f32.mrb[3].mxu1  ;;  %v5215_v12 = vpack.c.bf16 %v1910_v11, %v1909_v10  ;;  %v1913_v17 = vld [vmem:[%s7001_s4 + $0x60] sm:$0xff]  ;;  %v1914_v18 = vld [vmem:[%s7001_s4 + $0x68] sm:$0xff] }
 0x484   : > { %v1915_v21 = vld [vmem:[%s7001_s4 + $0x70] sm:$0xff] }
 0x485   : > { %v1730_v22 = vmul.f32 0.5, %v1726_v20  ;;  %v1735_v23 = vsel %vm1400_vm1, %v6200_v19, 0.0  ;;  %v5227_v20 = vpack.c.bf16 %v1914_v18, %v1913_v17 }
 0x486   : > { %1736 = vadd.xlane.f32.xlu0 %v1735_v23 }
 0x487   : > { %v6205_v24 = vadd.f32 %v1730_v22, %v6107_v3  ;;  %v1916_v22 = vld [vmem:[%s7001_s4 + $0x78] sm:$0xff] }
 0x488   : > { %v5233_v23 = vpack.c.bf16 %v1916_v22, %v1915_v21  ;;  %v5764_v21 = vmov 0  }
 0x489   : > { %v1738_v25 = vsel %vm1400_vm1, %v6205_v24, 0.0  ;;  %5569 = vset.pattern.permute.xlu1 %v5764_v21 }
 0x48a   : > { %1739 = vadd.xlane.f32.xlu1 %v1738_v25  ;;  %v4666_v25 = vld [vmem:[%s7007_s28] ss:$0 sm:$0xff]  ;;  %s5762_s28 = smov 1  }
 0x513   : > { %v1737_v26 = vpop.xlane.xlu0 %1736 }
 0x514   : > { %v1741_v27 = vmul.f32 0.03125, %v1737_v26 }
 0x516   : > { %v1743_v2 = vsub.f32 %v6200_v19, %v1741_v27 }
 0x517   : > { %v1740_v28 = vpop.xlane.xlu1 %1739 }
 0x518   : > { %v1742_v29 = vmul.f32 0.03125, %v1740_v28  ;;  %v1745_v30 = vmul.f32 %v1743_v2, %v1743_v2 }
 0x51a   : > { %v1744_v31 = vsub.f32 %v6205_v24, %v1742_v29  ;;  %v1747_v32 = vsel %vm1400_vm1, %v1745_v30, 0.0  ;;  %v1919_v29 = vld [vmem:[%s7001_s4 + $0x90] sm:$0xff]  ;;  %v1920_v30 = vld [vmem:[%s7001_s4 + $0x98] sm:$0xff] }
 0x51b   : > { %1748 = vadd.xlane.f32.xlu0 %v1747_v32  ;;  %v1921_v32 = vld [vmem:[%s7001_s4 + $0xa0] sm:$0xff] }
 0x51c   : > { %v1746_v3 = vmul.f32 %v1744_v31, %v1744_v31 }
 0x51e   : > { %v1750_v33 = vsel %vm1400_vm1, %v1746_v3, 0.0  ;;  %v1922_v3 = vld [vmem:[%s7001_s4 + $0xa8] sm:$0xff] }
 0x51f   : > { %1751 = vadd.xlane.f32.xlu0 %v1750_v33  ;;  %v5251_v33 = vpack.c.bf16 %v1922_v3, %v1921_v32 }
 0x5a8   : > { %v1749_v40 = vpop.xlane.xlu0 %1748 }
 0x5a9   : > { %v1753_v41 = vmul.f32 0.03125, %v1749_v40  ;;  %v1927_v40 = vld [vmem:[%s7001_s4 + $0xd0] sm:$0xff] }
 0x5ab   : > { %v1755_v42 = vadd.f32 1e-05, %v1753_v41  ;;  %v1928_v41 = vld [vmem:[%s7001_s4 + $0xd8] sm:$0xff] }
 0x5ac   : > { %v1752_v43 = vpop.xlane.xlu0 %1751 }
 0x5ad   : > { %5585 = vrsqrt.f32 %v1755_v42  ;;  %v1754_v44 = vmul.f32 0.03125, %v1752_v43  ;;  %v5269_v42 = vpack.c.bf16 %v1928_v41, %v1927_v40  ;;  %v1929_v43 = vld [vmem:[%s7001_s4 + $0xe0] sm:$0xff] }
 0x5af   : > { %v1756_v45 = vadd.f32 1e-05, %v1754_v44  ;;  %v1930_v44 = vld [vmem:[%s7001_s4 + $0xe8] sm:$0xff] }
 0x5b1   : > { %5587 = vrsqrt.f32 %v1756_v45  ;;  %v5275_v45 = vpack.c.bf16 %v1930_v44, %v1929_v43 }
 0x5b7   : > { %v5586_v46 = vpop.eup %5585 }
 0x5b8   : > { %v1759_v48 = vmul.f32 %v5586_v46, %v1743_v2  ;;  %v1931_v46 = vld [vmem:[%s7001_s4 + $0xf0] sm:$0xff] }
 0x5ba   : > { %v1767_v50 = vmul.f32 %v4664_v47, %v1759_v48 }
 0x5bb   : > { %v5588_v51 = vpop.eup %5587 }
 0x5bc   : > { %v1760_v52 = vmul.f32 %v5588_v51, %v1744_v31  ;;  %v1775_v53 = vadd.f32 %v4665_v49, %v1767_v50  ;;  %v5245_v31 = vpack.c.bf16 %v1920_v30, %v1919_v29 }
 0x5be   : > { %v1768_v54 = vmul.f32 %v4664_v47, %v1760_v52  ;;  %4951 = vmatprep.mubr.msk.f32.mxu0 %vm1400_vm1, %v1775_v53  ;;  %5247 = vmatprep.subr.msk.bf16.mxu1 %vm6230_vm8, %v5245_v31  ;;  %v1932_v47 = vld [vmem:[%s7001_s4 + $0xf8] sm:$0xff]  ;;  %v4669_v52 = vld [vmem:[%s7008_s22] ss:$0 sm:$0xff]  ;;  %s5759_s4 = smov 9   ;;  %s5763_s22 = smov 2  }
 0x5bf   : > { %5250 = vmatpush3.bf16.xpose.msk.msra.mxu1 %vm6230_vm8, %v5245_v31  ;;  %v5281_v48 = vpack.c.bf16 %v1932_v47, %v1931_v46 }
 0x5c0   : > { %v1776_v55 = vadd.f32 %v4665_v49, %v1768_v54  ;;  %5253 = vmatprep.subr.msk.bf16.mxu1 %vm6230_vm8, %v5251_v33  ;;  %v4671_v49 = vld [vmem:[%s6064_s14] ss:$0 sm:$0xff]  ;;  %s5757_s14 = smov 8  }
 0x5c2   : > { %4952 = vmatmul.mubr.msk.f32.vlgmr.msra.gmra.mrb[2].mxu0 %vm1400_vm1, %v1776_v55 }
 0x5c3   : > { %5196 = vmatpush3.bf16.xpose.msk.msra.mxu0 %vm6230_vm8, %v5191_v59 }
 0x5c4   : > { %5199 = vmatprep.subr.msk.bf16.mxu0 %vm6230_vm8, %v5197_v62 }
 0x5c7   : > { %5256 = vmatpush3.bf16.xpose.msk.msra.mxu1 %vm6230_vm8, %v5251_v33 }
 0x5c8   : > { %5259 = vmatprep.subr.msk.bf16.mxu1 %vm6230_vm8, %v5257_v36 }
 0x5cb   : > { %5202 = vmatpush3.bf16.xpose.msk.msra.mxu0 %vm6230_vm8, %v5197_v62 }
 0x5cc   : > { %5205 = vmatprep.subr.msk.bf16.mxu0 %vm6230_vm8, %v5203_v6 }
 0x5cf   : > { %5262 = vmatpush3.bf16.xpose.msk.msra.mxu1 %vm6230_vm8, %v5257_v36 }
 0x5d0   : > { %5265 = vmatprep.subr.msk.bf16.mxu1 %vm6230_vm8, %v5263_v39 }
 0x5d3   : > { %5208 = vmatpush3.bf16.xpose.msk.msra.mxu0 %vm6230_vm8, %v5203_v6 }
 0x5d4   : > { %5211 = vmatprep.subr.msk.bf16.mxu0 %vm6230_vm8, %v5209_v9 }
 0x5d7   : > { %5268 = vmatpush3.bf16.xpose.msk.msra.mxu1 %vm6230_vm8, %v5263_v39 }
 0x5d8   : > { %5271 = vmatprep.subr.msk.bf16.mxu1 %vm6230_vm8, %v5269_v42 }
 0x5db   : > { %5214 = vmatpush3.bf16.xpose.msk.msra.mxu0 %vm6230_vm8, %v5209_v9 }
 0x5dc   : > { %5217 = vmatprep.subr.msk.bf16.mxu0 %vm6230_vm8, %v5215_v12 }
 0x5df   : > { %5274 = vmatpush3.bf16.xpose.msk.msra.mxu1 %vm6230_vm8, %v5269_v42 }
 0x5e0   : > { %5277 = vmatprep.subr.msk.bf16.mxu1 %vm6230_vm8, %v5275_v45 }
 0x5e3   : > { %5220 = vmatpush3.bf16.xpose.msk.msra.mxu0 %vm6230_vm8, %v5215_v12 }
 0x5e4   : > { %5223 = vmatprep.subr.msk.bf16.mxu0 %vm6230_vm8, %v5221_v16 }
 0x5e7   : > { %5280 = vmatpush3.bf16.xpose.msk.msra.mxu1 %vm6230_vm8, %v5275_v45 }
 0x5e8   : > { %5283 = vmatprep.subr.msk.bf16.mxu1 %vm6230_vm8, %v5281_v48 }
 0x5eb   : > { %5226 = vmatpush3.bf16.xpose.msk.msra.mxu0 %vm6230_vm8, %v5221_v16 }
 0x5ec   : > { %5229 = vmatprep.subr.msk.bf16.mxu0 %vm6230_vm8, %v5227_v20 }
 0x5ef   : > { %5286 = vmatpush3.bf16.xpose.msk.msra.mxu1 %vm6230_vm8, %v5281_v48 }
 0x5f3   : > { %5232 = vmatpush3.bf16.xpose.msk.msra.mxu0 %vm6230_vm8, %v5227_v20 }
 0x5f4   : > { %5235 = vmatprep.subr.msk.bf16.mxu0 %vm6230_vm8, %v5233_v23 }
 0x5fb   : > { %5238 = vmatpush3.bf16.xpose.msk.msra.mxu0 %vm6230_vm8, %v5233_v23 }
 0x695   : > { %v4953_v26 = vpop.f32.mrb[2].mxu0 }
 0x696   : > { %v1860_v27 = vpop.f32.mrb[3].mxu0  ;;  %v1866_v28 = vadd.f32 %v4953_v26, %v4666_v25 }
 0x697   : > { %v1861_v2 = vadd.f32 %v4666_v25, %v1860_v27  ;;  %v6376_v25 = vld [vmem:[%s7009_s18 + $0x8] sm:$0xff] }
 0x698   : > { %vm1397_vm9 = vcmp.eq.f32.partialorder %v6376_v25, 0.0 }
 0x699   : > { %1869 = vxpose.xlu0.b32.start [1/2] (short) (narrow) %v1861_v2, 96  ;;  %v2549_v2 = vsel %vm1397_vm9, 1, %v5764_v21 }
 0x69d   : > { %1870 = vxpose.xlu0.b32.end [2/2] (short) (narrow) %v1866_v28, 96  ;;  %v6401_v28 = vld [vmem:[%s7009_s18] sm:$0xff] }
 0x69e   : > { %vm1396_vm10 = vcmp.eq.f32.partialorder %v6401_v28, 0.0 }
 0x69f   : > { %v2548_v29 = vsel %vm1396_vm10, 1, %v5764_v21 }
 0x6c6   : > { %5570 = vset.pattern.permute.xlu0 %v5764_v21 }
 0x719   : > { %v1885_v50 = vpop.trf.xlu0 }
 0x71a   : > { %v1965_v51 = vadd.f32 %v4671_v49, %v1885_v50  ;;  %v1947_v55 = vadd.f32 %v4669_v52, %v1885_v50 }
 0x71c   : > { %4986 = vmatprep.mubr.msk.f32.mxu0 %vm1969_vm7, %v1965_v51 }
 0x71d   : > { %v1886_v53 = vpop.trf.xlu0 }
 0x71e   : > { %v1966_v54 = vadd.f32 %v4671_v49, %v1886_v53  ;;  %v1948_v7 = vadd.f32 %v4669_v52, %v1886_v53 }
 0x720   : > { %4987 = vmatmul.mubr.msk.f32.vlgmr.msra.gmra.mrb[4].mxu0 %vm1969_vm7, %v1966_v54 }
 0x721   : > { %5028 = vmatprep.mubr.msk.f32.mxu0 %vm1969_vm7, %v1947_v55  ;;  %v1887_v57 = vpop.trf.xlu0 }
 0x722   : > { %v1967_v58 = vadd.f32 %v4672_v56, %v1887_v57  ;;  %v1949_v5 = vadd.f32 %v4670_v4, %v1887_v57 }
 0x724   : > { %5021 = vmatprep.mubr.msk.f32.mxu1 %vm1969_vm7, %v1967_v58 }
 0x725   : > { %v1888_v59 = vpop.trf.xlu0 }
 0x726   : > { %v1968_v61 = vadd.f32 %v4672_v56, %v1888_v59  ;;  %v1950_v9 = vadd.f32 %v4670_v4, %v1888_v59 }
 0x728   : > { %5022 = vmatmul.mubr.msk.f32.vlgmr.msra.gmra.mrb[4].mxu1 %vm1969_vm7, %v1968_v61 }
 0x729   : > { %v1889_v62 = vpop.trf.xlu0 }
 0x72d   : > { %v1890_v63 = vpop.trf.xlu0 }
 0x72e   : > { %v5287_v0 = vpack.c.bf16 %v1890_v63, %v1889_v62 }
 0x730   : > { %5289 = vmatprep.subr.msk.bf16.mxu0 %vm6230_vm8, %v5287_v0 }
 0x731   : > { %5292 = vmatpush3.bf16.xpose.msk.msra.mxu0 %vm6230_vm8, %v5287_v0  ;;  %v1891_v1 = vpop.trf.xlu0 }
 0x735   : > { %v1892_v6 = vpop.trf.xlu0 }
 0x736   : > { %v5293_v8 = vpack.c.bf16 %v1892_v6, %v1891_v1 }
 0x738   : > { %5029 = vmatmul.mubr.msk.f32.vlgmr.msra.gmra.mrb[6].mxu0 %vm1969_vm7, %v1948_v7  ;;  %5295 = vmatprep.subr.msk.bf16.mxu0 %vm6230_vm8, %v5293_v8 }
 0x739   : > { %5298 = vmatpush3.bf16.xpose.msk.msra.mxu0 %vm6230_vm8, %v5293_v8  ;;  %5035 = vmatprep.mubr.msk.f32.mxu0 %vm1969_vm7, %v1949_v5  ;;  %v1893_v10 = vpop.trf.xlu0 }
 0x73d   : > { %v1894_v11 = vpop.trf.xlu0 }
 0x73e   : > { %v5299_v12 = vpack.c.bf16 %v1894_v11, %v1893_v10 }
 0x740   : > { %5036 = vmatmul.mubr.msk.f32.vlgmr.msra.gmra.mrb[8].mxu0 %vm1969_vm7, %v1950_v9  ;;  %5300 = vmatprep.subr.bf16.mxu0 %v5299_v12 }
 0x741   : > { %v1895_v13 = vpop.trf.xlu0  ;;  %5302 = vmatpush3.bf16.msra.mxu0 %v5299_v12 }
 0x745   : > { %v1896_v15 = vpop.trf.xlu0 }
 0x746   : > { %v6350_v16 = vpack.c.bf16 %v1896_v15, %v1895_v13 }
 0x748   : > { %5304 = vmatprep.subr.bf16.mxu0 %v6350_v16 }
 0x7f3   : > { %v4988_v17 = vpop.f32.mrb[4].mxu0 }
 0x7f4   : > { %2274 = vrot.lane.b32.xlu1 %v4988_v17, %s5757_s14  ;;  %v6354_v60 = vpop.f32.mrb[5].mxu0 }
 0x7f5   : > { %2254 = vrot.lane.b32.xlu0 %v6354_v60, %s5758_s11 }
 0x7f8   : > { %2280 = vrot.lane.b32.xlu1 %v4988_v17, %s5759_s4 }
 0x7f9   : > { %2554 = vperm.xlu0 %5570, %v2549_v2  }
 0x7fb   : > { %v5023_v18 = vpop.f32.mrb[4].mxu1 }
 0x7fc   : > { %2286 = vrot.lane.b32.xlu1 %v4988_v17, %s5760_s15  ;;  %v6360_v20 = vpop.f32.mrb[5].mxu1 }
 0x800   : > { %2292 = vrot.lane.b32.xlu1 %v4988_v17, %s5761_s5 }
 0x804   : > { %2230 = vrot.lane.b32.xlu1 %v6354_v60, %s5762_s28 }
 0x808   : > { %2236 = vrot.lane.b32.xlu1 %v6354_v60, %s5763_s22 }
 0x80b   : > { %v6367_v22 = vpop.f32.mrb[6].mxu0 }
 0x80c   : > { %2242 = vrot.lane.b32.xlu1 %v6354_v60, %s5765_s23  ;;  %v6371_v23 = vpop.f32.mrb[7].mxu0 }
 0x810   : > { %2248 = vrot.lane.b32.xlu1 %v6354_v60, %s5766_s3 }
 0x813   : > { %v6378_v26 = vpop.f32.mrb[8].mxu0 }
 0x814   : > { %2298 = vrot.lane.b32.xlu1 %v4988_v17, %s5767_s13  ;;  %v6381_v27 = vpop.f32.mrb[9].mxu0 }
 0x818   : > { %2304 = vrot.lane.b32.xlu1 %v4988_v17, %s5768_s6 }
 0x81c   : > { %2310 = vrot.lane.b32.xlu1 %v4988_v17, %s5769_s8 }
 0x820   : > { %2316 = vrot.lane.b32.xlu1 %v4988_v17, %s5770_s29 }
 0x824   : > { %2260 = vrot.lane.b32.xlu1 %v6354_v60, %s5771_s24 }
 0x828   : > { %2266 = vrot.lane.b32.xlu1 %v6354_v60, %s5772_s25 }
 0x82c   : > { %2276 = vrot.lane.b32.xlu1 %v5023_v18, %s5757_s14 }
 0x830   : > { %2282 = vrot.lane.b32.xlu1 %v5023_v18, %s5759_s4  ;;  %s7022_s4 = sld [smem:[#allocation30_spill]] }
 0x834   : > { %2288 = vrot.lane.b32.xlu1 %v5023_v18, %s5760_s15 }
 0x836   : > { %s7024_s18 = scalar_lea.vmem %s7022_s4, %s6012_s1 }
 0x838   : > { %2294 = vrot.lane.b32.xlu1 %v5023_v18, %s5761_s5  ;;  %s7025_s5 = scalar_lea.vmem %s5917_s12, %s6012_s1 }
 0x83c   : > { %2300 = vrot.lane.b32.xlu1 %v5023_v18, %s5767_s13  ;;  %s5773_s13 = smov 112  }
 0x840   : > { %2306 = vrot.lane.b32.xlu1 %v5023_v18, %s5768_s6 }
 0x844   : > { %2312 = vrot.lane.b32.xlu1 %v5023_v18, %s5769_s8  ;;  %s7020_s8 = smov 64  }
 0x848   : > { %2232 = vrot.lane.b32.xlu1 %v6360_v20, %s5762_s28 }
 0x84c   : > { %2238 = vrot.lane.b32.xlu1 %v6360_v20, %s5763_s22 }
 0x850   : > { %2244 = vrot.lane.b32.xlu1 %v6360_v20, %s5765_s23 }
 0x854   : > { %2250 = vrot.lane.b32.xlu1 %v6360_v20, %s5766_s3  ;;  %s7011_s3 = sld [smem:[#allocation19_spill]] }
 0x858   : > { %2256 = vrot.lane.b32.xlu1 %v6360_v20, %s5758_s11  ;;  %s7021_s11 = sld [smem:[#allocation29_spill]] }
 0x85c   : > { %2262 = vrot.lane.b32.xlu1 %v6360_v20, %s5771_s24  ;;  %s7012_s24 = scalar_lea.vmem %s7011_s3, %s6012_s1  ;;  %s5777_s3 = smov [#allocation2]  }
 0x85e   : > { %s7023_s15 = scalar_lea.vmem %s7021_s11, %s6012_s1 }
 0x860   : > { %2268 = vrot.lane.b32.xlu1 %v6360_v20, %s5772_s25  ;;  %s7010_s25 = sld [smem:[#allocation58_spill]] }
 0x864   : > { %2318 = vrot.lane.b32.xlu1 %v5023_v18, %s5770_s29  ;;  %s7019_s29 = smov 32  }
 0x866   : > { %v2275_v30 = vpop.permute.xlu1 %2274 }
 0x867   : > { %v2255_v46 = vpop.permute.xlu0 %2254 }
 0x868   : > { %2551 = vperm.xlu1 %5569, %v2548_v29  }
 0x86a   : > { %v2281_v31 = vpop.permute.xlu1 %2280 }
 0x86b   : > { %v2340_v47 = vsel %vm1459_vm2, %v2275_v30, %v2281_v31 }
 0x86e   : > { %v2287_v32 = vpop.permute.xlu1 %2286 }
 0x86f   : > { %v2342_v49 = vsel %vm2324_vm11, %v2340_v47, %v2287_v32 }
 0x872   : > { %v2293_v3 = vpop.permute.xlu1 %2292 }
 0x873   : > { %v2344_v52 = vsel %vm2327_vm13, %v2342_v49, %v2293_v3 }
 0x876   : > { %v2231_v33 = vpop.permute.xlu1 %2230 }
 0x877   : > { %v2322_v41 = vsel %vm1459_vm2, %v6354_v60, %v2231_v33 }
 0x87a   : > { %v2237_v34 = vpop.permute.xlu1 %2236 }
 0x87b   : > { %v2325_v42 = vsel %vm2324_vm11, %v2322_v41, %v2237_v34 }
 0x87e   : > { %v2243_v35 = vpop.permute.xlu1 %2242 }
 0x87f   : > { %v2328_v43 = vsel %vm2327_vm13, %v2325_v42, %v2243_v35 }
 0x882   : > { %v2249_v36 = vpop.permute.xlu1 %2248 }
 0x883   : > { %v2331_v44 = vsel %vm2330_vm12, %v2328_v43, %v2249_v36 }
 0x884   : > { %v2334_v48 = vsel %vm2333_vm14, %v2331_v44, %v2255_v46 }
 0x886   : > { %v2299_v37 = vpop.permute.xlu1 %2298 }
 0x887   : > { %v2346_v54 = vsel %vm2330_vm12, %v2344_v52, %v2299_v37  ;;  %v2555_v37 = vpop.permute.xlu0 %2554 }
 0x888   : > { %vm2557_vm0 = vcmp.eq.s32.totalorder %v2555_v37, 1 }
 0x88a   : > { %v2305_v38 = vpop.permute.xlu1 %2304 }
 0x88b   : > { %v2348_v55 = vsel %vm2333_vm14, %v2346_v54, %v2305_v38 }
 0x88e   : > { %v2311_v39 = vpop.permute.xlu1 %2310 }
 0x88f   : > { %v2350_v56 = vsel %vm1482_vm4, %v2348_v55, %v2311_v39 }
 0x892   : > { %v2317_v40 = vpop.permute.xlu1 %2316 }
 0x893   : > { %v2352_v58 = vsel %vm1470_vm3, %v2350_v56, %v2317_v40 }
 0x896   : > { %v2261_v45 = vpop.permute.xlu1 %2260 }
 0x897   : > { %v2336_v50 = vsel %vm1482_vm4, %v2334_v48, %v2261_v45 }
 0x89a   : > { %v2267_v51 = vpop.permute.xlu1 %2266 }
 0x89b   : > { %v2338_v53 = vsel %vm1470_vm3, %v2336_v50, %v2267_v51 }
 0x89c   : > { %2356 = vrot.lane.b32.xlu1 %v2338_v53, %s5773_s13 }
 0x89e   : > { %v2277_v57 = vpop.permute.xlu1 %2276 }
 0x8a0   : > { %2358 = vrot.lane.b32.xlu1 %v2352_v58, %s5773_s13 }
 0x8a2   : > { %v2283_v59 = vpop.permute.xlu1 %2282 }
 0x8a3   : > { %v2341_v15 = vsel %vm1459_vm2, %v2277_v57, %v2283_v59 }
 0x8a6   : > { %v2289_v61 = vpop.permute.xlu1 %2288 }
 0x8a7   : > { %v2343_v60 = vsel %vm2324_vm11, %v2341_v15, %v2289_v61 }
 0x8aa   : > { %v2295_v62 = vpop.permute.xlu1 %2294 }
 0x8ab   : > { %v2345_v2 = vsel %vm2327_vm13, %v2343_v60, %v2295_v62 }
 0x8ae   : > { %v2301_v63 = vpop.permute.xlu1 %2300 }
 0x8af   : > { %v2347_v29 = vsel %vm2330_vm12, %v2345_v2, %v2301_v63 }
 0x8b2   : > { %v2307_v0 = vpop.permute.xlu1 %2306 }
 0x8b3   : > { %v2349_v30 = vsel %vm2333_vm14, %v2347_v29, %v2307_v0 }
 0x8b6   : > { %v2313_v1 = vpop.permute.xlu1 %2312 }
 0x8b7   : > { %v2351_v31 = vsel %vm1482_vm4, %v2349_v30, %v2313_v1 }
 0x8ba   : > { %v2233_v4 = vpop.permute.xlu1 %2232 }
 0x8bb   : > { %v2323_v9 = vsel %vm1459_vm2, %v6360_v20, %v2233_v4 }
 0x8be   : > { %v2239_v5 = vpop.permute.xlu1 %2238 }
 0x8bf   : > { %v2326_v10 = vsel %vm2324_vm11, %v2323_v9, %v2239_v5 }
 0x8c2   : > { %v2245_v6 = vpop.permute.xlu1 %2244 }
 0x8c3   : > { %v2329_v12 = vsel %vm2327_vm13, %v2326_v10, %v2245_v6 }
 0x8c6   : > { %v2251_v7 = vpop.permute.xlu1 %2250 }
 0x8c7   : > { %v2332_v13 = vsel %vm2330_vm12, %v2329_v12, %v2251_v7 }
 0x8ca   : > { %v2257_v8 = vpop.permute.xlu1 %2256 }
 0x8cb   : > { %v2335_v17 = vsel %vm2333_vm14, %v2332_v13, %v2257_v8 }
 0x8ce   : > { %v2263_v11 = vpop.permute.xlu1 %2262 }
 0x8cf   : > { %v2337_v18 = vsel %vm1482_vm4, %v2335_v17, %v2263_v11 }
 0x8d2   : > { %v2269_v21 = vpop.permute.xlu1 %2268 }
 0x8d3   : > { %v2339_v20 = vsel %vm1470_vm3, %v2337_v18, %v2269_v21 }
 0x8d4   : > { %2451 = vrot.lane.b32.xlu0 %v2339_v20, %s5773_s13 }
 0x8d6   : > { %v2319_v32 = vpop.permute.xlu1 %2318 }
 0x8d7   : > { %v2353_v3 = vsel %vm1470_vm3, %v2351_v31, %v2319_v32 }
 0x8d8   : > { %2453 = vrot.lane.b32.xlu1 %v2353_v3, %s5773_s13 }
 0x8e7   : > { %v2552_v33 = vpop.permute.xlu1 %2551 }
 0x8e8   : > { %vm2556_vm15 = vcmp.eq.s32.totalorder %v2552_v33, 1  ;;  %v3214_v33 = vld [vmem:[%s7010_s25] sm:$0xff] }
 0x90e   : > { %v2357_v34 = vpop.permute.xlu1 %2356 }
 0x90f   : > { %v2441_v35 = vadd.f32 %v6371_v23, %v2357_v34  ;;  %v3215_v34 = vld [vmem:[%s7010_s25 + $0x8] sm:$0xff] }
 0x911   : > { %v2544_v36 = vmul.f32 0.25, %v2441_v35  ;;  %v5307_v35 = vpack.c.bf16 %v3215_v34, %v3214_v33 }
 0x912   : > { %v2359_v38 = vpop.permute.xlu1 %2358 }
 0x913   : > { %v2446_v39 = vadd.f32 %v6367_v22, %v2359_v38  ;;  %v2558_v40 = vsel %vm2556_vm15, -3.4028235e+38, %v2544_v36  ;;  %v5774_v36 = vmov 1966171168   ;;  %v2788_v38 = vlaneseq }
 0x914   : > { %v2562_v41 = vsel %vm1969_vm7, %v2558_v40, -inf  ;;  %v2786_v37 = vunpack.c.l.s4 %v5774_v36 }
 0x915   : > { %v2545_v42 = vmul.f32 0.25, %v2446_v39  ;;  %2563 = vmax.xlane.f32.xlu0 %v2562_v41  ;;  %v5775_v41 = vmov 1983009808  }
 0x916   : > { %v2787_v39 = vunpack.c.0.s8 %v2786_v37 }
 0x917   : > { %v2559_v43 = vsel %vm2557_vm0, -3.4028235e+38, %v2545_v42  ;;  %v3113_v42 = vunpack.c.l.s4 %v5775_v41 }
 0x918   : > { %v2565_v44 = vsel %vm1969_vm7, %v2559_v43, -inf }
 0x919   : > { %2566 = vmax.xlane.f32.xlu1 %v2565_v44 }
 0x946   : > { %v2452_v45 = vpop.permute.xlu0 %2451 }
 0x947   : > { %v2536_v23 = vadd.f32 %v6381_v27, %v2452_v45 }
 0x949   : > { %v2546_v46 = vmul.f32 0.25, %v2536_v23 }
 0x94a   : > { %v2454_v47 = vpop.permute.xlu1 %2453 }
 0x94b   : > { %v2541_v48 = vadd.f32 %v6378_v26, %v2454_v47  ;;  %v2560_v22 = vsel %vm2556_vm15, -3.4028235e+38, %v2546_v46 }
 0x94c   : > { %v2568_v49 = vsel %vm1969_vm7, %v2560_v22, -inf }
 0x94d   : > { %v2547_v50 = vmul.f32 0.25, %v2541_v48  ;;  %2569 = vmax.xlane.f32.xlu0 %v2568_v49  ;;  %v3114_v49 = vunpack.c.0.s8 %v3113_v42 }
 0x94f   : > { %v2561_v51 = vsel %vm2557_vm0, -3.4028235e+38, %v2547_v50 }
 0x950   : > { %v2571_v52 = vsel %vm1969_vm7, %v2561_v51, -inf }
 0x951   : > { %2572 = vmax.xlane.f32.xlu0 %v2571_v52 }
 0x9a2   : > { %v2564_v53 = vpop.xlane.xlu0 %2563 }
 0x9a3   : > { %v2574_v54 = vsub.f32 %v2558_v40, %v2564_v53 }
 0x9a5   : > { %v2578_v55 = vmul.f32 1.442695, %v2574_v54 }
 0x9a6   : > { %v2567_v56 = vpop.xlane.xlu1 %2566 }
 0x9a7   : > { %5589 = vpow2.f32 %v2578_v55  ;;  %v2575_v27 = vsub.f32 %v2559_v43, %v2567_v56 }
 0x9a9   : > { %v2580_v57 = vmul.f32 1.442695, %v2575_v27 }
 0x9ab   : > { %5591 = vpow2.f32 %v2580_v57 }
 0x9b1   : > { %v5590_v58 = vpop.eup %5589 }
 0x9b2   : > { %v2586_v26 = vsel %vm1969_vm7, %v5590_v58, 0.0 }
 0x9b3   : > { %2587 = vadd.xlane.f32.xlu0 %v2586_v26 }
 0x9b5   : > { %v5592_v59 = vpop.eup %5591 }
 0x9b6   : > { %v2589_v61 = vsel %vm1969_vm7, %v5592_v59, 0.0 }
 0x9b7   : > { %2590 = vadd.xlane.f32.xlu1 %v2589_v61 }
 0x9da   : > { %v2570_v62 = vpop.xlane.xlu0 %2569 }
 0x9db   : > { %v2576_v63 = vsub.f32 %v2560_v22, %v2570_v62 }
 0x9dd   : > { %v2582_v0 = vmul.f32 1.442695, %v2576_v63 }
 0x9de   : > { %v2573_v1 = vpop.xlane.xlu0 %2572 }
 0x9df   : > { %5593 = vpow2.f32 %v2582_v0  ;;  %v2577_v4 = vsub.f32 %v2561_v51, %v2573_v1 }
 0x9e1   : > { %v2584_v5 = vmul.f32 1.442695, %v2577_v4 }
 0x9e3   : > { %5595 = vpow2.f32 %v2584_v5 }
 0x9e9   : > { %v5594_v6 = vpop.eup %5593 }
 0x9ea   : > { %v2592_v7 = vsel %vm1969_vm7, %v5594_v6, 0.0 }
 0x9eb   : > { %2593 = vadd.xlane.f32.xlu0 %v2592_v7 }
 0x9ed   : > { %v5596_v8 = vpop.eup %5595 }
 0x9ee   : > { %v2595_v9 = vsel %vm1969_vm7, %v5596_v8, 0.0 }
 0x9ef   : > { %2596 = vadd.xlane.f32.xlu1 %v2595_v9 }
 0xa00   : > { %2613 = vperm.xlu1 %5569, %v6376_v25  }
 0xa01   : > { %2608 = vperm.xlu0 %5570, %v6401_v28  }
 0xa40   : > { %v2588_v10 = vpop.xlane.xlu0 %2587 }
 0xa41   : > { %5597 = vrcp.f32 %v2588_v10 }
 0xa44   : > { %v2591_v11 = vpop.xlane.xlu1 %2590 }
 0xa45   : > { %5599 = vrcp.f32 %v2591_v11 }
 0xa4b   : > { %v5598_v13 = vpop.eup %5597 }
 0xa4c   : > { %v2602_v18 = vmul.f32 %v5598_v13, %v5590_v58 }
 0xa4f   : > { %v5600_v15 = vpop.eup %5599 }
 0xa50   : > { %v2603_v60 = vmul.f32 %v5600_v15, %v5592_v59 }
 0xa78   : > { %v2594_v12 = vpop.xlane.xlu0 %2593 }
 0xa79   : > { %5601 = vrcp.f32 %v2594_v12 }
 0xa7c   : > { %v2597_v17 = vpop.xlane.xlu1 %2596 }
 0xa7d   : > { %5603 = vrcp.f32 %v2597_v17 }
 0xa80   : > { %v6455_v21 = vpop.permute.xlu1 %2613  ;;  %v6457_v2 = vpop.permute.xlu0 %2608 }
 0xa81   : > { %v2617_v25 = vmul.f32 %v6455_v21, %v2603_v60  ;;  %v2616_v28 = vmul.f32 %v6457_v2, %v2602_v18 }
 0xa83   : > { %v5602_v20 = vpop.eup %5601  ;;  %5042 = vmatprep.mubr.msk.f32.mxu0 %vm1969_vm7, %v2616_v28 }
 0xa84   : > { %v2604_v29 = vmul.f32 %v5602_v20, %v5594_v6  ;;  %5043 = vmatmul.mubr.msk.f32.vlgmr.msra.gmra.mrb[10].mxu0 %vm1969_vm7, %v2617_v25 }
 0xa85   : > { %5306 = vmatpush3.bf16.msra.mxu0 %v6350_v16  ;;  %v2789_v16 = vshrl.u32 %v2788_v38, 7 }
 0xa86   : > { %v2618_v30 = vmul.f32 %v6457_v2, %v2604_v29  ;;  %5308 = vmatprep.subr.bf16.mxu0 %v5307_v35 }
 0xa87   : > { %v5604_v31 = vpop.eup %5603  ;;  %v2790_v40 = vsub.s32 %v2787_v39, %v2789_v16  ;;  %v6480_v26 = vsub.s32 0, %v2789_v16  ;;  %v6486_v0 = vsub.s32 %v3114_v49, %v2789_v16 }
 0xa88   : > { %v2605_v32 = vmul.f32 %v5604_v31, %v5596_v8  ;;  %5049 = vmatprep.mubr.msk.f32.mxu0 %vm1969_vm7, %v2618_v30 }
 0xa8a   : > { %v2619_v3 = vmul.f32 %v6455_v21, %v2605_v32 }
 0xa8c   : > { %5050 = vmatmul.mubr.msk.f32.vlgmr.msra.gmra.mrb[12].mxu0 %vm1969_vm7, %v2619_v3 }
 0xa8d   : > { %5310 = vmatpush3.bf16.msra.mxu0 %v5307_v35 }
 0xb57   : > { %v5044_v43 = vpop.f32.mrb[10].mxu0 }
 0xb58   : > { %v2833_v44 = vcombine.high %v5044_v43, %v5044_v43  ;;  %v2840_v45 = vrot.slane %v5044_v43, %v2790_v40  ;;  %v2692_v23 = vpop.f32.mrb[11].mxu0 }
 0xb59   : > { %v2784_v46 = vcombine.high %v2692_v23, %v2692_v23  ;;  %v2791_v47 = vrot.slane %v2692_v23, %v2790_v40 }
 0xb5a   : > { %v2847_v48 = vrot.slane %v2833_v44, %v2790_v40  ;;  %v2848_v22 = vcombine.high %v2840_v45, %v2840_v45  ;;  %v2856_v50 = vrot.slane %v2840_v45, %v2790_v40 }
 0xb5b   : > { %v2798_v51 = vrot.slane %v2784_v46, %v2790_v40  ;;  %v2799_v52 = vcombine.high %v2791_v47, %v2791_v47  ;;  %v6470_v53 = vrot.slane %v2791_v47, %v2790_v40 }
 0xb5c   : > { %v2849_v54 = vcombine.high %v2847_v48, %v2847_v48  ;;  %v6472_v55 = vrot.slane %v2847_v48, %v2790_v40  ;;  %v6474_v56 = vrot.slane %v2848_v22, %v2790_v40  ;;  %v2878_v59 = vcombine.high %v2856_v50, %v2856_v50 }
 0xb5d   : > { %v2800_v27 = vcombine.high %v2798_v51, %v2798_v51  ;;  %v6476_v57 = vrot.slane %v2798_v51, %v2790_v40  ;;  %v6478_v58 = vrot.slane %v2799_v52, %v2790_v40  ;;  %v2829_v62 = vcombine.high %v6470_v53, %v6470_v53 }
 0xb5e   : > { %v6488_v1 = vrot.slane %v2849_v54, %v2790_v40  ;;  %v2879_v4 = vcombine.high %v6472_v55, %v6472_v55  ;;  %v2880_v8 = vcombine.high %v6474_v56, %v6474_v56 }
 0xb5f   : > { %v6482_v61 = vrot.slane %v2800_v27, %v2790_v40  ;;  %v5051_v63 = vpop.f32.mrb[12].mxu0  ;;  %v2830_v9 = vcombine.high %v6476_v57, %v6476_v57  ;;  %v2831_v12 = vcombine.high %v6478_v58, %v6478_v58 }
 0xb60   : > { %v2949_v5 = vcombine.high %v5051_v63, %v5051_v63  ;;  %v2956_v6 = vrot.slane %v5051_v63, %v2790_v40  ;;  %v2773_v7 = vpop.f32.mrb[13].mxu0 }
 0xb61   : > { %v2900_v10 = vcombine.high %v2773_v7, %v2773_v7  ;;  %v2907_v11 = vrot.slane %v2773_v7, %v2790_v40  ;;  %v2832_v60 = vcombine.high %v6482_v61, %v6482_v61 }
 0xb62   : > { %v2963_v13 = vrot.slane %v2949_v5, %v2790_v40  ;;  %v2964_v15 = vcombine.high %v2956_v6, %v2956_v6  ;;  %v2972_v17 = vrot.slane %v2956_v6, %v2790_v40 }
 0xb63   : > { %v2914_v18 = vrot.slane %v2900_v10, %v2790_v40  ;;  %v2915_v25 = vcombine.high %v2907_v11, %v2907_v11  ;;  %v2923_v28 = vrot.slane %v2907_v11, %v2790_v40 }
 0xb64   : > { %v2965_v20 = vcombine.high %v2963_v13, %v2963_v13  ;;  %v2979_v29 = vrot.slane %v2963_v13, %v2790_v40  ;;  %v2986_v30 = vrot.slane %v2964_v15, %v2790_v40  ;;  %v2994_v31 = vcombine.high %v2972_v17, %v2972_v17 }
 0xb65   : > { %v3033_v32 = vrot.slane %v2972_v17, %v6480_v26  ;;  %v2916_v3 = vcombine.high %v2914_v18, %v2914_v18  ;;  %v2930_v33 = vrot.slane %v2914_v18, %v2790_v40  ;;  %v2937_v34 = vrot.slane %v2915_v25, %v2790_v40 }
 0xb66   : > { %v2993_v35 = vrot.slane %v2965_v20, %v2790_v40  ;;  %v2995_v36 = vcombine.high %v2979_v29, %v2979_v29  ;;  %v2996_v37 = vcombine.high %v2986_v30, %v2986_v30  ;;  %v3037_v38 = vrot.slane %v2986_v30, %v6480_v26 }
 0xb67   : > { %v3041_v39 = vrot.slane %v2994_v31, %v6480_v26  ;;  %v3049_v16 = vrot.slane %v2979_v29, %v6480_v26  ;;  %v3086_v41 = vsel %vm1459_vm2, %v2856_v50, %v3033_v32  ;;  %v2944_v42 = vrot.slane %v2916_v3, %v2790_v40 }
 0xb68   : > { %v2997_v43 = vcombine.high %v2993_v35, %v2993_v35  ;;  %v3045_v44 = vrot.slane %v2996_v37, %v6480_v26  ;;  %v3053_v45 = vrot.slane %v2993_v35, %v6480_v26  ;;  %v3057_v23 = vrot.slane %v2995_v36, %v6480_v26 }
 0xb69   : > { %v3087_v46 = vsel %vm1459_vm2, %v6474_v56, %v3037_v38  ;;  %v3088_v47 = vsel %vm1459_vm2, %v2878_v59, %v3041_v39  ;;  %v3090_v48 = vsel %vm1459_vm2, %v6472_v55, %v3049_v16  ;;  %v2945_v22 = vcombine.high %v2923_v28, %v2923_v28  ;;  %v3216_v38 = vld [vmem:[%s7010_s25 + $0x10] sm:$0xff] }
 0xb6a   : > { %v3061_v49 = vrot.slane %v2997_v43, %v6480_v26  ;;  %v3144_v50 = vcombine.low %v3086_v41, %v3087_v46  ;;  %v2946_v40 = vcombine.high %v2930_v33, %v2930_v33  ;;  %v2947_v51 = vcombine.high %v2937_v34, %v2937_v34  ;;  %v4721_v43 = vld [vmem:[%s7012_s24] ss:$0 sm:$0xff]  ;;  %s5633_s24 = sshll.u32 %s5777_s3, 4  ;;  %s5634_s24 = int_to_ptr.vmem [resolvable:$false] %s5633_s24 }
 0xb6b   : > { %v2948_v52 = vcombine.high %v2944_v42, %v2944_v42  ;;  %v3001_v54 = vrot.slane %v2923_v28, %v6480_v26  ;;  %v3005_v27 = vrot.slane %v2937_v34, %v6480_v26  ;;  %v3009_v63 = vrot.slane %v2945_v22, %v6480_v26  ;;  %s5635_s6 = scalar_lea.vmem %s5634_s24, 512 }
 0xb6c   : > { %v3013_v5 = vrot.slane %v2947_v51, %v6480_v26  ;;  %v3017_v59 = vrot.slane %v2930_v33, %v6480_v26  ;;  %v3021_v6 = vrot.slane %v2944_v42, %v6480_v26  ;;  %v3025_v7 = vrot.slane %v2946_v40, %v6480_v26 }
 0xb6d   : > { %v3029_v10 = vrot.slane %v2948_v52, %v6480_v26  ;;  %v3078_v11 = vsel %vm1459_vm2, %v6470_v53, %v3001_v54  ;;  %v3079_v13 = vsel %vm1459_vm2, %v6478_v58, %v3005_v27  ;;  %v3080_v15 = vsel %vm1459_vm2, %v2829_v62, %v3009_v63 }
 0xb6e   : > { %v3082_v17 = vsel %vm1459_vm2, %v6476_v57, %v3017_v59  ;;  %v3081_v18 = vsel %vm1459_vm2, %v2831_v12, %v3013_v5  ;;  %v3110_v25 = vcombine.low %v3078_v11, %v3079_v13  ;;  %v3083_v28 = vsel %vm1459_vm2, %v6482_v61, %v3021_v6  ;;  %v3352_v5 = vld [vmem:[%s6071_s27] sm:$0xff]  ;;  %v3353_v59 = vld [vmem:[%s6071_s27 + $0x8] sm:$0xff]  ;;  %v3354_v11 = vld [vmem:[%s6071_s27 + $0x10] sm:$0xff] }
 0xb6f   : > { %v3111_v20 = vcombine.low %v3080_v15, %v3081_v18  ;;  %v3084_v26 = vsel %vm1459_vm2, %v2830_v9, %v3025_v7  ;;  %v3085_v29 = vsel %vm1459_vm2, %v2832_v60, %v3029_v10  ;;  %v3127_v53 = vcombine.low %v3082_v17, %v3083_v28  ;;  %v3444_v6 = vld [vmem:[%s6076_s20] sm:$0xff]  ;;  %v3445_v10 = vld [vmem:[%s6076_s20 + $0x8] sm:$0xff]  ;;  %v3355_v13 = vld [vmem:[%s6071_s27 + $0x18] sm:$0xff]  ;;  %s7017_s27 = sld [smem:[#allocation25_spill]] }
 0xb70   : > { %v2881_v58 = vcombine.high %v6488_v1, %v6488_v1  ;;  %v3118_v62 = vrot.slane %v3110_v25, %v6486_v0  ;;  %v3128_v30 = vcombine.low %v3084_v26, %v3085_v29  ;;  %v3089_v57 = vsel %vm1459_vm2, %v2880_v8, %v3045_v44  ;;  %v3446_v18 = vld [vmem:[%s6076_s20 + $0x10] sm:$0xff]  ;;  %v3447_v25 = vld [vmem:[%s6076_s20 + $0x18] sm:$0xff] }
 0xb71   : > { %v3125_v12 = vrot.slane %v3111_v20, %v6486_v0  ;;  %v3135_v61 = vrot.slane %v3127_v53, %v6486_v0  ;;  %v3145_v9 = vcombine.low %v3088_v47, %v3089_v57  ;;  %v3091_v60 = vsel %vm1459_vm2, %v6488_v1, %v3053_v45  ;;  %v4724_v57 = vld [vmem:[%s1341_s10] ss:$0 sm:$0xff] }
 0xb72   : > { %v3142_v31 = vrot.slane %v3128_v30, %v6486_v0  ;;  %v3092_v32 = vsel %vm1459_vm2, %v2879_v4, %v3057_v23  ;;  %v3093_v56 = vsel %vm1459_vm2, %v2881_v58, %v3061_v49  ;;  %v3161_v8 = vcombine.low %v3090_v48, %v3091_v60  ;;  %v3217_v4 = vld [vmem:[%s7010_s25 + $0x18] sm:$0xff] }
 0xb73   : > { %v3126_v3 = vcombine.low %v3118_v62, %v3125_v12  ;;  %v3152_v33 = vrot.slane %v3144_v50, %v6486_v0  ;;  %v3159_v34 = vrot.slane %v3145_v9, %v6486_v0  ;;  %v3162_v35 = vcombine.low %v3092_v32, %v3093_v56 }
 0xb74   : > { %v3143_v36 = vcombine.low %v3135_v61, %v3142_v31  ;;  %v3169_v1 = vrot.slane %v3161_v8, %v6486_v0  ;;  %v5311_v39 = vpack.c.bf16 %v3217_v4, %v3216_v38  ;;  %v5315_v7 = vpack.c.bf16 %v3353_v59, %v3352_v5  ;;  %v4725_v61 = vld [vmem:[%s1344_s19] ss:$0 sm:$0xff]  ;;  %v3550_v4 = vld [vmem:[%s6088_s7 + $0x30] sm:$0xff]  ;;  %s7015_s19 = sld [smem:[#allocation27_spill]] }
 0xb75   : > { %3182 = vxpose.xlu1.b32.start [1/4] (short) (narrow) %v3126_v3, 16  ;;  %v3160_v37 = vcombine.low %v3152_v33, %v3159_v34  ;;  %v3176_v55 = vrot.slane %v3162_v35, %v6486_v0  ;;  %v5323_v15 = vpack.c.bf16 %v3445_v10, %v3444_v6  ;;  %v5319_v17 = vpack.c.bf16 %v3355_v13, %v3354_v11  ;;  %v3544_v3 = vld [vmem:[%s6088_s7] sm:$0xff]  ;;  %v3545_v33 = vld [vmem:[%s6088_s7 + $0x8] sm:$0xff]  ;;  %v3546_v34 = vld [vmem:[%s6088_s7 + $0x10] sm:$0xff]  ;;  %s7018_s10 = scalar_lea.vmem %s7017_s27, %s6012_s1 }
 0xb76   : > { %5312 = vmatprep.subr.bf16.mxu0 %v5311_v39  ;;  %5316 = vmatprep.subr.bf16.mxu1 %v5315_v7  ;;  %v5327_v28 = vpack.c.bf16 %v3447_v25, %v3446_v18  ;;  %v5332_v35 = vpack.c.bf16 %v3545_v33, %v3544_v3 }
 0xb77   : > { %v3177_v16 = vcombine.low %v3169_v1, %v3176_v55  ;;  %5314 = vmatpush3.bf16.msra.mxu0 %v5311_v39  ;;  %5318 = vmatpush3.bf16.msra.mxu1 %v5315_v7  ;;  %v3548_v1 = vld [vmem:[%s6088_s7 + $0x20] sm:$0xff]  ;;  %v3549_v55 = vld [vmem:[%s6088_s7 + $0x28] sm:$0xff]  ;;  %v3551_v39 = vld [vmem:[%s6088_s7 + $0x38] sm:$0xff] }
 0xb78   : > { %5324 = vmatprep.subr.bf16.mxu0 %v5323_v15  ;;  %5320 = vmatprep.subr.bf16.mxu1 %v5319_v17  ;;  %v5338_v38 = vpack.c.bf16 %v3549_v55, %v3548_v1 }
 0xb79   : > { %3183 = vxpose.xlu1.b32.cont [2/4] (short) (narrow) %v3143_v36, 16  ;;  %v3547_v36 = vld [vmem:[%s6088_s7 + $0x18] sm:$0xff] }
 0xb7a   : > { %s7016_s20 = scalar_lea.vmem %s7015_s19, %s6012_s1 }
 0xb7b   : > { %5322 = vmatpush3.bf16.msra.mxu1 %v5319_v17 }
 0xb7c   : > { %5331 = vmatprep.subr.bf16.mxu1 %v5756_v14 }
 0xb7d   : > { %3184 = vxpose.xlu1.b32.cont [3/4] (short) (narrow) %v3160_v37, 16  ;;  %v5335_v37 = vpack.c.bf16 %v3547_v36, %v3546_v34 }
 0xb81   : > { %3185 = vxpose.xlu1.b32.end [4/4] (short) (narrow) %v3177_v16, 16  ;;  %v5341_v16 = vpack.c.bf16 %v3551_v39, %v3550_v4 }
 0xbf5   : > { %v3198_v41 = vpop.trf.xlu1 }
 0xbf6   : > { %5060 = vmatprep.mubr.msk.f32.mxu0 %vm1400_vm1, %v3198_v41  ;;  %v3552_v41 = vld [vmem:[%s6088_s7 + $0x40] sm:$0xff] }
 0xbf9   : > { %v3199_v42 = vpop.trf.xlu1 }
 0xbfa   : > { %5061 = vmatmul.mubr.msk.f32.vlgmr.msra.gmra.mrb[14].mxu0 %vm1400_vm1, %v3199_v42  ;;  %v3553_v42 = vld [vmem:[%s6088_s7 + $0x48] sm:$0xff] }
 0xbfb   : > { %5326 = vmatpush3.bf16.msra.mxu0 %v5323_v15 }
 0xbfc   : > { %5328 = vmatprep.subr.bf16.mxu0 %v5327_v28 }
 0xbff   : > { %5330 = vmatpush3.bf16.msra.mxu0 %v5327_v28 }
 0xccd   : > { %v5062_v44 = vpop.f32.mrb[14].mxu0 }
 0xcce   : > { %v3297_v45 = vpop.f32.mrb[15].mxu0  ;;  %v3303_v0 = vadd.f32 %v5062_v44, %v4721_v43  ;;  %v3554_v44 = vld [vmem:[%s6088_s7 + $0x50] sm:$0xff] }
 0xccf   : > { %v3298_v23 = vadd.f32 %v4721_v43, %v3297_v45  ;;  %v5344_v43 = vpack.c.bf16 %v3553_v42, %v3552_v41  ;;  %v3555_v45 = vld [vmem:[%s6088_s7 + $0x58] sm:$0xff] }
 0xcd0   : > { %v6566_v47 = vadd.f32 %v3303_v0, %v6205_v24  ;;  %v5347_v0 = vpack.c.bf16 %v3555_v45, %v3554_v44 }
 0xcd1   : > { %v6563_v46 = vadd.f32 %v3298_v23, %v6200_v19  ;;  %v3556_v23 = vld [vmem:[%s6088_s7 + $0x60] sm:$0xff] }
 0xcd2   : > { %v3313_v22 = vsel %vm1400_vm1, %v6566_v47, 0.0 }
 0xcd3   : > { %v3310_v48 = vsel %vm1400_vm1, %v6563_v46, 0.0 }
 0xcd4   : > { %3311 = vadd.xlane.f32.xlu0 %v3310_v48  ;;  %v3557_v48 = vld [vmem:[%s6088_s7 + $0x68] sm:$0xff] }
 0xcd8   : > { %3314 = vadd.xlane.f32.xlu0 %v3313_v22  ;;  %v5350_v22 = vpack.c.bf16 %v3557_v48, %v3556_v23  ;;  %v3570_v48 = vld [vmem:[%s6088_s7 + $0xd0] sm:$0xff] }
 0xd61   : > { %v3312_v49 = vpop.xlane.xlu0 %3311 }
 0xd62   : > { %v3316_v50 = vmul.f32 0.03125, %v3312_v49  ;;  %v3558_v49 = vld [vmem:[%s6088_s7 + $0x70] sm:$0xff] }
 0xd64   : > { %v3318_v19 = vsub.f32 %v6563_v46, %v3316_v50  ;;  %v3559_v50 = vld [vmem:[%s6088_s7 + $0x78] sm:$0xff] }
 0xd65   : > { %v3315_v24 = vpop.xlane.xlu0 %3314 }
 0xd66   : > { %v3317_v40 = vmul.f32 0.03125, %v3315_v24  ;;  %v3320_v51 = vmul.f32 %v3318_v19, %v3318_v19  ;;  %v3560_v24 = vld [vmem:[%s6088_s7 + $0x80] sm:$0xff] }
 0xd68   : > { %v3319_v52 = vsub.f32 %v6566_v47, %v3317_v40  ;;  %v3322_v54 = vsel %vm1400_vm1, %v3320_v51, 0.0  ;;  %v3561_v40 = vld [vmem:[%s6088_s7 + $0x88] sm:$0xff] }
 0xd69   : > { %3323 = vadd.xlane.f32.xlu0 %v3322_v54  ;;  %v5356_v51 = vpack.c.bf16 %v3561_v40, %v3560_v24  ;;  %v3563_v54 = vld [vmem:[%s6088_s7 + $0x98] sm:$0xff] }
 0xd6a   : > { %v3321_v27 = vmul.f32 %v3319_v52, %v3319_v52 }
 0xd6c   : > { %v3325_v63 = vsel %vm1400_vm1, %v3321_v27, 0.0 }
 0xd6d   : > { %3326 = vadd.xlane.f32.xlu0 %v3325_v63  ;;  %v4729_v63 = vld [vmem:[%s7016_s20] ss:$0 sm:$0xff] }
 0xdf6   : > { %v3324_v20 = vpop.xlane.xlu0 %3323 }
 0xdf7   : > { %v3328_v26 = vmul.f32 0.03125, %v3324_v20  ;;  %v4726_v20 = vld [vmem:[%s7018_s10] ss:$0 sm:$0xff] }
 0xdf9   : > { %v3330_v29 = vadd.f32 1e-05, %v3328_v26  ;;  %v3564_v26 = vld [vmem:[%s6088_s7 + $0xa0] sm:$0xff] }
 0xdfa   : > { %v3327_v53 = vpop.xlane.xlu0 %3326 }
 0xdfb   : > { %5605 = vrsqrt.f32 %v3330_v29  ;;  %v3329_v58 = vmul.f32 0.03125, %v3327_v53  ;;  %v3565_v29 = vld [vmem:[%s6088_s7 + $0xa8] sm:$0xff] }
 0xdfc   : > { %v5362_v53 = vpack.c.bf16 %v3565_v29, %v3564_v26 }
 0xdfd   : > { %v3331_v62 = vadd.f32 1e-05, %v3329_v58 }
 0xdff   : > { %5607 = vrsqrt.f32 %v3331_v62 }
 0xe05   : > { %v5606_v30 = vpop.eup %5605 }
 0xe06   : > { %v3334_v12 = vmul.f32 %v5606_v30, %v3318_v19  ;;  %v5353_v19 = vpack.c.bf16 %v3559_v50, %v3558_v49 }
 0xe08   : > { %v3342_v9 = vmul.f32 %v4724_v57, %v3334_v12  ;;  %v3567_v12 = vld [vmem:[%s6088_s7 + $0xb8] sm:$0xff] }
 0xe09   : > { %v5608_v60 = vpop.eup %5607 }
 0xe0a   : > { %v3335_v31 = vmul.f32 %v5608_v60, %v3319_v52  ;;  %v3350_v32 = vadd.f32 %v4725_v61, %v3342_v9  ;;  %v3562_v52 = vld [vmem:[%s6088_s7 + $0x90] sm:$0xff] }
 0xe0b   : > { %v5359_v27 = vpack.c.bf16 %v3563_v54, %v3562_v52 }
 0xe0c   : > { %v3343_v56 = vmul.f32 %v4724_v57, %v3335_v31  ;;  %5071 = vmatprep.mubr.msk.f32.mxu1 %vm1400_vm1, %v3350_v32  ;;  %5082 = vmatprep.mubr.msk.f32.mxu0 %vm1400_vm1, %v3350_v32  ;;  %v3566_v57 = vld [vmem:[%s6088_s7 + $0xb0] sm:$0xff] }
 0xe0d   : > { %v5365_v60 = vpack.c.bf16 %v3567_v12, %v3566_v57 }
 0xe0e   : > { %v3351_v8 = vadd.f32 %v4725_v61, %v3343_v56  ;;  %v3568_v56 = vld [vmem:[%s6088_s7 + $0xc0] sm:$0xff] }
 0xe10   : > { %5072 = vmatmul.mubr.msk.f32.vlgmr.msra.gmra.mrb[6].mxu1 %vm1400_vm1, %v3351_v8  ;;  %5083 = vmatmul.mubr.msk.f32.vlgmr.msra.gmra.mrb[16].mxu0 %vm1400_vm1, %v3351_v8  ;;  %v3569_v8 = vld [vmem:[%s6088_s7 + $0xc8] sm:$0xff] }
 0xe11   : > { %5333 = vmatpush1.bf16.msra.mxu1 %v5332_v35  ;;  %v5368_v33 = vpack.c.bf16 %v3569_v8, %v3568_v56 }
 0xe12   : > { %5334 = vmatprep.subr.bf16.mxu1 %v5756_v14 }
 0xe15   : > { %5336 = vmatpush1.bf16.msra.mxu1 %v5335_v37 }
 0xe16   : > { %5337 = vmatprep.subr.bf16.mxu1 %v5756_v14 }
 0xe19   : > { %5339 = vmatpush1.bf16.msra.mxu1 %v5338_v38 }
 0xe1a   : > { %5340 = vmatprep.subr.bf16.mxu1 %v5756_v14 }
 0xe1d   : > { %5342 = vmatpush1.bf16.msra.mxu1 %v5341_v16 }
 0xe1e   : > { %5343 = vmatprep.subr.bf16.mxu1 %v5756_v14 }
 0xe21   : > { %5345 = vmatpush1.bf16.msra.mxu1 %v5344_v43 }
 0xe22   : > { %5346 = vmatprep.subr.bf16.mxu1 %v5756_v14 }
 0xe25   : > { %5348 = vmatpush1.bf16.msra.mxu1 %v5347_v0 }
 0xe26   : > { %5349 = vmatprep.subr.bf16.mxu1 %v5756_v14 }
 0xe29   : > { %5351 = vmatpush1.bf16.msra.mxu1 %v5350_v22  ;;  %v3571_v22 = vld [vmem:[%s6088_s7 + $0xd8] sm:$0xff]  ;;  %s5776_s7 = smov 96  }
 0xe2a   : > { %5352 = vmatprep.subr.bf16.mxu1 %v5756_v14  ;;  %v5371_v24 = vpack.c.bf16 %v3571_v22, %v3570_v48 }
 0xe2d   : > { %5354 = vmatpush1.bf16.msra.mxu1 %v5353_v19 }
 0xe2e   : > { %5355 = vmatprep.subr.bf16.mxu1 %v5756_v14 }
 0xe31   : > { %5357 = vmatpush1.bf16.msra.mxu1 %v5356_v51 }
 0xe32   : > { %5358 = vmatprep.subr.bf16.mxu1 %v5756_v14 }
 0xe35   : > { %5360 = vmatpush1.bf16.msra.mxu1 %v5359_v27 }
 0xe36   : > { %5361 = vmatprep.subr.bf16.mxu1 %v5756_v14 }
 0xe39   : > { %5363 = vmatpush1.bf16.msra.mxu1 %v5362_v53 }
 0xe3a   : > { %5364 = vmatprep.subr.bf16.mxu1 %v5756_v14 }
 0xe3d   : > { %5366 = vmatpush1.bf16.msra.mxu1 %v5365_v60 }
 0xe3e   : > { %5367 = vmatprep.subr.bf16.mxu1 %v5756_v14 }
 0xe41   : > { %5369 = vmatpush1.bf16.msra.mxu1 %v5368_v33 }
 0xe42   : > { %5370 = vmatprep.subr.bf16.mxu1 %v5756_v14 }
 0xe45   : > { %5372 = vmatpush1.bf16.msra.mxu1 %v5371_v24 }
 0xee3   : > { %v5073_v5 = vpop.f32.mrb[6].mxu1  ;;  %v5084_v59 = vpop.f32.mrb[16].mxu0 }
 0xee4   : > { %v3527_v6 = vadd.f32 %v5084_v59, %v4729_v63  ;;  %v3435_v7 = vpop.f32.mrb[7].mxu1  ;;  %v3521_v10 = vpop.f32.mrb[17].mxu0  ;;  %v3441_v58 = vadd.f32 %v5073_v5, %v4726_v20 }
 0xee5   : > { %v3522_v11 = vadd.f32 %v4729_v63, %v3521_v10  ;;  %v3436_v30 = vadd.f32 %v4726_v20, %v3435_v7 }
 0xee6   : > { %v4733_v13 = vmul.f32 -1.442695, %v3527_v6 }
 0xee7   : > { %v4732_v15 = vmul.f32 -1.442695, %v3522_v11 }
 0xee8   : > { %5609 = vpow2.f32 %v4733_v13 }
 0xee9   : > { %5611 = vpow2.f32 %v4732_v15 }
 0xef2   : > { %v5610_v17 = vpop.eup %5609 }
 0xef3   : > { %v5612_v18 = vpop.eup %5611  ;;  %v3537_v25 = vadd.f32 1.0, %v5610_v17 }
 0xef4   : > { %v3536_v28 = vadd.f32 1.0, %v5612_v18 }
 0xef5   : > { %5613 = vrcp.f32 %v3537_v25 }
 0xef6   : > { %5615 = vrcp.f32 %v3536_v28 }
 0xeff   : > { %v5614_v62 = vpop.eup %5613 }
 0xf00   : > { %v5616_v61 = vpop.eup %5615  ;;  %v3543_v9 = vmul.f32 %v5614_v62, %v3441_v58 }
 0xf01   : > { %v3542_v31 = vmul.f32 %v5616_v61, %v3436_v30 }
 0xf02   : > { %v3576_v32 = vrot.slane %v3543_v9, 5 }
 0xf03   : > { %v3575_v3 = vrot.slane %v3542_v31, 5 }
 0xf04   : > { %v6639_v34 = vsel %vm2327_vm13, %v3576_v32, 0.0 }
 0xf05   : > { %v3581_v35 = vsel %vm2327_vm13, 0.0, %v3575_v3  ;;  %v6644_v36 = vsel %vm2327_vm13, %v3575_v3, %v3576_v32  ;;  %v3588_v37 = vrot.slane %v6639_v34, 1  ;;  %v3639_v39 = vrot.slane %v6639_v34, 6 }
 0xf06   : > { %v3625_v1 = vrot.slane %v3581_v35, 5  ;;  %v3626_v55 = vrot.slane %v6644_v36, 5  ;;  %v3585_v38 = vrot.slane %v3581_v35, 1  ;;  %v3586_v4 = vrot.slane %v6644_v36, 1 }
 0xf07   : > { %v3596_v16 = vrot.slane %v3581_v35, 2  ;;  %v3597_v41 = vrot.slane %v6644_v36, 2  ;;  %v3599_v42 = vrot.slane %v6639_v34, 2  ;;  %v3637_v0 = vrot.slane %v6644_v36, 6 }
 0xf08   : > { %v3627_v43 = vsel %vm2327_vm13, %v3625_v1, %v3626_v55  ;;  %v3587_v44 = vsel %vm1470_vm3, %v3585_v38, %v3586_v4  ;;  %v3589_v45 = vsel %vm1470_vm3, %v3586_v4, %v3588_v37  ;;  %v3636_v51 = vrot.slane %v3581_v35, 6  ;;  %v3777_v37 = vld [vmem:[%s6091_s2 + $0x8] sm:$0xff]  ;;  %v3779_v38 = vld [vmem:[%s6091_s2 + $0x18] sm:$0xff] }
 0xf09   : > { %3630 = vrot.lane.b32.xlu1 %v3627_v43, %s7019_s29  ;;  %v5571_v23 = vpack.i.bf16 %v3589_v45, %v3587_v44  ;;  %v3598_v49 = vsel %vm1482_vm4, %v3596_v16, %v3597_v41  ;;  %v3600_v50 = vsel %vm1482_vm4, %v3597_v41, %v3599_v42  ;;  %v3640_v19 = vsel %vm2324_vm11, %v3637_v0, %v3639_v39  ;;  %v4737_v16 = vld [vmem:[%s7024_s18] ss:$0 sm:$0xff] }
 0xf0a   : > { %v5576_v40 = vpack.i.bf16 %v3600_v50, %v3598_v49  ;;  %v3638_v52 = vsel %vm2324_vm11, %v3636_v51, %v3637_v0  ;;  %v3607_v54 = vrot.slane %v3581_v35, 3  ;;  %v3608_v27 = vrot.slane %v6644_v36, 3  ;;  %v4738_v43 = vld [vmem:[%s7025_s5] ss:$0 sm:$0xff] }
 0xf0b   : > { %5572 = vrot.lane.b32.xlu0 %v5571_v23, %s7019_s29  ;;  %v3628_v5 = vrot.slane %v6639_v34, 5  ;;  %v3610_v6 = vrot.slane %v6639_v34, 3  ;;  %v3618_v11 = vrot.slane %v3581_v35, 4  ;;  %v3619_v13 = vrot.slane %v6644_v36, 4 }
 0xf0c   : > { %v3609_v63 = vsel %vm2333_vm14, %v3607_v54, %v3608_v27  ;;  %v3621_v30 = vrot.slane %v6639_v34, 4 }
 0xf0d   : > { %3643 = vrot.lane.b32.xlu1 %v3640_v19, %s7020_s8  ;;  %v3629_v59 = vsel %vm2327_vm13, %v3626_v55, %v3628_v5  ;;  %v3611_v7 = vsel %vm2333_vm14, %v3608_v27, %v3610_v6  ;;  %v3620_v18 = vsel %vm2330_vm12, %v3618_v11, %v3619_v13  ;;  %v3778_v55 = vld [vmem:[%s6091_s2 + $0x10] sm:$0xff] }
 0xf0e   : > { %v3622_v9 = vsel %vm2330_vm12, %v3619_v13, %v3621_v30  ;;  %v5377_v4 = vpack.c.bf16 %v3779_v38, %v3778_v55  ;;  %v4748_v30 = vld [vmem:[%s6992_s9 + $0x60] sm:$0xff] }
 0xf0f   : > { %5577 = vrot.lane.b32.xlu0 %v5576_v40, %s7020_s8 }
 0xf13   : > { %3641 = vrot.lane.b32.xlu0 %v3638_v52, %s7020_s8 }
 0xf17   : > { %3612 = vrot.lane.b32.xlu0 %v3609_v63, %s5776_s7 }
 0xf1b   : > { %3632 = vrot.lane.b32.xlu0 %v3629_v59, %s7019_s29 }
 0xf1f   : > { %3614 = vrot.lane.b32.xlu0 %v3611_v7, %s5776_s7 }
 0xf7b   : > { %v3631_v17 = vpop.permute.xlu1 %3630 }
 0xf7c   : > { %v3653_v28 = vsel %vm1400_vm1, %v3620_v18, %v3631_v17 }
 0xf7d   : > { %v5573_v10 = vpop.permute.xlu0 %5572 }
 0xf7e   : > { %v5574_v25 = vunpack.i.l.bf16 %v5573_v10  ;;  %v5575_v12 = vunpack.i.h.bf16 %v5573_v10 }
 0xf7f   : > { %v3644_v31 = vpop.permute.xlu1 %3643 }
 0xf80   : > { %v3647_v53 = vsel %vm1400_vm1, %v3581_v35, %v5574_v25  ;;  %v3648_v8 = vsel %vm1400_vm1, %v6644_v36, %v5575_v12  ;;  %v3776_v35 = vld [vmem:[%s6091_s2] sm:$0xff]  ;;  %s7026_s2 = sld [smem:[#allocation32_spill]]  ;;  %v4750_v12 = vld [vmem:[%s6992_s9 + $0x70] sm:$0xff] }
 0xf81   : > { %v5578_v15 = vpop.permute.xlu0 %5577  ;;  %v5373_v1 = vpack.c.bf16 %v3777_v37, %v3776_v35  ;;  %v4734_v36 = vld [vmem:[%s7023_s15] ss:$0 sm:$0xff]  ;;  %v4757_v35 = vld [vmem:[%s6992_s9 + $0xa8] sm:$0xff] }
 0xf82   : > { %v5579_v20 = vunpack.i.l.bf16 %v5578_v15  ;;  %v5580_v61 = vunpack.i.h.bf16 %v5578_v15 }
 0xf83   : > { %5374 = vmatprep.subr.bf16.mxu0 %v5373_v1 }
 0xf84   : > { %v3649_v62 = vsel %vm1496_vm5, %v3647_v53, %v5579_v20  ;;  %v3650_v33 = vsel %vm1496_vm5, %v3648_v8, %v5580_v61  ;;  %5376 = vmatpush3.bf16.msra.mxu0 %v5373_v1  ;;  %v4754_v8 = vld [vmem:[%s6992_s9 + $0x90] sm:$0xff] }
 0xf85   : > { %v3642_v26 = vpop.permute.xlu0 %3641  ;;  %5378 = vmatprep.subr.bf16.mxu0 %v5377_v4 }
 0xf86   : > { %v3655_v29 = vsel %vm1496_vm5, %v3653_v28, %v3642_v26  ;;  %s7027_s28 = scalar_lea.vmem %s7026_s2, %s6012_s1  ;;  %s7028_s1 = sld [smem:[#allocation38_spill]] }
 0xf87   : > { %4735 = vmatprep.mubr.msk.f32.mxu1 %vm1505_vm6, %v3655_v29  ;;  %v4741_v59 = vld [vmem:[%s7027_s28] ss:$0 sm:$0xff] }
 0xf88   : > { %5380 = vmatpush3.bf16.msra.mxu0 %v5377_v4 }
 0xf89   : > { %v3613_v58 = vpop.permute.xlu0 %3612  ;;  %5405 = vmatprep.subr.bf16.mxu0 %v5756_v14 }
 0xf8a   : > { %v3651_v57 = vsel %vm1505_vm6, %v3649_v62, %v3613_v58 }
 0xf8b   : > { %3734 = vmatmul.mubr.f32.vlgmr.msra.gmra.mrb[8].mxu1 %v3651_v57  ;;  %v4749_v57 = vld [vmem:[%s6992_s9 + $0x68] sm:$0xff] }
 0xf8c   : > { %v5381_v61 = vpack.c.bf16 %v4749_v57, %v4748_v30  ;;  %v4766_v30 = vld [vmem:[%s6995_s30 + $0xd0] sm:$0xff] }
 0xf8d   : > { %v3633_v60 = vpop.permute.xlu0 %3632 }
 0xf8e   : > { %v3654_v32 = vsel %vm1400_vm1, %v3622_v9, %v3633_v60  ;;  %v4751_v9 = vld [vmem:[%s6992_s9 + $0x78] sm:$0xff]  ;;  %5382 = vmatprep.subr.bf16.mxu1 %v5381_v61 }
 0xf8f   : > { %v3656_v56 = vsel %vm1496_vm5, %v3654_v32, %v3644_v31  ;;  %v5385_v60 = vpack.c.bf16 %v4751_v9, %v4750_v12  ;;  %v4752_v31 = vld [vmem:[%s6992_s9 + $0x80] sm:$0xff]  ;;  %v4753_v32 = vld [vmem:[%s6992_s9 + $0x88] sm:$0xff]  ;;  %5384 = vmatpush3.bf16.msra.mxu1 %v5381_v61  ;;  %v4767_v12 = vld [vmem:[%s6995_s30 + $0xd8] sm:$0xff] }
 0xf90   : > { %4736 = vmatprep.mubr.msk.f32.mxu1 %vm1505_vm6, %v3656_v56  ;;  %v5389_v56 = vpack.c.bf16 %v4753_v32, %v4752_v31  ;;  %v5409_v61 = vpack.c.bf16 %v4767_v12, %v4766_v30  ;;  %v4768_v9 = vld [vmem:[%s6995_s30 + $0xe0] sm:$0xff]  ;;  %v4770_v32 = vld [vmem:[%s6995_s30 + $0xf0] sm:$0xff] }
 0xf91   : > { %v3615_v3 = vpop.permute.xlu0 %3614  ;;  %5386 = vmatprep.subr.bf16.mxu1 %v5385_v60  ;;  %v4789_v30 = vld [vmem:[%s6997_s0 + $0x1] ss:$0 sm:$0xff] }
 0xf92   : > { %v3652_v34 = vsel %vm1505_vm6, %v3650_v33, %v3615_v3  ;;  %v4755_v3 = vld [vmem:[%s6992_s9 + $0x98] sm:$0xff] }
 0xf93   : > { %3739 = vmatmul.mubr.f32.gmra.mrb[10].mxu1 %v3652_v34  ;;  %v5393_v33 = vpack.c.bf16 %v4755_v3, %v4754_v8  ;;  %v4756_v34 = vld [vmem:[%s6992_s9 + $0xa0] sm:$0xff] }
 0xf94   : > { %5388 = vmatpush3.bf16.msra.mxu1 %v5385_v60  ;;  %v5397_v37 = vpack.c.bf16 %v4757_v35, %v4756_v34  ;;  %v4769_v60 = vld [vmem:[%s6995_s30 + $0xe8] sm:$0xff]  ;;  %v4772_v3 = vld [vmem:[%s6995_s30 + $0x100] sm:$0xff]  ;;  %v4774_v35 = vld [vmem:[%s6995_s30 + $0x110] sm:$0xff] }
 0xf95   : > { %5390 = vmatprep.subr.bf16.mxu1 %v5389_v56  ;;  %v5412_v31 = vpack.c.bf16 %v4769_v60, %v4768_v9 }
 0xf98   : > { %5392 = vmatpush3.bf16.msra.mxu1 %v5389_v56  ;;  %v4771_v56 = vld [vmem:[%s6995_s30 + $0xf8] sm:$0xff] }
 0xf99   : > { %5394 = vmatprep.subr.bf16.mxu1 %v5393_v33  ;;  %v5415_v8 = vpack.c.bf16 %v4771_v56, %v4770_v32 }
 0xf9c   : > { %5396 = vmatpush3.bf16.msra.mxu1 %v5393_v33  ;;  %v4773_v33 = vld [vmem:[%s6995_s30 + $0x108] sm:$0xff] }
 0xf9d   : > { %5398 = vmatprep.subr.bf16.mxu1 %v5397_v37  ;;  %v5418_v34 = vpack.c.bf16 %v4773_v33, %v4772_v3 }
 0xfa0   : > { %5400 = vmatpush3.bf16.msra.mxu1 %v5397_v37  ;;  %v4775_v37 = vld [vmem:[%s6995_s30 + $0x118] sm:$0xff] }
0x105e   : > { %v3735_v39 = vpop.f32.mrb[8].mxu1 }
0x105f   : > { %v3736_v41 = vadd.f32 %v4734_v36, %v3735_v39  ;;  %v3737_v42 = vpop.f32.mrb[9].mxu1 }
0x1061   : > { %v3751_v44 = vmul.f32 %v4737_v16, %v3736_v41  ;;  %v4746_v41 = vld [vmem:[%s6993_s17 + $0x1] ss:$0 sm:$0xff]  ;;  %s7030_s17 = sld [smem:[#allocation35_spill]] }
0x1063   : > { %v3760_v45 = vadd.f32 %v4738_v43, %v3751_v44  ;;  %v4758_v44 = vld [vmem:[%s6992_s9 + $0xb0] sm:$0xff] }
0x1065   : > { %v4739_v0 = vmul.f32 -1.442695, %v3760_v45 }
0x1066   : > { %v3740_v23 = vpop.f32.mrb[10].mxu1 }
0x1067   : > { %5617 = vpow2.f32 %v4739_v0  ;;  %v3741_v48 = vadd.f32 %v4734_v36, %v3740_v23  ;;  %v3742_v22 = vpop.f32.mrb[11].mxu1  ;;  %v4747_v23 = vld [vmem:[%s6994_s21 + $0x1] ss:$0 sm:$0xff]  ;;  %s7032_s22 = sand.u32 1, %s7030_s17  }
0x1068   : > { %s6823_s13 = scalar_lea.sflag [#allocation3], %s7032_s22 }
0x1069   : > { %v3752_v49 = vmul.f32 %v4737_v16, %v3741_v48 }
0x106b   : > { %v3761_v50 = vadd.f32 %v4738_v43, %v3752_v49 }
0x106d   : > { %v4740_v19 = vmul.f32 -1.442695, %v3761_v50 }
0x106f   : > { %5619 = vpow2.f32 %v4740_v19 }
0x1071   : > { %v5618_v24 = vpop.eup %5617 }
0x1072   : > { %v3768_v40 = vadd.f32 1.0, %v5618_v24 }
0x1074   : > { %5621 = vrcp.f32 %v3768_v40 }
0x1079   : > { %v5620_v51 = vpop.eup %5619 }
0x107a   : > { %v3769_v52 = vadd.f32 1.0, %v5620_v51 }
0x107c   : > { %5623 = vrcp.f32 %v3769_v52 }
0x107e   : > { %v5622_v54 = vpop.eup %5621 }
0x107f   : > { %v3774_v27 = vmul.f32 %v5622_v54, %v3760_v45  ;;  %v4759_v45 = vld [vmem:[%s6992_s9 + $0xb8] sm:$0xff]  ;;  %s7029_s9 = sld [smem:[#allocation33_spill]] }
0x1080   : > { %v5401_v48 = vpack.c.bf16 %v4759_v45, %v4758_v44  ;;  %v4782_v44 = vld [vmem:[%s6995_s30 + $0x150] sm:$0xff]  ;;  %v4783_v45 = vld [vmem:[%s6995_s30 + $0x158] sm:$0xff] }
0x1081   : > { %5093 = vmatprep.mubr.msk.f32.mxu0 %vm1400_vm1, %v3774_v27 }
0x1082   : > { %5402 = vmatprep.subr.bf16.mxu1 %v5401_v48 }
0x1083   : > { %5404 = vmatpush3.bf16.msra.mxu1 %v5401_v48  ;;  %v4785_v48 = vld [vmem:[%s6995_s30 + $0x168] sm:$0xff] }
0x1086   : > { %v5624_v63 = vpop.eup %5623 }
0x1087   : > { %v3775_v5 = vmul.f32 %v5624_v63, %v3761_v50 }
0x1089   : > { %5094 = vmatmul.mubr.msk.f32.vlgmr.msra.gmra.mrb[18].mxu0 %vm1400_vm1, %v3775_v5 }
0x115c   : > { %v5095_v6 = vpop.f32.mrb[18].mxu0 }
0x115d   : > { %v3865_v7 = vadd.f32 %v5095_v6, %v4741_v59  ;;  %v3859_v10 = vpop.f32.mrb[19].mxu0 }
0x115e   : > { %v3860_v11 = vadd.f32 %v4741_v59, %v3859_v10 }
0x115f   : > { %v6712_v13 = vadd.f32 %v3865_v7, %v6566_v47 }
0x1160   : > { %v6715_v15 = vadd.f32 %v3860_v11, %v6563_v46 }
0x1161   : > { %v3877_v17 = vsel %vm1400_vm1, %v6712_v13, 0.0 }
0x1162   : > { %3878 = vadd.xlane.f32.xlu0 %v3877_v17  ;;  %v3874_v18 = vsel %vm1400_vm1, %v6715_v15, 0.0 }
0x1163   : > { %3875 = vadd.xlane.f32.xlu1 %v3874_v18 }
0x11ef   : > { %v3879_v25 = vpop.xlane.xlu0 %3878 }
0x11f0   : > { %v3881_v28 = vmul.f32 0.03125, %v3879_v25  ;;  %v3876_v20 = vpop.xlane.xlu1 %3875 }
0x11f1   : > { %v3880_v47 = vmul.f32 0.03125, %v3876_v20 }
0x11f2   : > { %v3883_v46 = vsub.f32 %v6712_v13, %v3881_v28 }
0x11f3   : > { %v3882_v26 = vsub.f32 %v6715_v15, %v3880_v47 }
0x11f4   : > { %v3885_v29 = vmul.f32 %v3883_v46, %v3883_v46 }
0x11f5   : > { %v3884_v53 = vmul.f32 %v3882_v26, %v3882_v26 }
0x11f6   : > { %v3889_v58 = vsel %vm1400_vm1, %v3885_v29, 0.0 }
0x11f7   : > { %3890 = vadd.xlane.f32.xlu1 %v3889_v58  ;;  %v3886_v62 = vsel %vm1400_vm1, %v3884_v53, 0.0  ;;  %v4764_v58 = vld [vmem:[%s6995_s30 + $0xc0] sm:$0xff] }
0x11f8   : > { %3887 = vadd.xlane.f32.xlu0 %v3886_v62  ;;  %v4765_v62 = vld [vmem:[%s6995_s30 + $0xc8] sm:$0xff] }
0x11f9   : > { %v5406_v57 = vpack.c.bf16 %v4765_v62, %v4764_v58 }
0x11fb   : > { %5407 = vmatpush1.bf16.msra.mxu0 %v5406_v57 }
0x11fc   : > { %5408 = vmatprep.subr.bf16.mxu0 %v5756_v14 }
0x11ff   : > { %5410 = vmatpush1.bf16.msra.mxu0 %v5409_v61 }
0x1200   : > { %5411 = vmatprep.subr.bf16.mxu0 %v5756_v14 }
0x1203   : > { %5413 = vmatpush1.bf16.msra.mxu0 %v5412_v31 }
0x1204   : > { %5414 = vmatprep.subr.bf16.mxu0 %v5756_v14 }
0x1207   : > { %5416 = vmatpush1.bf16.msra.mxu0 %v5415_v8 }
0x1208   : > { %5417 = vmatprep.subr.bf16.mxu0 %v5756_v14 }
0x120b   : > { %5419 = vmatpush1.bf16.msra.mxu0 %v5418_v34 }
0x120c   : > { %5420 = vmatprep.subr.bf16.mxu0 %v5756_v14 }
0x1284   : > { %v3891_v1 = vpop.xlane.xlu1 %3890 }
0x1285   : > { %v3893_v55 = vmul.f32 0.03125, %v3891_v1  ;;  %v3888_v38 = vpop.xlane.xlu0 %3887  ;;  %v5421_v1 = vpack.c.bf16 %v4775_v37, %v4774_v35 }
0x1286   : > { %v3892_v4 = vmul.f32 0.03125, %v3888_v38  ;;  %v4777_v38 = vld [vmem:[%s6995_s30 + $0x128] sm:$0xff] }
0x1287   : > { %v3895_v36 = vadd.f32 1e-05, %v3893_v55  ;;  %v4776_v55 = vld [vmem:[%s6995_s30 + $0x120] sm:$0xff]  ;;  %5422 = vmatpush1.bf16.msra.mxu0 %v5421_v1 }
0x1288   : > { %v3894_v39 = vadd.f32 1e-05, %v3892_v4  ;;  %v5424_v4 = vpack.c.bf16 %v4777_v38, %v4776_v55  ;;  %5423 = vmatprep.subr.bf16.mxu0 %v5756_v14 }
0x1289   : > { %5625 = vrsqrt.f32 %v3895_v36  ;;  %v4778_v36 = vld [vmem:[%s6995_s30 + $0x130] sm:$0xff] }
0x128a   : > { %5627 = vrsqrt.f32 %v3894_v39  ;;  %v4779_v39 = vld [vmem:[%s6995_s30 + $0x138] sm:$0xff] }
0x128b   : > { %5425 = vmatpush1.bf16.msra.mxu0 %v5424_v4 }
0x128c   : > { %5426 = vmatprep.subr.bf16.mxu0 %v5756_v14 }
0x1293   : > { %v5626_v16 = vpop.eup %5625 }
0x1294   : > { %v5628_v42 = vpop.eup %5627  ;;  %v3899_v43 = vmul.f32 %v5626_v16, %v3883_v46  ;;  %v5427_v16 = vpack.c.bf16 %v4779_v39, %v4778_v36 }
0x1295   : > { %v3898_v0 = vmul.f32 %v5628_v42, %v3882_v26  ;;  %v4781_v42 = vld [vmem:[%s6995_s30 + $0x148] sm:$0xff] }
0x1296   : > { %v3907_v22 = vmul.f32 %v4746_v41, %v3899_v43  ;;  %5428 = vmatpush1.bf16.msra.mxu0 %v5427_v16 }
0x1297   : > { %v3906_v49 = vmul.f32 %v4746_v41, %v3898_v0  ;;  %v4780_v41 = vld [vmem:[%s6995_s30 + $0x140] sm:$0xff]  ;;  %5429 = vmatprep.subr.bf16.mxu0 %v5756_v14  ;;  %v5433_v0 = vpack.c.bf16 %v4783_v45, %v4782_v44 }
0x1298   : > { %v3915_v50 = vadd.f32 %v4747_v23, %v3907_v22  ;;  %v5430_v43 = vpack.c.bf16 %v4781_v42, %v4780_v41 }
0x1299   : > { %v3914_v19 = vadd.f32 %v4747_v23, %v3906_v49  ;;  %v4784_v23 = vld [vmem:[%s6995_s30 + $0x160] sm:$0xff]  ;;  %v4786_v49 = vld [vmem:[%s6995_s30 + $0x170] sm:$0xff] }
0x129a   : > { %v3934_v24 = vrot.slane %v3915_v50, 7  ;;  %5431 = vmatpush1.bf16.msra.mxu0 %v5430_v43  ;;  %v5436_v22 = vpack.c.bf16 %v4785_v48, %v4784_v23  ;;  %v4787_v50 = vld [vmem:[%s6995_s30 + $0x178] sm:$0xff]  ;;  %s4805_s30 = sshll.u32 %s7028_s1, 8 }
0x129b   : > { %v3933_v40 = vrot.slane %v3914_v19, 7  ;;  %5432 = vmatprep.subr.bf16.mxu0 %v5756_v14  ;;  %v5439_v19 = vpack.c.bf16 %v4787_v50, %v4786_v49  ;;  %s6814_s0 = scalar_lea.hbm %s7029_s9, %s4805_s30 }
0x129c   : > { %v3940_v51 = vsel %vm1459_vm2, %v3934_v24, 0.0 }
0x129d   : > { %v3935_v52 = vsel %vm1459_vm2, %v3933_v40, %v3934_v24  ;;  %v3946_v54 = vrot.slane %v3940_v51, 1  ;;  %v3939_v27 = vsel %vm1459_vm2, 0.0, %v3933_v40  ;;  %v3957_v59 = vrot.slane %v3940_v51, 2  ;;  %v4761_v24 = vld [vmem:[%s6996_s26 + $0x1] ss:$0 sm:$0xff]  ;;  %s4222_s26 = sshll.u32 %s6096_s16, 4  ;;  %s6817_s26 = int_to_ptr.vmem [resolvable:$true] %s4222_s26 }
0x129e   : > { %v3944_v63 = vrot.slane %v3935_v52, 1  ;;  %v3943_v5 = vrot.slane %v3939_v27, 1  ;;  %v3954_v10 = vrot.slane %v3939_v27, 2  ;;  %v3955_v11 = vrot.slane %v3935_v52, 2  ;;  %5434 = vmatpush1.bf16.msra.mxu0 %v5433_v0  ;;  %s5629_s25 = scalar_lea.vmem %s6817_s26, 256  ;;  %p5636_p5 = scmp.lt.s32.totalorder %s6817_s26, %s5634_s24 }
0x129f   : > { %5435 = vmatprep.subr.bf16.mxu0 %v5756_v14  ;;  %p5630_p1 = scmp.ne.s32.totalorder %s6817_s26, %s5629_s25  ;;  %p5637_p6 = scmp.lt.s32.totalorder %s5635_s6, %s5629_s25 }
0x12a0   : > { %v3947_v6 = vsel %vm1470_vm3, %v3944_v63, %v3946_v54  ;;  %v3945_v7 = vsel %vm1470_vm3, %v3943_v5, %v3944_v63  ;;  %v3956_v17 = vsel %vm1482_vm4, %v3954_v10, %v3955_v11  ;;  %v3958_v18 = vsel %vm1482_vm4, %v3955_v11, %v3957_v59 }
0x12a1   : > { %3950 = vrot.lane.b32.xlu1 %v3947_v6, %s7019_s29  ;;  %3948 = vrot.lane.b32.xlu0 %v3945_v7, %s7019_s29  ;;  %p5631_p2 = pnand %p5630_p1, %p5983_p3  ;;  %p5638_p7 = por %p5637_p6, %p5636_p5 }
0x12a2   : > { %5437 = vmatpush1.bf16.msra.mxu0 %v5436_v22 }
0x12a3   : > { %5438 = vmatprep.subr.bf16.mxu0 %v5756_v14  ;;  %p5632_p4 = pneg %p5631_p2 }
0x12a5   : > { %3959 = vrot.lane.b32.xlu1 %v3956_v17, %s7020_s8  ;;  %3961 = vrot.lane.b32.xlu0 %v3958_v18, %s7020_s8  ;;  %p5639_p8 = pnand %p5638_p7, %p5632_p4 }
0x12a6   : > { %5440 = vmatpush1.bf16.msra.mxu0 %v5439_v19 }
0x1313   : > { %v3951_v25 = vpop.permute.xlu1 %3950  ;;  %v3949_v28 = vpop.permute.xlu0 %3948 }
0x1314   : > { %v3966_v20 = vsel %vm1400_vm1, %v3935_v52, %v3951_v25  ;;  %v3965_v47 = vsel %vm1400_vm1, %v3939_v27, %v3949_v28 }
0x1317   : > { %v3960_v46 = vpop.permute.xlu1 %3959  ;;  %v3962_v26 = vpop.permute.xlu0 %3961 }
0x1318   : > { %v3967_v29 = vsel %vm1496_vm5, %v3965_v47, %v3960_v46  ;;  %v3968_v53 = vsel %vm1496_vm5, %v3966_v20, %v3962_v26 }
0x1319   : > { %5120 = vmatprep.mubr.msk.f32.mxu1 %vm1505_vm6, %v3967_v29 }
0x131a   : > { %5121 = vmatmul.mubr.msk.f32.vlgmr.msra.gmra.mrb[12].mxu1 %vm1505_vm6, %v3968_v53 }
0x13ed   : > { %v5122_v40 = vpop.f32.mrb[12].mxu1 }
0x13ee   : > { %v4053_v51 = vadd.f32 %v5122_v40, %v4761_v24  ;;  %v4047_v52 = vpop.f32.mrb[13].mxu1 }
0x13ef   : > { %v4048_v54 = vadd.f32 %v4761_v24, %v4047_v52 }
0x13f0   : > { %v4057_v27 = vmax.f32 %v4053_v51, 0.0 }
0x13f1   : > { %v4056_v63 = vmax.f32 %v4048_v54, 0.0 }
0x13f2   : > { %v4088_v5 = vrot.slane %v4057_v27, 7 }
0x13f3   : > { %v4087_v59 = vrot.slane %v4056_v63, 7 }
0x13f4   : > { %v4094_v6 = vsel %vm1459_vm2, %v4088_v5, 0.0 }
0x13f5   : > { %v4100_v7 = vrot.slane %v4094_v6, 1  ;;  %v4111_v10 = vrot.slane %v4094_v6, 2  ;;  %v4089_v11 = vsel %vm1459_vm2, %v4087_v59, %v4088_v5  ;;  %v4093_v17 = vsel %vm1459_vm2, 0.0, %v4087_v59 }
0x13f6   : > { %v4097_v18 = vrot.slane %v4093_v17, 1  ;;  %v4108_v14 = vrot.slane %v4093_v17, 2  ;;  %v4109_v25 = vrot.slane %v4089_v11, 2  ;;  %v4098_v28 = vrot.slane %v4089_v11, 1 }
0x13f8   : > { %v4110_v20 = vsel %vm1482_vm4, %v4108_v14, %v4109_v25  ;;  %v4101_v47 = vsel %vm1470_vm3, %v4098_v28, %v4100_v7  ;;  %v4099_v46 = vsel %vm1470_vm3, %v4097_v18, %v4098_v28  ;;  %v4112_v26 = vsel %vm1482_vm4, %v4109_v25, %v4111_v10 }
0x13f9   : > { %4790 = vmatprep.mubr.msk.f32.mxu0 %vm1496_vm5, %v4110_v20  ;;  %4104 = vrot.lane.b32.xlu0 %v4101_v47, %s7020_s8 }
0x13fa   : > { %4102 = vrot.lane.b32.xlu1 %v4099_v46, %s7020_s8 }
0x146b   : > { %v4105_v58 = vpop.permute.xlu0 %4104 }
0x146c   : > { %v4103_v29 = vpop.permute.xlu1 %4102  ;;  %v4114_v62 = vsel %vm1496_vm5, %v4089_v11, %v4105_v58 }
0x146d   : > { %v4113_v53 = vsel %vm1496_vm5, %v4093_v17, %v4103_v29 }
0x146e   : > { %4190 = vmatmul.mubr.f32.vlgmr.msra.gmra.mrb[20].mxu0 %v4113_v53 }
0x146f   : > { %4791 = vmatprep.mubr.msk.f32.mxu0 %vm1496_vm5, %v4112_v26 }
0x1472   : > { %4195 = vmatmul.mubr.f32.gmra.mrb[22].mxu0 %v4114_v62 }
0x1541   : > { %v4191_v57 = vpop.f32.mrb[20].mxu0 }
0x1542   : > { %v4192_v12 = vadd.f32 %v4789_v30, %v4191_v57  ;;  %v4193_v61 = vpop.f32.mrb[21].mxu0 }
0x1544   : > { %v4200_v9 = vmul.f32 0.5, %v4192_v12 }
0x1545   : > { %v4196_v60 = vpop.f32.mrb[22].mxu0 }
0x1546   : > { %v4202_v31 = vadd.f32 %v4200_v9, %v6715_v15  ;;  %v4197_v32 = vadd.f32 %v4789_v30, %v4196_v60  ;;  %v4198_v56 = vpop.f32.mrb[23].mxu0 }
0x1548   : > { %v4204_v8 = vmul.f32 %v4202_v31, %v6457_v2  ;;  %v4201_v3 = vmul.f32 0.5, %v4197_v32 }
0x154a   : > { %4206 = vst.msk [vmem:[%s6096_s16] sm:$0xff] %vm1400_vm1, %v4204_v8  ;;  %v4203_v33 = vadd.f32 %v4201_v3, %v6712_v13 }
0x154c   : > { %v4205_v34 = vmul.f32 %v4203_v33, %v6455_v21 }
0x154e   : > { %4207 = vst.msk [vmem:[%s6096_s16 + $0x8] sm:$0xff] %vm1400_vm1, %v4205_v34 }
0x154f   : > { %5642 = shalt.err (!%p5639_p8)
}
0x1550   : > { %s5643_s16 = scalar_lea.hbm %s6814_s0, 256  ;;  %s5647_s23 = scalar_lea.hbm %s7029_s9, 512 }
0x1551   : > { %p5644_p10 = scmp.ne.s32.totalorder %s6814_s0, %s5643_s16  ;;  %p5648_p13 = scmp.lt.u32.totalorder %s6814_s0, %s7029_s9 }
0x1552   : > { %p5649_p0 = scmp.lt.u32.totalorder %s5647_s23, %s5643_s16  ;;  %p5651_p2 = scmp.lt.u32.totalorder %s5643_s16, %s6814_s0 }
0x1553   : > { %p5645_p11 = pnand %p5644_p10, %p5983_p3 }
0x1554   : > { %p5650_p1 = por %p5649_p0, %p5648_p13 }
0x1555   : > { %p5646_p12 = pneg %p5645_p11 }
0x1556   : > { %p5652_p5 = por %p5651_p2, %p5650_p1 }
0x1558   : > { %p5653_p4 = pnand %p5652_p5, %p5646_p12 }
0x155a   : > { %5656 = shalt.err (!%p5653_p4)
}
0x155b   : > { %s5778_s19 = smov 128  }
0x155c   : > { %5444 = dma.vmem_to_hbm [thread:$0]  (%p5983_p3), %s6817_s26, 256, %s6814_s0, %s6823_s13, %s5778_s19, %s5778_s19, %s5757_s14  }
0x155d PF: > { %s7033_s20 = sld [smem:[#allocation41_spill]]  ;;  %s7034_s27 = sld [smem:[#allocation34_spill]] }
0x1563   : > { %p5450_p6 = scmp.ge.s32.totalorder %s7033_s20, 2  ;;  %s4237_s29 = sand.u32 1, %s7034_s27  }
0x1564   : > { %s4238_s8 = scalar_lea.sflag [#allocation3], %s4237_s29 }
0x1565   : > { %p5447_p7 = pnand %p5450_p6, %p5993_p9 }
0x1567   : > { %5690 = dma.done.wait (!%p5447_p7), %s4238_s8, 256  }
0x1568   : > { %5692 = vsyncadd (!%p5447_p7), %s4238_s8, 4294967040  ;;  %s72_s23 = sadd.s32 1, %s7033_s20   ;;  %s7036_s7 = sld [smem:[#allocation35_spill]] }
0x1569   : > { %p69_p8 = scmp.ge.s32.totalorder %s72_s23, 6   ;;  %s7037_s10 = sld [smem:[#allocation36_spill]] }
0x156a   : > { %s7038_s11 = sld [smem:[#allocation46_spill]]  ;;  %s7039_s15 = sld [smem:[#allocation39_spill]] }
0x156b   : > { %s7040_s16 = sld [smem:[#allocation40_spill]]  ;;  %s7041_s18 = sld [smem:[#allocation42_spill]] }
0x156c   : > { %s7042_s22 = sld [smem:[#allocation44_spill]]  ;;  %71 = sbr.rel (!%p69_p8) target bundleno = 72 (0x48), region = 294 }
0x1573   :  { %4243 = vsyncpa [#allocation3], 1 }
0x1574   :  { %4245 = vsyncpa [#allocation3 + $0x1], 1 }

</bundles_post_ra>
